<compile_context>
chip_gen: v5e
topology: v5e:2x2
jax: 0.10.0
libtpu: 0.0.40
codegen_flags: <defaults>
</compile_context>

<pallas_src>
import jax
import jax.numpy as jnp
from jax.experimental import pallas as pl
from jax.experimental.pallas import tpu as pltpu


# ------------------------------------------------------------------ host-side helpers

def calc_same_padding(kernel_size):
    pad = kernel_size // 2
    return (pad, pad - (kernel_size + 1) % 2)


def round_up(x, m):
    return ((x + m - 1) // m) * m


def rotary_cos_sin(seq_len, dim_head, theta=50000.0):
    # voicebox-style RotaryEmbedding: freqs = outer(t, inv_freq), cat((f, f), -1)
    inv_freq = 1.0 / (theta ** (jnp.arange(0, dim_head, 2, dtype=jnp.float32) / dim_head))
    t = jnp.arange(seq_len, dtype=jnp.float32)
    freqs = t[:, None] * inv_freq[None, :]
    freqs = jnp.concatenate([freqs, freqs], axis=-1)      # (N, dim_head)
    return jnp.cos(freqs), jnp.sin(freqs)


def rotate_half_matrix(dh):
    # x @ R == rotate_half(x) == cat([-x2, x1], -1);  R = [[0, I], [-I, 0]]
    half = dh // 2
    eye = jnp.eye(half, dtype=jnp.float32)
    zero = jnp.zeros((half, half), jnp.float32)
    top = jnp.concatenate([zero, eye], axis=1)
    bot = jnp.concatenate([-eye, zero], axis=1)
    return jnp.concatenate([top, bot], axis=0)


def pick_batch_tile(B, N, target_rows=256):
    # smallest divisor of B whose row slab reaches ~target_rows, else the whole batch
    divisors = [d for d in range(1, B + 1) if B % d == 0]
    for d in divisors:
        if d * N >= target_rows:
            return d
    return divisors[-1]


# packed small-parameter row indices (vecD)
_VD = dict(ff1_lnw=0, ff1_lnb=1, ff1_b2=2, at_lnw=3, at_lnb=4, bo=5,
           cv_lnw=6, cv_lnb=7, pw2_b=8, ff2_lnw=9, ff2_lnb=10, ff2_b2=11,
           pn_w=12, pn_b=13)


# ------------------------------------------------------------------------------ kernel

def make_block_kernel(*, D, H, C, K, N, Bt, pad_l, pad_off, padn, with_proj):
    """Per-ConformerBlock kernel; static config captured in closure."""
    dh = D // H
    rows = Bt * N

    def layer_norm(x, w, b, eps=1e-5):
        mu = jnp.mean(x, axis=-1, keepdims=True)
        var = jnp.mean((x - mu) ** 2, axis=-1, keepdims=True)
        return (x - mu) * jax.lax.rsqrt(var + eps) * w + b

    def feed_forward(x, lnw, lnb, w1_ref, b1, w2_ref, b2):
        h = layer_norm(x, lnw, lnb)
        y = jnp.dot(h.astype(jnp.bfloat16), w1_ref[...],
                    preferred_element_type=jnp.float32) + b1
        y = y * jax.nn.sigmoid(y)                                   # Swish
        y = jnp.dot(y.astype(jnp.bfloat16), w2_ref[...],
                    preferred_element_type=jnp.float32) + b2
        return x + 0.5 * y                                          # Scale(0.5) + residual

    def kernel(*refs):
        if with_proj:
            (x_ref, skip_ref, wproj_ref, bproj_ref,
             cos_ref, sin_ref, vecD, vecF, vecC, vec2C,
             wqkv, wo, ff1w1, ff1w2, pw1w, dww, pw2w, ff2w1, ff2w2,
             o_ref, attn_sc, ypad_ref) = refs
        else:
            (x_ref,
             cos_ref, sin_ref, vecD, vecF, vecC, vec2C,
             wqkv, wo, ff1w1, ff1w2, pw1w, dww, pw2w, ff2w1, ff2w2,
             o_ref, attn_sc, ypad_ref) = refs

        vd = lambda name: vecD[_VD[name]:_VD[name] + 1, :]          # (1, D) slices

        x = x_ref[...].reshape(rows, D)                             # (Bt*N, D) f32

        # ---- fused expanding-path projection: Linear(2D->D)(cat([x, skip], -1)) ----
        if with_proj:
            skip = skip_ref[...].reshape(rows, D)
            x = (jnp.dot(x.astype(jnp.bfloat16), wproj_ref[0],
                         preferred_element_type=jnp.float32)
                 + jnp.dot(skip.astype(jnp.bfloat16), wproj_ref[1],
                           preferred_element_type=jnp.float32)
                 + bproj_ref[...])

        # -------------------- ff1 --------------------
        x = feed_forward(x, vd('ff1_lnw'), vd('ff1_lnb'),
                         ff1w1, vecF[0:1, :], ff1w2, vd('ff1_b2'))

        # ----------------- attention -----------------
        h = layer_norm(x, vd('at_lnw'), vd('at_lnb'))
        hb = h.astype(jnp.bfloat16)
        # fused lane-dense projections; 1/sqrt(dh) folded into wqkv[0]/wqkv[1],
        # per-head rotate_half folded into wqkv[1]/wqkv[3].
        q = jnp.dot(hb, wqkv[0], preferred_element_type=jnp.float32)
        qr = jnp.dot(hb, wqkv[1], preferred_element_type=jnp.float32)
        k = jnp.dot(hb, wqkv[2], preferred_element_type=jnp.float32)
        kr = jnp.dot(hb, wqkv[3], preferred_element_type=jnp.float32)
        v = jnp.dot(hb, wqkv[4], preferred_element_type=jnp.float32)
        cos = cos_ref[...]
        sin = sin_ref[...]
        qrot = q * cos + qr * sin                                    # (rows, D)
        krot = k * cos + kr * sin

        for hh in range(H):                                          # static head loop
            lo = hh * dh
            qh = qrot[:, lo:lo + dh].reshape(Bt, N, dh).astype(jnp.bfloat16)
            kh = krot[:, lo:lo + dh].reshape(Bt, N, dh).astype(jnp.bfloat16)
            vh = v[:, lo:lo + dh].reshape(Bt, N, dh).astype(jnp.bfloat16)
            s = jnp.einsum('bnd,bmd->bnm', qh, kh,
                           preferred_element_type=jnp.float32)       # (Bt, N, N)
            s = s - jnp.max(s, axis=-1, keepdims=True)
            p = jnp.exp(s)
            p = p * pl.reciprocal(jnp.sum(p, axis=-1, keepdims=True), approx=True)
            o = jnp.einsum('bnm,bmd->bnd', p.astype(jnp.bfloat16), vh,
                           preferred_element_type=jnp.float32)       # (Bt, N, dh)
            # head merge via VMEM scratch at lane offset h*dh (single dense proj below)
            attn_sc[:, lo:lo + dh] = o.reshape(rows, dh)
        attn = jnp.dot(attn_sc[...].astype(jnp.bfloat16), wo[...],
                       preferred_element_type=jnp.float32) + vd('bo')
        x = x + attn

        # ---------------- conv module ----------------
        h = layer_norm(x, vd('cv_lnw'), vd('cv_lnb'))
        y = jnp.dot(h.astype(jnp.bfloat16), pw1w[...],
                    preferred_element_type=jnp.float32) + vec2C[...]  # (rows, 2C)
        y = y[:, 0:C] * jax.nn.sigmoid(y[:, C:2 * C])                 # GLU -> (rows, C)

        # depthwise 'same' conv along the sequence, per batch element:
        # zero only the (sublane-aligned) pad regions each step, write the interior
        # at the aligned offset pad_off, then read the K taps as shifted ref slices.
        if pad_off > 0:
            ypad_ref[:, 0:pad_off, :] = jnp.zeros((Bt, pad_off, C), jnp.float32)
        if padn > pad_off + N:
            ypad_ref[:, pad_off + N:padn, :] = jnp.zeros(
                (Bt, padn - pad_off - N, C), jnp.float32)
        ypad_ref[:, pad_off:pad_off + N, :] = y.reshape(Bt, N, C)

        wtaps = dww[...]                                              # (K, C) f32
        acc = jnp.zeros((Bt, N, C), jnp.float32)
        base = pad_off - pad_l
        for kk in range(K):                                           # static tap loop
            acc = acc + (ypad_ref[:, base + kk:base + kk + N, :]
                         * wtaps[kk:kk + 1, :].reshape(1, 1, C))
        z = acc.reshape(rows, C) + vecC[0:1, :]                       # + dw bias
        z = z * jax.nn.sigmoid(z)                                     # Swish
        # ChanLayerNorm: biased variance over channels, clamp(1e-6), gamma only
        mu = jnp.mean(z, axis=-1, keepdims=True)
        var = jnp.mean((z - mu) ** 2, axis=-1, keepdims=True)
        z = (z - mu) * jax.lax.rsqrt(jnp.maximum(var, 1e-6)) * vecC[1:2, :]
        y2 = jnp.dot(z.astype(jnp.bfloat16), pw2w[...],
                     preferred_element_type=jnp.float32) + vd('pw2_b')
        x = x + y2

        # -------------------- ff2 --------------------
        x = feed_forward(x, vd('ff2_lnw'), vd('ff2_lnb'),
                         ff2w1, vecF[1:2, :], ff2w2, vd('ff2_b2'))

        # ------------------ post norm -----------------
        x = layer_norm(x, vd('pn_w'), vd('pn_b'))
        o_ref[...] = x.reshape(Bt, N, D).astype(o_ref.dtype)

    return kernel


# ---------------------------------------------------------------- pallas_call wrapper

_COMPILER_PARAMS = pltpu.CompilerParams(
    dimension_semantics=("parallel",),       # v7x: shard the batch-tile grid over TCs
    vmem_limit_bytes=48 * 1024 * 1024,       # raised floor; capped for v7x headroom
)


def _const_spec(p):
    nd = p.ndim
    return pl.BlockSpec(p.shape, lambda g: (0,) * nd)


def run_block(x, cos_full, sin_full, bp, proj, *, cfg):
    B, N, D = x.shape
    Bt, C, K = cfg['Bt'], cfg['C'], cfg['K']
    with_proj = proj is not None
    kernel = make_block_kernel(D=D, H=cfg['H'], C=C, K=K, N=N, Bt=Bt,
                               pad_l=cfg['pad_l'], pad_off=cfg['pad_off'],
                               padn=cfg['padn'], with_proj=with_proj)

    xspec = pl.BlockSpec((Bt, N, D), lambda g: (g, 0, 0))
    inputs = [x]
    in_specs = [xspec]
    if with_proj:
        skip, pp = proj
        inputs += [skip, pp['wproj'], pp['bproj']]
        in_specs += [xspec, _const_spec(pp['wproj']), _const_spec(pp['bproj'])]
    weights = [cos_full, sin_full, bp['vecD'], bp['vecF'], bp['vecC'], bp['vec2C'],
               bp['wqkv'], bp['wo'], bp['ff1w1'], bp['ff1w2'], bp['pw1w'],
               bp['dww'], bp['pw2w'], bp['ff2w1'], bp['ff2w2']]
    inputs += weights
    in_specs += [_const_spec(w) for w in weights]

    rows = Bt * N
    return pl.pallas_call(
        kernel,
        out_shape=jax.ShapeDtypeStruct((B, N, D), x.dtype),
        grid_spec=pltpu.PrefetchScalarGridSpec(
            num_scalar_prefetch=0,
            grid=(B // Bt,),
            in_specs=in_specs,
            out_specs=pl.BlockSpec((Bt, N, D), lambda g: (g, 0, 0)),
            scratch_shapes=[pltpu.VMEM((rows, D), jnp.float32),        # attn head merge
                            pltpu.VMEM((Bt, cfg['padn'], C), jnp.float32)]),  # conv pad
        compiler_params=_COMPILER_PARAMS,
    )(*inputs)


def uconformer_forward(x, block_params, proj_params, *, depth, heads,
                       kernel_size, conv_expansion):
    B, N, D = x.shape
    dh = D // heads
    C = D * conv_expansion
    pad_l, pad_r = calc_same_padding(kernel_size)
    pad_off = round_up(pad_l, 8)                       # sublane-aligned interior write
    padn = round_up(pad_off + N + pad_r, 8)
    Bt = pick_batch_tile(B, N)

    cos, sin = rotary_cos_sin(N, dh)                   # (N, dh)
    cos_full = jnp.tile(jnp.tile(cos, (1, heads)), (Bt, 1))   # (Bt*N, D)
    sin_full = jnp.tile(jnp.tile(sin, (1, heads)), (Bt, 1))

    cfg = dict(H=heads, C=C, K=kernel_size, Bt=Bt, pad_l=pad_l,
               pad_off=pad_off, padn=padn)

    contracting_depth = depth // 2 - (1 - depth % 2)
    expanding_start = depth - contracting_depth
    cache = []
    proj_i = 0
    for i in range(depth):
        proj = None
        if i >= expanding_start:                       # expanding: fused proj(cat([x, skip]))
            proj = (cache.pop(-1), proj_params[proj_i])
            proj_i += 1
        x = run_block(x, cos_full, sin_full, block_params[i], proj, cfg=cfg)
        if i < contracting_depth:                      # contracting: cache output
            cache.append(x)
    return x


# -------------------------------------------------------------------------- parameters

def init_block_params(key, D, F, C, K):
    ks = jax.random.split(key, 11)
    nrm = lambda k, shape, s=0.02: (s * jax.random.normal(k, shape)).astype(jnp.float32)
    ones = lambda s: jnp.ones(s, jnp.float32)
    zeros = lambda s: jnp.zeros(s, jnp.float32)
    return dict(
        ff1_lnw=ones((1, D)), ff1_lnb=zeros((1, D)),
        ff1_w1=nrm(ks[0], (D, F)), ff1_b1=zeros((1, F)),
        ff1_w2=nrm(ks[1], (F, D)), ff1_b2=zeros((1, D)),
        at_lnw=ones((1, D)), at_lnb=zeros((1, D)),
        wq=nrm(ks[2], (D, D)), wk=nrm(ks[3], (D, D)), wv=nrm(ks[4], (D, D)),
        wo=nrm(ks[5], (D, D)), bo=zeros((1, D)),
        cv_lnw=ones((1, D)), cv_lnb=zeros((1, D)),
        pw1_w=nrm(ks[6], (D, 2 * C)), pw1_b=zeros((1, 2 * C)),
        dw_w=nrm(ks[7], (K, C)), dw_b=zeros((1, C)),
        ch_g=ones((1, C)),
        pw2_w=nrm(ks[8], (C, D)), pw2_b=zeros((1, D)),
        ff2_lnw=ones((1, D)), ff2_lnb=zeros((1, D)),
        ff2_w1=nrm(ks[9], (D, F)), ff2_b1=zeros((1, F)),
        ff2_w2=nrm(ks[10], (F, D)), ff2_b2=zeros((1, D)),
        pn_w=ones((1, D)), pn_b=zeros((1, D)),
    )


def prepare_block_params(p, heads):
    """Host-side preprocessing: fuse qkv weights, fold scale + rotate_half, pack
    tiny LayerNorm/bias vectors into 4 slabs, cast matmul weights to bf16."""
    D = p['wq'].shape[0]
    dh = D // heads
    scale = dh ** (-0.5)
    Rfull = jnp.kron(jnp.eye(heads, dtype=jnp.float32), rotate_half_matrix(dh))  # (D, D)
    b16 = lambda a: a.astype(jnp.bfloat16)

    wq_s = p['wq'] * scale                           # fold 1/sqrt(dh) into q weights
    wqkv = jnp.stack([wq_s, wq_s @ Rfull, p['wk'], p['wk'] @ Rfull, p['wv']], axis=0)

    vecD = jnp.concatenate([p['ff1_lnw'], p['ff1_lnb'], p['ff1_b2'],
                            p['at_lnw'], p['at_lnb'], p['bo'],
                            p['cv_lnw'], p['cv_lnb'], p['pw2_b'],
                            p['ff2_lnw'], p['ff2_lnb'], p['ff2_b2'],
                            p['pn_w'], p['pn_b']], axis=0)           # (14, D)
    vecF = jnp.concatenate([p['ff1_b1'], p['ff2_b1']], axis=0)       # (2, F)
    vecC = jnp.concatenate([p['dw_b'], p['ch_g']], axis=0)           # (2, C)
    vec2C = p['pw1_b']                                               # (1, 2C)

    return dict(
        vecD=vecD, vecF=vecF, vecC=vecC, vec2C=vec2C,
        wqkv=b16(wqkv), wo=b16(p['wo']),
        ff1w1=b16(p['ff1_w1']), ff1w2=b16(p['ff1_w2']),
        pw1w=b16(p['pw1_w']), dww=p['dw_w'], pw2w=b16(p['pw2_w']),
        ff2w1=b16(p['ff2_w1']), ff2w2=b16(p['ff2_w2']),
    )


def init_proj_params(key, D):
    k1, k2 = jax.random.split(key)
    nrm = lambda k, shape, s=0.02: (s * jax.random.normal(k, shape)).astype(jnp.float32)
    return dict(wx=nrm(k1, (D, D)), ws=nrm(k2, (D, D)), b=jnp.zeros((1, D), jnp.float32))


def prepare_proj_params(p):
    return dict(wproj=jnp.stack([p['wx'], p['ws']], axis=0).astype(jnp.bfloat16),
                bproj=p['b'])


# -------------------------------------------------------------------------------- demo

if __name__ == "__main__":
    # Small configuration consistent with UConformer(dim, depth=..., heads=...)
    B, N = 2, 16
    dim = 64
    depth = 3                 # 1 contracting + 1 bottleneck + 1 expanding (+ 1 proj)
    heads = 4                 # dim_head = dim // heads = 16
    ff_mult = 4
    conv_expansion_factor = 2
    conv_kernel_size = 31     # module default; 'same' padding = (15, 15)

    F = dim * ff_mult
    C = dim * conv_expansion_factor

    root = jax.random.PRNGKey(0)
    kx, kb, kp = jax.random.split(root, 3)
    x = jax.random.normal(kx, (B, N, dim), dtype=jnp.float32)

    contracting_depth = depth // 2 - (1 - depth % 2)
    block_keys = jax.random.split(kb, depth)
    block_params = [
        prepare_block_params(
            init_block_params(block_keys[i], dim, F, C, conv_kernel_size), heads)
        for i in range(depth)
    ]
    proj_keys = jax.random.split(kp, max(contracting_depth, 1))
    proj_params = [prepare_proj_params(init_proj_params(proj_keys[i], dim))
                   for i in range(contracting_depth)]

    out = uconformer_forward(
        x, block_params, proj_params,
        depth=depth, heads=heads,
        kernel_size=conv_kernel_size,
        conv_expansion=conv_expansion_factor,
    )
    out = jax.block_until_ready(out)

    assert out.shape == (B, N, dim)
    assert bool(jnp.all(jnp.isfinite(out)))

    # TODO(synk): optional mask / t5_rel_pos_bias / adaptive_rmsnorm paths not
    # exercised (UConformer defaults: mask=None, flash attention, LayerNorm).
    print("KERNEL_OK")
</pallas_src>

<mosaic_0001>
module attributes {stable_mosaic.version = 11 : i64} {
  func.func @kernel(%arg0: i32, %arg1: memref<2x16x64xf32, #tpu.memory_space<vmem>>, %arg2: memref<32x64xf32, #tpu.memory_space<vmem>>, %arg3: memref<32x64xf32, #tpu.memory_space<vmem>>, %arg4: memref<14x64xf32, #tpu.memory_space<vmem>>, %arg5: memref<2x256xf32, #tpu.memory_space<vmem>>, %arg6: memref<2x128xf32, #tpu.memory_space<vmem>>, %arg7: memref<1x256xf32, #tpu.memory_space<vmem>>, %arg8: memref<5x64x64xbf16, #tpu.memory_space<vmem>>, %arg9: memref<64x64xbf16, #tpu.memory_space<vmem>>, %arg10: memref<64x256xbf16, #tpu.memory_space<vmem>>, %arg11: memref<256x64xbf16, #tpu.memory_space<vmem>>, %arg12: memref<64x256xbf16, #tpu.memory_space<vmem>>, %arg13: memref<31x128xf32, #tpu.memory_space<vmem>>, %arg14: memref<128x64xbf16, #tpu.memory_space<vmem>>, %arg15: memref<64x256xbf16, #tpu.memory_space<vmem>>, %arg16: memref<256x64xbf16, #tpu.memory_space<vmem>>, %arg17: memref<2x16x64xf32, #tpu.memory_space<vmem>>, %arg18: memref<32x64xf32, #tpu.memory_space<vmem>>, %arg19: memref<2x48x128xf32, #tpu.memory_space<vmem>>) attributes {dimension_semantics = [#tpu.dimension_semantics<parallel>], iteration_bounds = array<i64: 1>, scalar_prefetch = 0 : i64, scratch_operands = 2 : i64, tpu.core_type = #tpu.core_type<tc>, window_params = [{transform_indices = @transform_0, window_bounds = array<i64: 2, 16, 64>}, {pipeline_mode = #tpu.pipeline_mode<synchronous>, transform_indices = @transform_1, window_bounds = array<i64: 32, 64>}, {pipeline_mode = #tpu.pipeline_mode<synchronous>, transform_indices = @transform_2, window_bounds = array<i64: 32, 64>}, {pipeline_mode = #tpu.pipeline_mode<synchronous>, transform_indices = @transform_3, window_bounds = array<i64: 14, 64>}, {pipeline_mode = #tpu.pipeline_mode<synchronous>, transform_indices = @transform_4, window_bounds = array<i64: 2, 256>}, {pipeline_mode = #tpu.pipeline_mode<synchronous>, transform_indices = @transform_5, window_bounds = array<i64: 2, 128>}, {pipeline_mode = #tpu.pipeline_mode<synchronous>, transform_indices = @transform_6, window_bounds = array<i64: 1, 256>}, {pipeline_mode = #tpu.pipeline_mode<synchronous>, transform_indices = @transform_7, window_bounds = array<i64: 5, 64, 64>}, {pipeline_mode = #tpu.pipeline_mode<synchronous>, transform_indices = @transform_8, window_bounds = array<i64: 64, 64>}, {pipeline_mode = #tpu.pipeline_mode<synchronous>, transform_indices = @transform_9, window_bounds = array<i64: 64, 256>}, {pipeline_mode = #tpu.pipeline_mode<synchronous>, transform_indices = @transform_10, window_bounds = array<i64: 256, 64>}, {pipeline_mode = #tpu.pipeline_mode<synchronous>, transform_indices = @transform_11, window_bounds = array<i64: 64, 256>}, {pipeline_mode = #tpu.pipeline_mode<synchronous>, transform_indices = @transform_12, window_bounds = array<i64: 31, 128>}, {pipeline_mode = #tpu.pipeline_mode<synchronous>, transform_indices = @transform_13, window_bounds = array<i64: 128, 64>}, {pipeline_mode = #tpu.pipeline_mode<synchronous>, transform_indices = @transform_14, window_bounds = array<i64: 64, 256>}, {pipeline_mode = #tpu.pipeline_mode<synchronous>, transform_indices = @transform_15, window_bounds = array<i64: 256, 64>}, {transform_indices = @transform_16, window_bounds = array<i64: 2, 16, 64>}]} {
    %c0 = arith.constant 0 : index
    %c0_0 = arith.constant 0 : index
    %c0_1 = arith.constant 0 : index
    %0 = vector.load %arg1[%c0, %c0_0, %c0_1] : memref<2x16x64xf32, #tpu.memory_space<vmem>>, vector<2x16x64xf32>
    %1 = vector.shape_cast %0 : vector<2x16x64xf32> to vector<32x64xf32>
    %c0_2 = arith.constant 0 : index
    %c0_3 = arith.constant 0 : index
    %2 = vector.load %arg4[%c0_2, %c0_3] : memref<14x64xf32, #tpu.memory_space<vmem>>, vector<1x64xf32>
    %c1 = arith.constant 1 : index
    %c0_4 = arith.constant 0 : index
    %3 = vector.load %arg4[%c1, %c0_4] : memref<14x64xf32, #tpu.memory_space<vmem>>, vector<1x64xf32>
    %c0_5 = arith.constant 0 : index
    %c0_6 = arith.constant 0 : index
    %4 = vector.load %arg5[%c0_5, %c0_6] : memref<2x256xf32, #tpu.memory_space<vmem>>, vector<1x256xf32>
    %c2 = arith.constant 2 : index
    %c0_7 = arith.constant 0 : index
    %5 = vector.load %arg4[%c2, %c0_7] : memref<14x64xf32, #tpu.memory_space<vmem>>, vector<1x64xf32>
    %cst = arith.constant dense<0.000000e+00> : vector<32xf32>
    %6 = vector.multi_reduction <add>, %1, %cst [1] : vector<32x64xf32> to vector<32xf32>
    %7 = vector.shape_cast %6 : vector<32xf32> to vector<32x1xf32>
    %cst_8 = arith.constant 6.400000e+01 : f32
    %8 = vector.broadcast %cst_8 : f32 to vector<32x1xf32>
    %9 = arith.divf %7, %8 : vector<32x1xf32>
    %10 = vector.broadcast %9 : vector<32x1xf32> to vector<32x64xf32>
    %11 = arith.subf %1, %10 : vector<32x64xf32>
    %12 = arith.mulf %11, %11 : vector<32x64xf32>
    %cst_9 = arith.constant dense<0.000000e+00> : vector<32xf32>
    %13 = vector.multi_reduction <add>, %12, %cst_9 [1] : vector<32x64xf32> to vector<32xf32>
    %14 = vector.shape_cast %13 : vector<32xf32> to vector<32x1xf32>
    %cst_10 = arith.constant 6.400000e+01 : f32
    %15 = vector.broadcast %cst_10 : f32 to vector<32x1xf32>
    %16 = arith.divf %14, %15 : vector<32x1xf32>
    %17 = vector.broadcast %9 : vector<32x1xf32> to vector<32x64xf32>
    %18 = arith.subf %1, %17 : vector<32x64xf32>
    %cst_11 = arith.constant 9.99999974E-6 : f32
    %19 = vector.broadcast %cst_11 : f32 to vector<32x1xf32>
    %20 = arith.addf %16, %19 : vector<32x1xf32>
    %21 = math.rsqrt %20 : vector<32x1xf32>
    %22 = vector.broadcast %21 : vector<32x1xf32> to vector<32x64xf32>
    %23 = arith.mulf %18, %22 : vector<32x64xf32>
    %24 = vector.broadcast %2 : vector<1x64xf32> to vector<32x64xf32>
    %25 = arith.mulf %23, %24 : vector<32x64xf32>
    %26 = vector.broadcast %3 : vector<1x64xf32> to vector<32x64xf32>
    %27 = arith.addf %25, %26 : vector<32x64xf32>
    %28 = arith.truncf %27 : vector<32x64xf32> to vector<32x64xbf16>
    %c0_12 = arith.constant 0 : index
    %c0_13 = arith.constant 0 : index
    %29 = vector.load %arg10[%c0_12, %c0_13] : memref<64x256xbf16, #tpu.memory_space<vmem>>, vector<64x256xbf16>
    %cst_14 = arith.constant dense<0.000000e+00> : vector<32x256xf32>
    %30 = tpu.matmul %28, %29, %cst_14 {dimension_numbers = #tpu.dot_dimension_numbers<[1], [0], [0], [1], [0, 0, 1, 1], [], []>} : vector<32x64xbf16>, vector<64x256xbf16>, vector<32x256xf32> -> vector<32x256xf32>
    %31 = vector.broadcast %4 : vector<1x256xf32> to vector<32x256xf32>
    %32 = arith.addf %30, %31 : vector<32x256xf32>
    %33 = arith.negf %32 : vector<32x256xf32>
    %34 = math.exp %33 : vector<32x256xf32>
    %cst_15 = arith.constant 1.000000e+00 : f32
    %35 = vector.broadcast %cst_15 : f32 to vector<32x256xf32>
    %36 = arith.addf %35, %34 : vector<32x256xf32>
    %37 = arith.divf %35, %36 : vector<32x256xf32>
    %38 = arith.mulf %32, %37 : vector<32x256xf32>
    %39 = arith.truncf %38 : vector<32x256xf32> to vector<32x256xbf16>
    %c0_16 = arith.constant 0 : index
    %c0_17 = arith.constant 0 : index
    %40 = vector.load %arg11[%c0_16, %c0_17] : memref<256x64xbf16, #tpu.memory_space<vmem>>, vector<256x64xbf16>
    %cst_18 = arith.constant dense<0.000000e+00> : vector<32x64xf32>
    %41 = tpu.matmul %39, %40, %cst_18 {dimension_numbers = #tpu.dot_dimension_numbers<[1], [0], [0], [1], [0, 0, 1, 1], [], []>} : vector<32x256xbf16>, vector<256x64xbf16>, vector<32x64xf32> -> vector<32x64xf32>
    %42 = vector.broadcast %5 : vector<1x64xf32> to vector<32x64xf32>
    %43 = arith.addf %41, %42 : vector<32x64xf32>
    %cst_19 = arith.constant 5.000000e-01 : f32
    %44 = vector.broadcast %cst_19 : f32 to vector<32x64xf32>
    %45 = arith.mulf %44, %43 : vector<32x64xf32>
    %46 = arith.addf %1, %45 : vector<32x64xf32>
    %c3 = arith.constant 3 : index
    %c0_20 = arith.constant 0 : index
    %47 = vector.load %arg4[%c3, %c0_20] : memref<14x64xf32, #tpu.memory_space<vmem>>, vector<1x64xf32>
    %c4 = arith.constant 4 : index
    %c0_21 = arith.constant 0 : index
    %48 = vector.load %arg4[%c4, %c0_21] : memref<14x64xf32, #tpu.memory_space<vmem>>, vector<1x64xf32>
    %cst_22 = arith.constant dense<0.000000e+00> : vector<32xf32>
    %49 = vector.multi_reduction <add>, %46, %cst_22 [1] : vector<32x64xf32> to vector<32xf32>
    %50 = vector.shape_cast %49 : vector<32xf32> to vector<32x1xf32>
    %cst_23 = arith.constant 6.400000e+01 : f32
    %51 = vector.broadcast %cst_23 : f32 to vector<32x1xf32>
    %52 = arith.divf %50, %51 : vector<32x1xf32>
    %53 = vector.broadcast %52 : vector<32x1xf32> to vector<32x64xf32>
    %54 = arith.subf %46, %53 : vector<32x64xf32>
    %55 = arith.mulf %54, %54 : vector<32x64xf32>
    %cst_24 = arith.constant dense<0.000000e+00> : vector<32xf32>
    %56 = vector.multi_reduction <add>, %55, %cst_24 [1] : vector<32x64xf32> to vector<32xf32>
    %57 = vector.shape_cast %56 : vector<32xf32> to vector<32x1xf32>
    %cst_25 = arith.constant 6.400000e+01 : f32
    %58 = vector.broadcast %cst_25 : f32 to vector<32x1xf32>
    %59 = arith.divf %57, %58 : vector<32x1xf32>
    %60 = vector.broadcast %52 : vector<32x1xf32> to vector<32x64xf32>
    %61 = arith.subf %46, %60 : vector<32x64xf32>
    %cst_26 = arith.constant 9.99999974E-6 : f32
    %62 = vector.broadcast %cst_26 : f32 to vector<32x1xf32>
    %63 = arith.addf %59, %62 : vector<32x1xf32>
    %64 = math.rsqrt %63 : vector<32x1xf32>
    %65 = vector.broadcast %64 : vector<32x1xf32> to vector<32x64xf32>
    %66 = arith.mulf %61, %65 : vector<32x64xf32>
    %67 = vector.broadcast %47 : vector<1x64xf32> to vector<32x64xf32>
    %68 = arith.mulf %66, %67 : vector<32x64xf32>
    %69 = vector.broadcast %48 : vector<1x64xf32> to vector<32x64xf32>
    %70 = arith.addf %68, %69 : vector<32x64xf32>
    %71 = arith.truncf %70 : vector<32x64xf32> to vector<32x64xbf16>
    %c0_27 = arith.constant 0 : index
    %c0_28 = arith.constant 0 : index
    %c0_29 = arith.constant 0 : index
    %72 = vector.load %arg8[%c0_27, %c0_28, %c0_29] : memref<5x64x64xbf16, #tpu.memory_space<vmem>>, vector<1x64x64xbf16>
    %73 = vector.shape_cast %72 : vector<1x64x64xbf16> to vector<64x64xbf16>
    %cst_30 = arith.constant dense<0.000000e+00> : vector<32x64xf32>
    %74 = tpu.matmul %71, %73, %cst_30 {dimension_numbers = #tpu.dot_dimension_numbers<[1], [0], [0], [1], [0, 0, 1, 1], [], []>} : vector<32x64xbf16>, vector<64x64xbf16>, vector<32x64xf32> -> vector<32x64xf32>
    %c1_31 = arith.constant 1 : index
    %c0_32 = arith.constant 0 : index
    %c0_33 = arith.constant 0 : index
    %75 = vector.load %arg8[%c1_31, %c0_32, %c0_33] : memref<5x64x64xbf16, #tpu.memory_space<vmem>>, vector<1x64x64xbf16>
    %76 = vector.shape_cast %75 : vector<1x64x64xbf16> to vector<64x64xbf16>
    %cst_34 = arith.constant dense<0.000000e+00> : vector<32x64xf32>
    %77 = tpu.matmul %71, %76, %cst_34 {dimension_numbers = #tpu.dot_dimension_numbers<[1], [0], [0], [1], [0, 0, 1, 1], [], []>} : vector<32x64xbf16>, vector<64x64xbf16>, vector<32x64xf32> -> vector<32x64xf32>
    %c2_35 = arith.constant 2 : index
    %c0_36 = arith.constant 0 : index
    %c0_37 = arith.constant 0 : index
    %78 = vector.load %arg8[%c2_35, %c0_36, %c0_37] : memref<5x64x64xbf16, #tpu.memory_space<vmem>>, vector<1x64x64xbf16>
    %79 = vector.shape_cast %78 : vector<1x64x64xbf16> to vector<64x64xbf16>
    %cst_38 = arith.constant dense<0.000000e+00> : vector<32x64xf32>
    %80 = tpu.matmul %71, %79, %cst_38 {dimension_numbers = #tpu.dot_dimension_numbers<[1], [0], [0], [1], [0, 0, 1, 1], [], []>} : vector<32x64xbf16>, vector<64x64xbf16>, vector<32x64xf32> -> vector<32x64xf32>
    %c3_39 = arith.constant 3 : index
    %c0_40 = arith.constant 0 : index
    %c0_41 = arith.constant 0 : index
    %81 = vector.load %arg8[%c3_39, %c0_40, %c0_41] : memref<5x64x64xbf16, #tpu.memory_space<vmem>>, vector<1x64x64xbf16>
    %82 = vector.shape_cast %81 : vector<1x64x64xbf16> to vector<64x64xbf16>
    %cst_42 = arith.constant dense<0.000000e+00> : vector<32x64xf32>
    %83 = tpu.matmul %71, %82, %cst_42 {dimension_numbers = #tpu.dot_dimension_numbers<[1], [0], [0], [1], [0, 0, 1, 1], [], []>} : vector<32x64xbf16>, vector<64x64xbf16>, vector<32x64xf32> -> vector<32x64xf32>
    %c4_43 = arith.constant 4 : index
    %c0_44 = arith.constant 0 : index
    %c0_45 = arith.constant 0 : index
    %84 = vector.load %arg8[%c4_43, %c0_44, %c0_45] : memref<5x64x64xbf16, #tpu.memory_space<vmem>>, vector<1x64x64xbf16>
    %85 = vector.shape_cast %84 : vector<1x64x64xbf16> to vector<64x64xbf16>
    %cst_46 = arith.constant dense<0.000000e+00> : vector<32x64xf32>
    %86 = tpu.matmul %71, %85, %cst_46 {dimension_numbers = #tpu.dot_dimension_numbers<[1], [0], [0], [1], [0, 0, 1, 1], [], []>} : vector<32x64xbf16>, vector<64x64xbf16>, vector<32x64xf32> -> vector<32x64xf32>
    %c0_47 = arith.constant 0 : index
    %c0_48 = arith.constant 0 : index
    %87 = vector.load %arg2[%c0_47, %c0_48] : memref<32x64xf32, #tpu.memory_space<vmem>>, vector<32x64xf32>
    %c0_49 = arith.constant 0 : index
    %c0_50 = arith.constant 0 : index
    %88 = vector.load %arg3[%c0_49, %c0_50] : memref<32x64xf32, #tpu.memory_space<vmem>>, vector<32x64xf32>
    %89 = arith.mulf %74, %87 : vector<32x64xf32>
    %90 = arith.mulf %77, %88 : vector<32x64xf32>
    %91 = arith.addf %89, %90 : vector<32x64xf32>
    %92 = arith.mulf %80, %87 : vector<32x64xf32>
    %93 = arith.mulf %83, %88 : vector<32x64xf32>
    %94 = arith.addf %92, %93 : vector<32x64xf32>
    %95 = vector.extract_strided_slice %91 {offsets = [0, 0], sizes = [32, 16], strides = [1, 1]} : vector<32x64xf32> to vector<32x16xf32>
    %96 = vector.shape_cast %95 : vector<32x16xf32> to vector<2x16x16xf32>
    %97 = arith.truncf %96 : vector<2x16x16xf32> to vector<2x16x16xbf16>
    %98 = vector.extract_strided_slice %94 {offsets = [0, 0], sizes = [32, 16], strides = [1, 1]} : vector<32x64xf32> to vector<32x16xf32>
    %99 = vector.shape_cast %98 : vector<32x16xf32> to vector<2x16x16xf32>
    %100 = arith.truncf %99 : vector<2x16x16xf32> to vector<2x16x16xbf16>
    %101 = vector.extract_strided_slice %86 {offsets = [0, 0], sizes = [32, 16], strides = [1, 1]} : vector<32x64xf32> to vector<32x16xf32>
    %102 = vector.shape_cast %101 : vector<32x16xf32> to vector<2x16x16xf32>
    %103 = arith.truncf %102 : vector<2x16x16xf32> to vector<2x16x16xbf16>
    "tpu.trace_start"() <{level = 10 : i32, message = "bnd,bmd->bnm"}> : () -> ()
    %cst_51 = arith.constant dense<0.000000e+00> : vector<2x16x16xf32>
    %104 = tpu.matmul %97, %100, %cst_51 {dimension_numbers = #tpu.dot_dimension_numbers<[2], [2], [1], [1], [0, 0, 0, 1, 1, 1], [0], [0]>} : vector<2x16x16xbf16>, vector<2x16x16xbf16>, vector<2x16x16xf32> -> vector<2x16x16xf32>
    "tpu.trace_stop"() : () -> ()
    %cst_52 = arith.constant dense<0xFF800000> : vector<2x16xf32>
    %105 = vector.multi_reduction <maximumf>, %104, %cst_52 [2] : vector<2x16x16xf32> to vector<2x16xf32>
    %106 = vector.shape_cast %105 : vector<2x16xf32> to vector<2x16x1xf32>
    %107 = vector.broadcast %106 : vector<2x16x1xf32> to vector<2x16x16xf32>
    %108 = arith.subf %104, %107 : vector<2x16x16xf32>
    %109 = math.exp %108 : vector<2x16x16xf32>
    %cst_53 = arith.constant dense<0.000000e+00> : vector<2x16xf32>
    %110 = vector.multi_reduction <add>, %109, %cst_53 [2] : vector<2x16x16xf32> to vector<2x16xf32>
    %111 = vector.shape_cast %110 : vector<2x16xf32> to vector<2x16x1xf32>
    %112 = tpu.reciprocal %111 {approx = true} : vector<2x16x1xf32> -> vector<2x16x1xf32>
    %113 = vector.broadcast %112 : vector<2x16x1xf32> to vector<2x16x16xf32>
    %114 = arith.mulf %109, %113 : vector<2x16x16xf32>
    %115 = arith.truncf %114 : vector<2x16x16xf32> to vector<2x16x16xbf16>
    "tpu.trace_start"() <{level = 10 : i32, message = "bnm,bmd->bnd"}> : () -> ()
    %cst_54 = arith.constant dense<0.000000e+00> : vector<2x16x16xf32>
    %116 = tpu.matmul %115, %103, %cst_54 {dimension_numbers = #tpu.dot_dimension_numbers<[2], [1], [1], [2], [0, 0, 0, 1, 1, 2], [0], [0]>} : vector<2x16x16xbf16>, vector<2x16x16xbf16>, vector<2x16x16xf32> -> vector<2x16x16xf32>
    "tpu.trace_stop"() : () -> ()
    %117 = vector.shape_cast %116 : vector<2x16x16xf32> to vector<32x16xf32>
    %c0_55 = arith.constant 0 : index
    %c0_56 = arith.constant 0 : index
    %118 = vector.load %arg18[%c0_55, %c0_56] : memref<32x64xf32, #tpu.memory_space<vmem>>, vector<32x16xf32>
    tpu.vector_store %arg18[%c0_55, %c0_56], %117 {strides = array<i32>} : memref<32x64xf32, #tpu.memory_space<vmem>>, vector<32x16xf32>,
    %119 = vector.extract_strided_slice %91 {offsets = [0, 16], sizes = [32, 16], strides = [1, 1]} : vector<32x64xf32> to vector<32x16xf32>
    %120 = vector.shape_cast %119 : vector<32x16xf32> to vector<2x16x16xf32>
    %121 = arith.truncf %120 : vector<2x16x16xf32> to vector<2x16x16xbf16>
    %122 = vector.extract_strided_slice %94 {offsets = [0, 16], sizes = [32, 16], strides = [1, 1]} : vector<32x64xf32> to vector<32x16xf32>
    %123 = vector.shape_cast %122 : vector<32x16xf32> to vector<2x16x16xf32>
    %124 = arith.truncf %123 : vector<2x16x16xf32> to vector<2x16x16xbf16>
    %125 = vector.extract_strided_slice %86 {offsets = [0, 16], sizes = [32, 16], strides = [1, 1]} : vector<32x64xf32> to vector<32x16xf32>
    %126 = vector.shape_cast %125 : vector<32x16xf32> to vector<2x16x16xf32>
    %127 = arith.truncf %126 : vector<2x16x16xf32> to vector<2x16x16xbf16>
    "tpu.trace_start"() <{level = 10 : i32, message = "bnd,bmd->bnm"}> : () -> ()
    %cst_57 = arith.constant dense<0.000000e+00> : vector<2x16x16xf32>
    %128 = tpu.matmul %121, %124, %cst_57 {dimension_numbers = #tpu.dot_dimension_numbers<[2], [2], [1], [1], [0, 0, 0, 1, 1, 1], [0], [0]>} : vector<2x16x16xbf16>, vector<2x16x16xbf16>, vector<2x16x16xf32> -> vector<2x16x16xf32>
    "tpu.trace_stop"() : () -> ()
    %cst_58 = arith.constant dense<0xFF800000> : vector<2x16xf32>
    %129 = vector.multi_reduction <maximumf>, %128, %cst_58 [2] : vector<2x16x16xf32> to vector<2x16xf32>
    %130 = vector.shape_cast %129 : vector<2x16xf32> to vector<2x16x1xf32>
    %131 = vector.broadcast %130 : vector<2x16x1xf32> to vector<2x16x16xf32>
    %132 = arith.subf %128, %131 : vector<2x16x16xf32>
    %133 = math.exp %132 : vector<2x16x16xf32>
    %cst_59 = arith.constant dense<0.000000e+00> : vector<2x16xf32>
    %134 = vector.multi_reduction <add>, %133, %cst_59 [2] : vector<2x16x16xf32> to vector<2x16xf32>
    %135 = vector.shape_cast %134 : vector<2x16xf32> to vector<2x16x1xf32>
    %136 = tpu.reciprocal %135 {approx = true} : vector<2x16x1xf32> -> vector<2x16x1xf32>
    %137 = vector.broadcast %136 : vector<2x16x1xf32> to vector<2x16x16xf32>
    %138 = arith.mulf %133, %137 : vector<2x16x16xf32>
    %139 = arith.truncf %138 : vector<2x16x16xf32> to vector<2x16x16xbf16>
    "tpu.trace_start"() <{level = 10 : i32, message = "bnm,bmd->bnd"}> : () -> ()
    %cst_60 = arith.constant dense<0.000000e+00> : vector<2x16x16xf32>
    %140 = tpu.matmul %139, %127, %cst_60 {dimension_numbers = #tpu.dot_dimension_numbers<[2], [1], [1], [2], [0, 0, 0, 1, 1, 2], [0], [0]>} : vector<2x16x16xbf16>, vector<2x16x16xbf16>, vector<2x16x16xf32> -> vector<2x16x16xf32>
    "tpu.trace_stop"() : () -> ()
    %141 = vector.shape_cast %140 : vector<2x16x16xf32> to vector<32x16xf32>
    %c0_61 = arith.constant 0 : index
    %c16 = arith.constant 16 : index
    %142 = vector.load %arg18[%c0_61, %c16] : memref<32x64xf32, #tpu.memory_space<vmem>>, vector<32x16xf32>
    tpu.vector_store %arg18[%c0_61, %c16], %141 {strides = array<i32>} : memref<32x64xf32, #tpu.memory_space<vmem>>, vector<32x16xf32>,
    %143 = vector.extract_strided_slice %91 {offsets = [0, 32], sizes = [32, 16], strides = [1, 1]} : vector<32x64xf32> to vector<32x16xf32>
    %144 = vector.shape_cast %143 : vector<32x16xf32> to vector<2x16x16xf32>
    %145 = arith.truncf %144 : vector<2x16x16xf32> to vector<2x16x16xbf16>
    %146 = vector.extract_strided_slice %94 {offsets = [0, 32], sizes = [32, 16], strides = [1, 1]} : vector<32x64xf32> to vector<32x16xf32>
    %147 = vector.shape_cast %146 : vector<32x16xf32> to vector<2x16x16xf32>
    %148 = arith.truncf %147 : vector<2x16x16xf32> to vector<2x16x16xbf16>
    %149 = vector.extract_strided_slice %86 {offsets = [0, 32], sizes = [32, 16], strides = [1, 1]} : vector<32x64xf32> to vector<32x16xf32>
    %150 = vector.shape_cast %149 : vector<32x16xf32> to vector<2x16x16xf32>
    %151 = arith.truncf %150 : vector<2x16x16xf32> to vector<2x16x16xbf16>
    "tpu.trace_start"() <{level = 10 : i32, message = "bnd,bmd->bnm"}> : () -> ()
    %cst_62 = arith.constant dense<0.000000e+00> : vector<2x16x16xf32>
    %152 = tpu.matmul %145, %148, %cst_62 {dimension_numbers = #tpu.dot_dimension_numbers<[2], [2], [1], [1], [0, 0, 0, 1, 1, 1], [0], [0]>} : vector<2x16x16xbf16>, vector<2x16x16xbf16>, vector<2x16x16xf32> -> vector<2x16x16xf32>
    "tpu.trace_stop"() : () -> ()
    %cst_63 = arith.constant dense<0xFF800000> : vector<2x16xf32>
    %153 = vector.multi_reduction <maximumf>, %152, %cst_63 [2] : vector<2x16x16xf32> to vector<2x16xf32>
    %154 = vector.shape_cast %153 : vector<2x16xf32> to vector<2x16x1xf32>
    %155 = vector.broadcast %154 : vector<2x16x1xf32> to vector<2x16x16xf32>
    %156 = arith.subf %152, %155 : vector<2x16x16xf32>
    %157 = math.exp %156 : vector<2x16x16xf32>
    %cst_64 = arith.constant dense<0.000000e+00> : vector<2x16xf32>
    %158 = vector.multi_reduction <add>, %157, %cst_64 [2] : vector<2x16x16xf32> to vector<2x16xf32>
    %159 = vector.shape_cast %158 : vector<2x16xf32> to vector<2x16x1xf32>
    %160 = tpu.reciprocal %159 {approx = true} : vector<2x16x1xf32> -> vector<2x16x1xf32>
    %161 = vector.broadcast %160 : vector<2x16x1xf32> to vector<2x16x16xf32>
    %162 = arith.mulf %157, %161 : vector<2x16x16xf32>
    %163 = arith.truncf %162 : vector<2x16x16xf32> to vector<2x16x16xbf16>
    "tpu.trace_start"() <{level = 10 : i32, message = "bnm,bmd->bnd"}> : () -> ()
    %cst_65 = arith.constant dense<0.000000e+00> : vector<2x16x16xf32>
    %164 = tpu.matmul %163, %151, %cst_65 {dimension_numbers = #tpu.dot_dimension_numbers<[2], [1], [1], [2], [0, 0, 0, 1, 1, 2], [0], [0]>} : vector<2x16x16xbf16>, vector<2x16x16xbf16>, vector<2x16x16xf32> -> vector<2x16x16xf32>
    "tpu.trace_stop"() : () -> ()
    %165 = vector.shape_cast %164 : vector<2x16x16xf32> to vector<32x16xf32>
    %c0_66 = arith.constant 0 : index
    %c32 = arith.constant 32 : index
    %166 = vector.load %arg18[%c0_66, %c32] : memref<32x64xf32, #tpu.memory_space<vmem>>, vector<32x16xf32>
    tpu.vector_store %arg18[%c0_66, %c32], %165 {strides = array<i32>} : memref<32x64xf32, #tpu.memory_space<vmem>>, vector<32x16xf32>,
    %167 = vector.extract_strided_slice %91 {offsets = [0, 48], sizes = [32, 16], strides = [1, 1]} : vector<32x64xf32> to vector<32x16xf32>
    %168 = vector.shape_cast %167 : vector<32x16xf32> to vector<2x16x16xf32>
    %169 = arith.truncf %168 : vector<2x16x16xf32> to vector<2x16x16xbf16>
    %170 = vector.extract_strided_slice %94 {offsets = [0, 48], sizes = [32, 16], strides = [1, 1]} : vector<32x64xf32> to vector<32x16xf32>
    %171 = vector.shape_cast %170 : vector<32x16xf32> to vector<2x16x16xf32>
    %172 = arith.truncf %171 : vector<2x16x16xf32> to vector<2x16x16xbf16>
    %173 = vector.extract_strided_slice %86 {offsets = [0, 48], sizes = [32, 16], strides = [1, 1]} : vector<32x64xf32> to vector<32x16xf32>
    %174 = vector.shape_cast %173 : vector<32x16xf32> to vector<2x16x16xf32>
    %175 = arith.truncf %174 : vector<2x16x16xf32> to vector<2x16x16xbf16>
    "tpu.trace_start"() <{level = 10 : i32, message = "bnd,bmd->bnm"}> : () -> ()
    %cst_67 = arith.constant dense<0.000000e+00> : vector<2x16x16xf32>
    %176 = tpu.matmul %169, %172, %cst_67 {dimension_numbers = #tpu.dot_dimension_numbers<[2], [2], [1], [1], [0, 0, 0, 1, 1, 1], [0], [0]>} : vector<2x16x16xbf16>, vector<2x16x16xbf16>, vector<2x16x16xf32> -> vector<2x16x16xf32>
    "tpu.trace_stop"() : () -> ()
    %cst_68 = arith.constant dense<0xFF800000> : vector<2x16xf32>
    %177 = vector.multi_reduction <maximumf>, %176, %cst_68 [2] : vector<2x16x16xf32> to vector<2x16xf32>
    %178 = vector.shape_cast %177 : vector<2x16xf32> to vector<2x16x1xf32>
    %179 = vector.broadcast %178 : vector<2x16x1xf32> to vector<2x16x16xf32>
    %180 = arith.subf %176, %179 : vector<2x16x16xf32>
    %181 = math.exp %180 : vector<2x16x16xf32>
    %cst_69 = arith.constant dense<0.000000e+00> : vector<2x16xf32>
    %182 = vector.multi_reduction <add>, %181, %cst_69 [2] : vector<2x16x16xf32> to vector<2x16xf32>
    %183 = vector.shape_cast %182 : vector<2x16xf32> to vector<2x16x1xf32>
    %184 = tpu.reciprocal %183 {approx = true} : vector<2x16x1xf32> -> vector<2x16x1xf32>
    %185 = vector.broadcast %184 : vector<2x16x1xf32> to vector<2x16x16xf32>
    %186 = arith.mulf %181, %185 : vector<2x16x16xf32>
    %187 = arith.truncf %186 : vector<2x16x16xf32> to vector<2x16x16xbf16>
    "tpu.trace_start"() <{level = 10 : i32, message = "bnm,bmd->bnd"}> : () -> ()
    %cst_70 = arith.constant dense<0.000000e+00> : vector<2x16x16xf32>
    %188 = tpu.matmul %187, %175, %cst_70 {dimension_numbers = #tpu.dot_dimension_numbers<[2], [1], [1], [2], [0, 0, 0, 1, 1, 2], [0], [0]>} : vector<2x16x16xbf16>, vector<2x16x16xbf16>, vector<2x16x16xf32> -> vector<2x16x16xf32>
    "tpu.trace_stop"() : () -> ()
    %189 = vector.shape_cast %188 : vector<2x16x16xf32> to vector<32x16xf32>
    %c0_71 = arith.constant 0 : index
    %c48 = arith.constant 48 : index
    %190 = vector.load %arg18[%c0_71, %c48] : memref<32x64xf32, #tpu.memory_space<vmem>>, vector<32x16xf32>
    tpu.vector_store %arg18[%c0_71, %c48], %189 {strides = array<i32>} : memref<32x64xf32, #tpu.memory_space<vmem>>, vector<32x16xf32>,
    %c0_72 = arith.constant 0 : index
    %c0_73 = arith.constant 0 : index
    %191 = vector.load %arg18[%c0_72, %c0_73] : memref<32x64xf32, #tpu.memory_space<vmem>>, vector<32x64xf32>
    %192 = arith.truncf %191 : vector<32x64xf32> to vector<32x64xbf16>
    %c0_74 = arith.constant 0 : index
    %c0_75 = arith.constant 0 : index
    %193 = vector.load %arg9[%c0_74, %c0_75] : memref<64x64xbf16, #tpu.memory_space<vmem>>, vector<64x64xbf16>
    %cst_76 = arith.constant dense<0.000000e+00> : vector<32x64xf32>
    %194 = tpu.matmul %192, %193, %cst_76 {dimension_numbers = #tpu.dot_dimension_numbers<[1], [0], [0], [1], [0, 0, 1, 1], [], []>} : vector<32x64xbf16>, vector<64x64xbf16>, vector<32x64xf32> -> vector<32x64xf32>
    %c5 = arith.constant 5 : index
    %c0_77 = arith.constant 0 : index
    %195 = vector.load %arg4[%c5, %c0_77] : memref<14x64xf32, #tpu.memory_space<vmem>>, vector<1x64xf32>
    %196 = vector.broadcast %195 : vector<1x64xf32> to vector<32x64xf32>
    %197 = arith.addf %194, %196 : vector<32x64xf32>
    %198 = arith.addf %46, %197 : vector<32x64xf32>
    %c6 = arith.constant 6 : index
    %c0_78 = arith.constant 0 : index
    %199 = vector.load %arg4[%c6, %c0_78] : memref<14x64xf32, #tpu.memory_space<vmem>>, vector<1x64xf32>
    %c7 = arith.constant 7 : index
    %c0_79 = arith.constant 0 : index
    %200 = vector.load %arg4[%c7, %c0_79] : memref<14x64xf32, #tpu.memory_space<vmem>>, vector<1x64xf32>
    %cst_80 = arith.constant dense<0.000000e+00> : vector<32xf32>
    %201 = vector.multi_reduction <add>, %198, %cst_80 [1] : vector<32x64xf32> to vector<32xf32>
    %202 = vector.shape_cast %201 : vector<32xf32> to vector<32x1xf32>
    %cst_81 = arith.constant 6.400000e+01 : f32
    %203 = vector.broadcast %cst_81 : f32 to vector<32x1xf32>
    %204 = arith.divf %202, %203 : vector<32x1xf32>
    %205 = vector.broadcast %204 : vector<32x1xf32> to vector<32x64xf32>
    %206 = arith.subf %198, %205 : vector<32x64xf32>
    %207 = arith.mulf %206, %206 : vector<32x64xf32>
    %cst_82 = arith.constant dense<0.000000e+00> : vector<32xf32>
    %208 = vector.multi_reduction <add>, %207, %cst_82 [1] : vector<32x64xf32> to vector<32xf32>
    %209 = vector.shape_cast %208 : vector<32xf32> to vector<32x1xf32>
    %cst_83 = arith.constant 6.400000e+01 : f32
    %210 = vector.broadcast %cst_83 : f32 to vector<32x1xf32>
    %211 = arith.divf %209, %210 : vector<32x1xf32>
    %212 = vector.broadcast %204 : vector<32x1xf32> to vector<32x64xf32>
    %213 = arith.subf %198, %212 : vector<32x64xf32>
    %cst_84 = arith.constant 9.99999974E-6 : f32
    %214 = vector.broadcast %cst_84 : f32 to vector<32x1xf32>
    %215 = arith.addf %211, %214 : vector<32x1xf32>
    %216 = math.rsqrt %215 : vector<32x1xf32>
    %217 = vector.broadcast %216 : vector<32x1xf32> to vector<32x64xf32>
    %218 = arith.mulf %213, %217 : vector<32x64xf32>
    %219 = vector.broadcast %199 : vector<1x64xf32> to vector<32x64xf32>
    %220 = arith.mulf %218, %219 : vector<32x64xf32>
    %221 = vector.broadcast %200 : vector<1x64xf32> to vector<32x64xf32>
    %222 = arith.addf %220, %221 : vector<32x64xf32>
    %223 = arith.truncf %222 : vector<32x64xf32> to vector<32x64xbf16>
    %c0_85 = arith.constant 0 : index
    %c0_86 = arith.constant 0 : index
    %224 = vector.load %arg12[%c0_85, %c0_86] : memref<64x256xbf16, #tpu.memory_space<vmem>>, vector<64x256xbf16>
    %cst_87 = arith.constant dense<0.000000e+00> : vector<32x256xf32>
    %225 = tpu.matmul %223, %224, %cst_87 {dimension_numbers = #tpu.dot_dimension_numbers<[1], [0], [0], [1], [0, 0, 1, 1], [], []>} : vector<32x64xbf16>, vector<64x256xbf16>, vector<32x256xf32> -> vector<32x256xf32>
    %c0_88 = arith.constant 0 : index
    %c0_89 = arith.constant 0 : index
    %226 = vector.load %arg7[%c0_88, %c0_89] : memref<1x256xf32, #tpu.memory_space<vmem>>, vector<1x256xf32>
    %227 = vector.broadcast %226 : vector<1x256xf32> to vector<32x256xf32>
    %228 = arith.addf %225, %227 : vector<32x256xf32>
    %229 = vector.extract_strided_slice %228 {offsets = [0, 0], sizes = [32, 128], strides = [1, 1]} : vector<32x256xf32> to vector<32x128xf32>
    %230 = vector.extract_strided_slice %228 {offsets = [0, 128], sizes = [32, 128], strides = [1, 1]} : vector<32x256xf32> to vector<32x128xf32>
    %231 = arith.negf %230 : vector<32x128xf32>
    %232 = math.exp %231 : vector<32x128xf32>
    %cst_90 = arith.constant 1.000000e+00 : f32
    %233 = vector.broadcast %cst_90 : f32 to vector<32x128xf32>
    %234 = arith.addf %233, %232 : vector<32x128xf32>
    %235 = arith.divf %233, %234 : vector<32x128xf32>
    %236 = arith.mulf %229, %235 : vector<32x128xf32>
    %cst_91 = arith.constant 0.000000e+00 : f32
    %237 = vector.broadcast %cst_91 : f32 to vector<2x16x128xf32>
    %c0_92 = arith.constant 0 : index
    %c0_93 = arith.constant 0 : index
    %c0_94 = arith.constant 0 : index
    %238 = vector.load %arg19[%c0_92, %c0_93, %c0_94] : memref<2x48x128xf32, #tpu.memory_space<vmem>>, vector<2x16x128xf32>
    tpu.vector_store %arg19[%c0_92, %c0_93, %c0_94], %237 {strides = array<i32>} : memref<2x48x128xf32, #tpu.memory_space<vmem>>, vector<2x16x128xf32>,
    %cst_95 = arith.constant 0.000000e+00 : f32
    %239 = vector.broadcast %cst_95 : f32 to vector<2x16x128xf32>
    %c0_96 = arith.constant 0 : index
    %c32_97 = arith.constant 32 : index
    %c0_98 = arith.constant 0 : index
    %240 = vector.load %arg19[%c0_96, %c32_97, %c0_98] : memref<2x48x128xf32, #tpu.memory_space<vmem>>, vector<2x16x128xf32>
    tpu.vector_store %arg19[%c0_96, %c32_97, %c0_98], %239 {strides = array<i32>} : memref<2x48x128xf32, #tpu.memory_space<vmem>>, vector<2x16x128xf32>,
    %241 = vector.shape_cast %236 : vector<32x128xf32> to vector<2x16x128xf32>
    %c0_99 = arith.constant 0 : index
    %c16_100 = arith.constant 16 : index
    %c0_101 = arith.constant 0 : index
    %242 = vector.load %arg19[%c0_99, %c16_100, %c0_101] : memref<2x48x128xf32, #tpu.memory_space<vmem>>, vector<2x16x128xf32>
    tpu.vector_store %arg19[%c0_99, %c16_100, %c0_101], %241 {strides = array<i32>} : memref<2x48x128xf32, #tpu.memory_space<vmem>>, vector<2x16x128xf32>,
    %c0_102 = arith.constant 0 : index
    %c0_103 = arith.constant 0 : index
    %243 = vector.load %arg13[%c0_102, %c0_103] : memref<31x128xf32, #tpu.memory_space<vmem>>, vector<31x128xf32>
    %cst_104 = arith.constant 0.000000e+00 : f32
    %244 = vector.broadcast %cst_104 : f32 to vector<2x16x128xf32>
    %c0_105 = arith.constant 0 : index
    %c1_106 = arith.constant 1 : index
    %c0_107 = arith.constant 0 : index
    %245 = vector.load %arg19[%c0_105, %c1_106, %c0_107] : memref<2x48x128xf32, #tpu.memory_space<vmem>>, vector<2x16x128xf32>
    %246 = vector.extract_strided_slice %243 {offsets = [0, 0], sizes = [1, 128], strides = [1, 1]} : vector<31x128xf32> to vector<1x128xf32>
    %247 = vector.shape_cast %246 : vector<1x128xf32> to vector<1x1x128xf32>
    %248 = vector.broadcast %247 : vector<1x1x128xf32> to vector<2x16x128xf32>
    %249 = arith.mulf %245, %248 : vector<2x16x128xf32>
    %250 = arith.addf %244, %249 : vector<2x16x128xf32>
    %c0_108 = arith.constant 0 : index
    %c2_109 = arith.constant 2 : index
    %c0_110 = arith.constant 0 : index
    %251 = vector.load %arg19[%c0_108, %c2_109, %c0_110] : memref<2x48x128xf32, #tpu.memory_space<vmem>>, vector<2x16x128xf32>
    %252 = vector.extract_strided_slice %243 {offsets = [1, 0], sizes = [1, 128], strides = [1, 1]} : vector<31x128xf32> to vector<1x128xf32>
    %253 = vector.shape_cast %252 : vector<1x128xf32> to vector<1x1x128xf32>
    %254 = vector.broadcast %253 : vector<1x1x128xf32> to vector<2x16x128xf32>
    %255 = arith.mulf %251, %254 : vector<2x16x128xf32>
    %256 = arith.addf %250, %255 : vector<2x16x128xf32>
    %c0_111 = arith.constant 0 : index
    %c3_112 = arith.constant 3 : index
    %c0_113 = arith.constant 0 : index
    %257 = vector.load %arg19[%c0_111, %c3_112, %c0_113] : memref<2x48x128xf32, #tpu.memory_space<vmem>>, vector<2x16x128xf32>
    %258 = vector.extract_strided_slice %243 {offsets = [2, 0], sizes = [1, 128], strides = [1, 1]} : vector<31x128xf32> to vector<1x128xf32>
    %259 = vector.shape_cast %258 : vector<1x128xf32> to vector<1x1x128xf32>
    %260 = vector.broadcast %259 : vector<1x1x128xf32> to vector<2x16x128xf32>
    %261 = arith.mulf %257, %260 : vector<2x16x128xf32>
    %262 = arith.addf %256, %261 : vector<2x16x128xf32>
    %c0_114 = arith.constant 0 : index
    %c4_115 = arith.constant 4 : index
    %c0_116 = arith.constant 0 : index
    %263 = vector.load %arg19[%c0_114, %c4_115, %c0_116] : memref<2x48x128xf32, #tpu.memory_space<vmem>>, vector<2x16x128xf32>
    %264 = vector.extract_strided_slice %243 {offsets = [3, 0], sizes = [1, 128], strides = [1, 1]} : vector<31x128xf32> to vector<1x128xf32>
    %265 = vector.shape_cast %264 : vector<1x128xf32> to vector<1x1x128xf32>
    %266 = vector.broadcast %265 : vector<1x1x128xf32> to vector<2x16x128xf32>
    %267 = arith.mulf %263, %266 : vector<2x16x128xf32>
    %268 = arith.addf %262, %267 : vector<2x16x128xf32>
    %c0_117 = arith.constant 0 : index
    %c5_118 = arith.constant 5 : index
    %c0_119 = arith.constant 0 : index
    %269 = vector.load %arg19[%c0_117, %c5_118, %c0_119] : memref<2x48x128xf32, #tpu.memory_space<vmem>>, vector<2x16x128xf32>
    %270 = vector.extract_strided_slice %243 {offsets = [4, 0], sizes = [1, 128], strides = [1, 1]} : vector<31x128xf32> to vector<1x128xf32>
    %271 = vector.shape_cast %270 : vector<1x128xf32> to vector<1x1x128xf32>
    %272 = vector.broadcast %271 : vector<1x1x128xf32> to vector<2x16x128xf32>
    %273 = arith.mulf %269, %272 : vector<2x16x128xf32>
    %274 = arith.addf %268, %273 : vector<2x16x128xf32>
    %c0_120 = arith.constant 0 : index
    %c6_121 = arith.constant 6 : index
    %c0_122 = arith.constant 0 : index
    %275 = vector.load %arg19[%c0_120, %c6_121, %c0_122] : memref<2x48x128xf32, #tpu.memory_space<vmem>>, vector<2x16x128xf32>
    %276 = vector.extract_strided_slice %243 {offsets = [5, 0], sizes = [1, 128], strides = [1, 1]} : vector<31x128xf32> to vector<1x128xf32>
    %277 = vector.shape_cast %276 : vector<1x128xf32> to vector<1x1x128xf32>
    %278 = vector.broadcast %277 : vector<1x1x128xf32> to vector<2x16x128xf32>
    %279 = arith.mulf %275, %278 : vector<2x16x128xf32>
    %280 = arith.addf %274, %279 : vector<2x16x128xf32>
    %c0_123 = arith.constant 0 : index
    %c7_124 = arith.constant 7 : index
    %c0_125 = arith.constant 0 : index
    %281 = vector.load %arg19[%c0_123, %c7_124, %c0_125] : memref<2x48x128xf32, #tpu.memory_space<vmem>>, vector<2x16x128xf32>
    %282 = vector.extract_strided_slice %243 {offsets = [6, 0], sizes = [1, 128], strides = [1, 1]} : vector<31x128xf32> to vector<1x128xf32>
    %283 = vector.shape_cast %282 : vector<1x128xf32> to vector<1x1x128xf32>
    %284 = vector.broadcast %283 : vector<1x1x128xf32> to vector<2x16x128xf32>
    %285 = arith.mulf %281, %284 : vector<2x16x128xf32>
    %286 = arith.addf %280, %285 : vector<2x16x128xf32>
    %c0_126 = arith.constant 0 : index
    %c8 = arith.constant 8 : index
    %c0_127 = arith.constant 0 : index
    %287 = vector.load %arg19[%c0_126, %c8, %c0_127] : memref<2x48x128xf32, #tpu.memory_space<vmem>>, vector<2x16x128xf32>
    %288 = vector.extract_strided_slice %243 {offsets = [7, 0], sizes = [1, 128], strides = [1, 1]} : vector<31x128xf32> to vector<1x128xf32>
    %289 = vector.shape_cast %288 : vector<1x128xf32> to vector<1x1x128xf32>
    %290 = vector.broadcast %289 : vector<1x1x128xf32> to vector<2x16x128xf32>
    %291 = arith.mulf %287, %290 : vector<2x16x128xf32>
    %292 = arith.addf %286, %291 : vector<2x16x128xf32>
    %c0_128 = arith.constant 0 : index
    %c9 = arith.constant 9 : index
    %c0_129 = arith.constant 0 : index
    %293 = vector.load %arg19[%c0_128, %c9, %c0_129] : memref<2x48x128xf32, #tpu.memory_space<vmem>>, vector<2x16x128xf32>
    %294 = vector.extract_strided_slice %243 {offsets = [8, 0], sizes = [1, 128], strides = [1, 1]} : vector<31x128xf32> to vector<1x128xf32>
    %295 = vector.shape_cast %294 : vector<1x128xf32> to vector<1x1x128xf32>
    %296 = vector.broadcast %295 : vector<1x1x128xf32> to vector<2x16x128xf32>
    %297 = arith.mulf %293, %296 : vector<2x16x128xf32>
    %298 = arith.addf %292, %297 : vector<2x16x128xf32>
    %c0_130 = arith.constant 0 : index
    %c10 = arith.constant 10 : index
    %c0_131 = arith.constant 0 : index
    %299 = vector.load %arg19[%c0_130, %c10, %c0_131] : memref<2x48x128xf32, #tpu.memory_space<vmem>>, vector<2x16x128xf32>
    %300 = vector.extract_strided_slice %243 {offsets = [9, 0], sizes = [1, 128], strides = [1, 1]} : vector<31x128xf32> to vector<1x128xf32>
    %301 = vector.shape_cast %300 : vector<1x128xf32> to vector<1x1x128xf32>
    %302 = vector.broadcast %301 : vector<1x1x128xf32> to vector<2x16x128xf32>
    %303 = arith.mulf %299, %302 : vector<2x16x128xf32>
    %304 = arith.addf %298, %303 : vector<2x16x128xf32>
    %c0_132 = arith.constant 0 : index
    %c11 = arith.constant 11 : index
    %c0_133 = arith.constant 0 : index
    %305 = vector.load %arg19[%c0_132, %c11, %c0_133] : memref<2x48x128xf32, #tpu.memory_space<vmem>>, vector<2x16x128xf32>
    %306 = vector.extract_strided_slice %243 {offsets = [10, 0], sizes = [1, 128], strides = [1, 1]} : vector<31x128xf32> to vector<1x128xf32>
    %307 = vector.shape_cast %306 : vector<1x128xf32> to vector<1x1x128xf32>
    %308 = vector.broadcast %307 : vector<1x1x128xf32> to vector<2x16x128xf32>
    %309 = arith.mulf %305, %308 : vector<2x16x128xf32>
    %310 = arith.addf %304, %309 : vector<2x16x128xf32>
    %c0_134 = arith.constant 0 : index
    %c12 = arith.constant 12 : index
    %c0_135 = arith.constant 0 : index
    %311 = vector.load %arg19[%c0_134, %c12, %c0_135] : memref<2x48x128xf32, #tpu.memory_space<vmem>>, vector<2x16x128xf32>
    %312 = vector.extract_strided_slice %243 {offsets = [11, 0], sizes = [1, 128], strides = [1, 1]} : vector<31x128xf32> to vector<1x128xf32>
    %313 = vector.shape_cast %312 : vector<1x128xf32> to vector<1x1x128xf32>
    %314 = vector.broadcast %313 : vector<1x1x128xf32> to vector<2x16x128xf32>
    %315 = arith.mulf %311, %314 : vector<2x16x128xf32>
    %316 = arith.addf %310, %315 : vector<2x16x128xf32>
    %c0_136 = arith.constant 0 : index
    %c13 = arith.constant 13 : index
    %c0_137 = arith.constant 0 : index
    %317 = vector.load %arg19[%c0_136, %c13, %c0_137] : memref<2x48x128xf32, #tpu.memory_space<vmem>>, vector<2x16x128xf32>
    %318 = vector.extract_strided_slice %243 {offsets = [12, 0], sizes = [1, 128], strides = [1, 1]} : vector<31x128xf32> to vector<1x128xf32>
    %319 = vector.shape_cast %318 : vector<1x128xf32> to vector<1x1x128xf32>
    %320 = vector.broadcast %319 : vector<1x1x128xf32> to vector<2x16x128xf32>
    %321 = arith.mulf %317, %320 : vector<2x16x128xf32>
    %322 = arith.addf %316, %321 : vector<2x16x128xf32>
    %c0_138 = arith.constant 0 : index
    %c14 = arith.constant 14 : index
    %c0_139 = arith.constant 0 : index
    %323 = vector.load %arg19[%c0_138, %c14, %c0_139] : memref<2x48x128xf32, #tpu.memory_space<vmem>>, vector<2x16x128xf32>
    %324 = vector.extract_strided_slice %243 {offsets = [13, 0], sizes = [1, 128], strides = [1, 1]} : vector<31x128xf32> to vector<1x128xf32>
    %325 = vector.shape_cast %324 : vector<1x128xf32> to vector<1x1x128xf32>
    %326 = vector.broadcast %325 : vector<1x1x128xf32> to vector<2x16x128xf32>
    %327 = arith.mulf %323, %326 : vector<2x16x128xf32>
    %328 = arith.addf %322, %327 : vector<2x16x128xf32>
    %c0_140 = arith.constant 0 : index
    %c15 = arith.constant 15 : index
    %c0_141 = arith.constant 0 : index
    %329 = vector.load %arg19[%c0_140, %c15, %c0_141] : memref<2x48x128xf32, #tpu.memory_space<vmem>>, vector<2x16x128xf32>
    %330 = vector.extract_strided_slice %243 {offsets = [14, 0], sizes = [1, 128], strides = [1, 1]} : vector<31x128xf32> to vector<1x128xf32>
    %331 = vector.shape_cast %330 : vector<1x128xf32> to vector<1x1x128xf32>
    %332 = vector.broadcast %331 : vector<1x1x128xf32> to vector<2x16x128xf32>
    %333 = arith.mulf %329, %332 : vector<2x16x128xf32>
    %334 = arith.addf %328, %333 : vector<2x16x128xf32>
    %c0_142 = arith.constant 0 : index
    %c16_143 = arith.constant 16 : index
    %c0_144 = arith.constant 0 : index
    %335 = vector.load %arg19[%c0_142, %c16_143, %c0_144] : memref<2x48x128xf32, #tpu.memory_space<vmem>>, vector<2x16x128xf32>
    %336 = vector.extract_strided_slice %243 {offsets = [15, 0], sizes = [1, 128], strides = [1, 1]} : vector<31x128xf32> to vector<1x128xf32>
    %337 = vector.shape_cast %336 : vector<1x128xf32> to vector<1x1x128xf32>
    %338 = vector.broadcast %337 : vector<1x1x128xf32> to vector<2x16x128xf32>
    %339 = arith.mulf %335, %338 : vector<2x16x128xf32>
    %340 = arith.addf %334, %339 : vector<2x16x128xf32>
    %c0_145 = arith.constant 0 : index
    %c17 = arith.constant 17 : index
    %c0_146 = arith.constant 0 : index
    %341 = vector.load %arg19[%c0_145, %c17, %c0_146] : memref<2x48x128xf32, #tpu.memory_space<vmem>>, vector<2x16x128xf32>
    %342 = vector.extract_strided_slice %243 {offsets = [16, 0], sizes = [1, 128], strides = [1, 1]} : vector<31x128xf32> to vector<1x128xf32>
    %343 = vector.shape_cast %342 : vector<1x128xf32> to vector<1x1x128xf32>
    %344 = vector.broadcast %343 : vector<1x1x128xf32> to vector<2x16x128xf32>
    %345 = arith.mulf %341, %344 : vector<2x16x128xf32>
    %346 = arith.addf %340, %345 : vector<2x16x128xf32>
    %c0_147 = arith.constant 0 : index
    %c18 = arith.constant 18 : index
    %c0_148 = arith.constant 0 : index
    %347 = vector.load %arg19[%c0_147, %c18, %c0_148] : memref<2x48x128xf32, #tpu.memory_space<vmem>>, vector<2x16x128xf32>
    %348 = vector.extract_strided_slice %243 {offsets = [17, 0], sizes = [1, 128], strides = [1, 1]} : vector<31x128xf32> to vector<1x128xf32>
    %349 = vector.shape_cast %348 : vector<1x128xf32> to vector<1x1x128xf32>
    %350 = vector.broadcast %349 : vector<1x1x128xf32> to vector<2x16x128xf32>
    %351 = arith.mulf %347, %350 : vector<2x16x128xf32>
    %352 = arith.addf %346, %351 : vector<2x16x128xf32>
    %c0_149 = arith.constant 0 : index
    %c19 = arith.constant 19 : index
    %c0_150 = arith.constant 0 : index
    %353 = vector.load %arg19[%c0_149, %c19, %c0_150] : memref<2x48x128xf32, #tpu.memory_space<vmem>>, vector<2x16x128xf32>
    %354 = vector.extract_strided_slice %243 {offsets = [18, 0], sizes = [1, 128], strides = [1, 1]} : vector<31x128xf32> to vector<1x128xf32>
    %355 = vector.shape_cast %354 : vector<1x128xf32> to vector<1x1x128xf32>
    %356 = vector.broadcast %355 : vector<1x1x128xf32> to vector<2x16x128xf32>
    %357 = arith.mulf %353, %356 : vector<2x16x128xf32>
    %358 = arith.addf %352, %357 : vector<2x16x128xf32>
    %c0_151 = arith.constant 0 : index
    %c20 = arith.constant 20 : index
    %c0_152 = arith.constant 0 : index
    %359 = vector.load %arg19[%c0_151, %c20, %c0_152] : memref<2x48x128xf32, #tpu.memory_space<vmem>>, vector<2x16x128xf32>
    %360 = vector.extract_strided_slice %243 {offsets = [19, 0], sizes = [1, 128], strides = [1, 1]} : vector<31x128xf32> to vector<1x128xf32>
    %361 = vector.shape_cast %360 : vector<1x128xf32> to vector<1x1x128xf32>
    %362 = vector.broadcast %361 : vector<1x1x128xf32> to vector<2x16x128xf32>
    %363 = arith.mulf %359, %362 : vector<2x16x128xf32>
    %364 = arith.addf %358, %363 : vector<2x16x128xf32>
    %c0_153 = arith.constant 0 : index
    %c21 = arith.constant 21 : index
    %c0_154 = arith.constant 0 : index
    %365 = vector.load %arg19[%c0_153, %c21, %c0_154] : memref<2x48x128xf32, #tpu.memory_space<vmem>>, vector<2x16x128xf32>
    %366 = vector.extract_strided_slice %243 {offsets = [20, 0], sizes = [1, 128], strides = [1, 1]} : vector<31x128xf32> to vector<1x128xf32>
    %367 = vector.shape_cast %366 : vector<1x128xf32> to vector<1x1x128xf32>
    %368 = vector.broadcast %367 : vector<1x1x128xf32> to vector<2x16x128xf32>
    %369 = arith.mulf %365, %368 : vector<2x16x128xf32>
    %370 = arith.addf %364, %369 : vector<2x16x128xf32>
    %c0_155 = arith.constant 0 : index
    %c22 = arith.constant 22 : index
    %c0_156 = arith.constant 0 : index
    %371 = vector.load %arg19[%c0_155, %c22, %c0_156] : memref<2x48x128xf32, #tpu.memory_space<vmem>>, vector<2x16x128xf32>
    %372 = vector.extract_strided_slice %243 {offsets = [21, 0], sizes = [1, 128], strides = [1, 1]} : vector<31x128xf32> to vector<1x128xf32>
    %373 = vector.shape_cast %372 : vector<1x128xf32> to vector<1x1x128xf32>
    %374 = vector.broadcast %373 : vector<1x1x128xf32> to vector<2x16x128xf32>
    %375 = arith.mulf %371, %374 : vector<2x16x128xf32>
    %376 = arith.addf %370, %375 : vector<2x16x128xf32>
    %c0_157 = arith.constant 0 : index
    %c23 = arith.constant 23 : index
    %c0_158 = arith.constant 0 : index
    %377 = vector.load %arg19[%c0_157, %c23, %c0_158] : memref<2x48x128xf32, #tpu.memory_space<vmem>>, vector<2x16x128xf32>
    %378 = vector.extract_strided_slice %243 {offsets = [22, 0], sizes = [1, 128], strides = [1, 1]} : vector<31x128xf32> to vector<1x128xf32>
    %379 = vector.shape_cast %378 : vector<1x128xf32> to vector<1x1x128xf32>
    %380 = vector.broadcast %379 : vector<1x1x128xf32> to vector<2x16x128xf32>
    %381 = arith.mulf %377, %380 : vector<2x16x128xf32>
    %382 = arith.addf %376, %381 : vector<2x16x128xf32>
    %c0_159 = arith.constant 0 : index
    %c24 = arith.constant 24 : index
    %c0_160 = arith.constant 0 : index
    %383 = vector.load %arg19[%c0_159, %c24, %c0_160] : memref<2x48x128xf32, #tpu.memory_space<vmem>>, vector<2x16x128xf32>
    %384 = vector.extract_strided_slice %243 {offsets = [23, 0], sizes = [1, 128], strides = [1, 1]} : vector<31x128xf32> to vector<1x128xf32>
    %385 = vector.shape_cast %384 : vector<1x128xf32> to vector<1x1x128xf32>
    %386 = vector.broadcast %385 : vector<1x1x128xf32> to vector<2x16x128xf32>
    %387 = arith.mulf %383, %386 : vector<2x16x128xf32>
    %388 = arith.addf %382, %387 : vector<2x16x128xf32>
    %c0_161 = arith.constant 0 : index
    %c25 = arith.constant 25 : index
    %c0_162 = arith.constant 0 : index
    %389 = vector.load %arg19[%c0_161, %c25, %c0_162] : memref<2x48x128xf32, #tpu.memory_space<vmem>>, vector<2x16x128xf32>
    %390 = vector.extract_strided_slice %243 {offsets = [24, 0], sizes = [1, 128], strides = [1, 1]} : vector<31x128xf32> to vector<1x128xf32>
    %391 = vector.shape_cast %390 : vector<1x128xf32> to vector<1x1x128xf32>
    %392 = vector.broadcast %391 : vector<1x1x128xf32> to vector<2x16x128xf32>
    %393 = arith.mulf %389, %392 : vector<2x16x128xf32>
    %394 = arith.addf %388, %393 : vector<2x16x128xf32>
    %c0_163 = arith.constant 0 : index
    %c26 = arith.constant 26 : index
    %c0_164 = arith.constant 0 : index
    %395 = vector.load %arg19[%c0_163, %c26, %c0_164] : memref<2x48x128xf32, #tpu.memory_space<vmem>>, vector<2x16x128xf32>
    %396 = vector.extract_strided_slice %243 {offsets = [25, 0], sizes = [1, 128], strides = [1, 1]} : vector<31x128xf32> to vector<1x128xf32>
    %397 = vector.shape_cast %396 : vector<1x128xf32> to vector<1x1x128xf32>
    %398 = vector.broadcast %397 : vector<1x1x128xf32> to vector<2x16x128xf32>
    %399 = arith.mulf %395, %398 : vector<2x16x128xf32>
    %400 = arith.addf %394, %399 : vector<2x16x128xf32>
    %c0_165 = arith.constant 0 : index
    %c27 = arith.constant 27 : index
    %c0_166 = arith.constant 0 : index
    %401 = vector.load %arg19[%c0_165, %c27, %c0_166] : memref<2x48x128xf32, #tpu.memory_space<vmem>>, vector<2x16x128xf32>
    %402 = vector.extract_strided_slice %243 {offsets = [26, 0], sizes = [1, 128], strides = [1, 1]} : vector<31x128xf32> to vector<1x128xf32>
    %403 = vector.shape_cast %402 : vector<1x128xf32> to vector<1x1x128xf32>
    %404 = vector.broadcast %403 : vector<1x1x128xf32> to vector<2x16x128xf32>
    %405 = arith.mulf %401, %404 : vector<2x16x128xf32>
    %406 = arith.addf %400, %405 : vector<2x16x128xf32>
    %c0_167 = arith.constant 0 : index
    %c28 = arith.constant 28 : index
    %c0_168 = arith.constant 0 : index
    %407 = vector.load %arg19[%c0_167, %c28, %c0_168] : memref<2x48x128xf32, #tpu.memory_space<vmem>>, vector<2x16x128xf32>
    %408 = vector.extract_strided_slice %243 {offsets = [27, 0], sizes = [1, 128], strides = [1, 1]} : vector<31x128xf32> to vector<1x128xf32>
    %409 = vector.shape_cast %408 : vector<1x128xf32> to vector<1x1x128xf32>
    %410 = vector.broadcast %409 : vector<1x1x128xf32> to vector<2x16x128xf32>
    %411 = arith.mulf %407, %410 : vector<2x16x128xf32>
    %412 = arith.addf %406, %411 : vector<2x16x128xf32>
    %c0_169 = arith.constant 0 : index
    %c29 = arith.constant 29 : index
    %c0_170 = arith.constant 0 : index
    %413 = vector.load %arg19[%c0_169, %c29, %c0_170] : memref<2x48x128xf32, #tpu.memory_space<vmem>>, vector<2x16x128xf32>
    %414 = vector.extract_strided_slice %243 {offsets = [28, 0], sizes = [1, 128], strides = [1, 1]} : vector<31x128xf32> to vector<1x128xf32>
    %415 = vector.shape_cast %414 : vector<1x128xf32> to vector<1x1x128xf32>
    %416 = vector.broadcast %415 : vector<1x1x128xf32> to vector<2x16x128xf32>
    %417 = arith.mulf %413, %416 : vector<2x16x128xf32>
    %418 = arith.addf %412, %417 : vector<2x16x128xf32>
    %c0_171 = arith.constant 0 : index
    %c30 = arith.constant 30 : index
    %c0_172 = arith.constant 0 : index
    %419 = vector.load %arg19[%c0_171, %c30, %c0_172] : memref<2x48x128xf32, #tpu.memory_space<vmem>>, vector<2x16x128xf32>
    %420 = vector.extract_strided_slice %243 {offsets = [29, 0], sizes = [1, 128], strides = [1, 1]} : vector<31x128xf32> to vector<1x128xf32>
    %421 = vector.shape_cast %420 : vector<1x128xf32> to vector<1x1x128xf32>
    %422 = vector.broadcast %421 : vector<1x1x128xf32> to vector<2x16x128xf32>
    %423 = arith.mulf %419, %422 : vector<2x16x128xf32>
    %424 = arith.addf %418, %423 : vector<2x16x128xf32>
    %c0_173 = arith.constant 0 : index
    %c31 = arith.constant 31 : index
    %c0_174 = arith.constant 0 : index
    %425 = vector.load %arg19[%c0_173, %c31, %c0_174] : memref<2x48x128xf32, #tpu.memory_space<vmem>>, vector<2x16x128xf32>
    %426 = vector.extract_strided_slice %243 {offsets = [30, 0], sizes = [1, 128], strides = [1, 1]} : vector<31x128xf32> to vector<1x128xf32>
    %427 = vector.shape_cast %426 : vector<1x128xf32> to vector<1x1x128xf32>
    %428 = vector.broadcast %427 : vector<1x1x128xf32> to vector<2x16x128xf32>
    %429 = arith.mulf %425, %428 : vector<2x16x128xf32>
    %430 = arith.addf %424, %429 : vector<2x16x128xf32>
    %431 = vector.shape_cast %430 : vector<2x16x128xf32> to vector<32x128xf32>
    %c0_175 = arith.constant 0 : index
    %c0_176 = arith.constant 0 : index
    %432 = vector.load %arg6[%c0_175, %c0_176] : memref<2x128xf32, #tpu.memory_space<vmem>>, vector<1x128xf32>
    %433 = vector.broadcast %432 : vector<1x128xf32> to vector<32x128xf32>
    %434 = arith.addf %431, %433 : vector<32x128xf32>
    %435 = arith.negf %434 : vector<32x128xf32>
    %436 = math.exp %435 : vector<32x128xf32>
    %cst_177 = arith.constant 1.000000e+00 : f32
    %437 = vector.broadcast %cst_177 : f32 to vector<32x128xf32>
    %438 = arith.addf %437, %436 : vector<32x128xf32>
    %439 = arith.divf %437, %438 : vector<32x128xf32>
    %440 = arith.mulf %434, %439 : vector<32x128xf32>
    %cst_178 = arith.constant dense<0.000000e+00> : vector<32xf32>
    %441 = vector.multi_reduction <add>, %440, %cst_178 [1] : vector<32x128xf32> to vector<32xf32>
    %442 = vector.shape_cast %441 : vector<32xf32> to vector<32x1xf32>
    %cst_179 = arith.constant 1.280000e+02 : f32
    %443 = vector.broadcast %cst_179 : f32 to vector<32x1xf32>
    %444 = arith.divf %442, %443 : vector<32x1xf32>
    %445 = vector.broadcast %444 : vector<32x1xf32> to vector<32x128xf32>
    %446 = arith.subf %440, %445 : vector<32x128xf32>
    %447 = arith.mulf %446, %446 : vector<32x128xf32>
    %cst_180 = arith.constant dense<0.000000e+00> : vector<32xf32>
    %448 = vector.multi_reduction <add>, %447, %cst_180 [1] : vector<32x128xf32> to vector<32xf32>
    %449 = vector.shape_cast %448 : vector<32xf32> to vector<32x1xf32>
    %cst_181 = arith.constant 1.280000e+02 : f32
    %450 = vector.broadcast %cst_181 : f32 to vector<32x1xf32>
    %451 = arith.divf %449, %450 : vector<32x1xf32>
    %452 = vector.broadcast %444 : vector<32x1xf32> to vector<32x128xf32>
    %453 = arith.subf %440, %452 : vector<32x128xf32>
    %cst_182 = arith.constant 9.99999997E-7 : f32
    %454 = vector.broadcast %cst_182 : f32 to vector<32x1xf32>
    %455 = arith.maximumf %451, %454 : vector<32x1xf32>
    %456 = math.rsqrt %455 : vector<32x1xf32>
    %457 = vector.broadcast %456 : vector<32x1xf32> to vector<32x128xf32>
    %458 = arith.mulf %453, %457 : vector<32x128xf32>
    %c1_183 = arith.constant 1 : index
    %c0_184 = arith.constant 0 : index
    %459 = vector.load %arg6[%c1_183, %c0_184] : memref<2x128xf32, #tpu.memory_space<vmem>>, vector<1x128xf32>
    %460 = vector.broadcast %459 : vector<1x128xf32> to vector<32x128xf32>
    %461 = arith.mulf %458, %460 : vector<32x128xf32>
    %462 = arith.truncf %461 : vector<32x128xf32> to vector<32x128xbf16>
    %c0_185 = arith.constant 0 : index
    %c0_186 = arith.constant 0 : index
    %463 = vector.load %arg14[%c0_185, %c0_186] : memref<128x64xbf16, #tpu.memory_space<vmem>>, vector<128x64xbf16>
    %cst_187 = arith.constant dense<0.000000e+00> : vector<32x64xf32>
    %464 = tpu.matmul %462, %463, %cst_187 {dimension_numbers = #tpu.dot_dimension_numbers<[1], [0], [0], [1], [0, 0, 1, 1], [], []>} : vector<32x128xbf16>, vector<128x64xbf16>, vector<32x64xf32> -> vector<32x64xf32>
    %c8_188 = arith.constant 8 : index
    %c0_189 = arith.constant 0 : index
    %465 = vector.load %arg4[%c8_188, %c0_189] : memref<14x64xf32, #tpu.memory_space<vmem>>, vector<1x64xf32>
    %466 = vector.broadcast %465 : vector<1x64xf32> to vector<32x64xf32>
    %467 = arith.addf %464, %466 : vector<32x64xf32>
    %468 = arith.addf %198, %467 : vector<32x64xf32>
    %c9_190 = arith.constant 9 : index
    %c0_191 = arith.constant 0 : index
    %469 = vector.load %arg4[%c9_190, %c0_191] : memref<14x64xf32, #tpu.memory_space<vmem>>, vector<1x64xf32>
    %c10_192 = arith.constant 10 : index
    %c0_193 = arith.constant 0 : index
    %470 = vector.load %arg4[%c10_192, %c0_193] : memref<14x64xf32, #tpu.memory_space<vmem>>, vector<1x64xf32>
    %c1_194 = arith.constant 1 : index
    %c0_195 = arith.constant 0 : index
    %471 = vector.load %arg5[%c1_194, %c0_195] : memref<2x256xf32, #tpu.memory_space<vmem>>, vector<1x256xf32>
    %c11_196 = arith.constant 11 : index
    %c0_197 = arith.constant 0 : index
    %472 = vector.load %arg4[%c11_196, %c0_197] : memref<14x64xf32, #tpu.memory_space<vmem>>, vector<1x64xf32>
    %cst_198 = arith.constant dense<0.000000e+00> : vector<32xf32>
    %473 = vector.multi_reduction <add>, %468, %cst_198 [1] : vector<32x64xf32> to vector<32xf32>
    %474 = vector.shape_cast %473 : vector<32xf32> to vector<32x1xf32>
    %cst_199 = arith.constant 6.400000e+01 : f32
    %475 = vector.broadcast %cst_199 : f32 to vector<32x1xf32>
    %476 = arith.divf %474, %475 : vector<32x1xf32>
    %477 = vector.broadcast %476 : vector<32x1xf32> to vector<32x64xf32>
    %478 = arith.subf %468, %477 : vector<32x64xf32>
    %479 = arith.mulf %478, %478 : vector<32x64xf32>
    %cst_200 = arith.constant dense<0.000000e+00> : vector<32xf32>
    %480 = vector.multi_reduction <add>, %479, %cst_200 [1] : vector<32x64xf32> to vector<32xf32>
    %481 = vector.shape_cast %480 : vector<32xf32> to vector<32x1xf32>
    %cst_201 = arith.constant 6.400000e+01 : f32
    %482 = vector.broadcast %cst_201 : f32 to vector<32x1xf32>
    %483 = arith.divf %481, %482 : vector<32x1xf32>
    %484 = vector.broadcast %476 : vector<32x1xf32> to vector<32x64xf32>
    %485 = arith.subf %468, %484 : vector<32x64xf32>
    %cst_202 = arith.constant 9.99999974E-6 : f32
    %486 = vector.broadcast %cst_202 : f32 to vector<32x1xf32>
    %487 = arith.addf %483, %486 : vector<32x1xf32>
    %488 = math.rsqrt %487 : vector<32x1xf32>
    %489 = vector.broadcast %488 : vector<32x1xf32> to vector<32x64xf32>
    %490 = arith.mulf %485, %489 : vector<32x64xf32>
    %491 = vector.broadcast %469 : vector<1x64xf32> to vector<32x64xf32>
    %492 = arith.mulf %490, %491 : vector<32x64xf32>
    %493 = vector.broadcast %470 : vector<1x64xf32> to vector<32x64xf32>
    %494 = arith.addf %492, %493 : vector<32x64xf32>
    %495 = arith.truncf %494 : vector<32x64xf32> to vector<32x64xbf16>
    %c0_203 = arith.constant 0 : index
    %c0_204 = arith.constant 0 : index
    %496 = vector.load %arg15[%c0_203, %c0_204] : memref<64x256xbf16, #tpu.memory_space<vmem>>, vector<64x256xbf16>
    %cst_205 = arith.constant dense<0.000000e+00> : vector<32x256xf32>
    %497 = tpu.matmul %495, %496, %cst_205 {dimension_numbers = #tpu.dot_dimension_numbers<[1], [0], [0], [1], [0, 0, 1, 1], [], []>} : vector<32x64xbf16>, vector<64x256xbf16>, vector<32x256xf32> -> vector<32x256xf32>
    %498 = vector.broadcast %471 : vector<1x256xf32> to vector<32x256xf32>
    %499 = arith.addf %497, %498 : vector<32x256xf32>
    %500 = arith.negf %499 : vector<32x256xf32>
    %501 = math.exp %500 : vector<32x256xf32>
    %cst_206 = arith.constant 1.000000e+00 : f32
    %502 = vector.broadcast %cst_206 : f32 to vector<32x256xf32>
    %503 = arith.addf %502, %501 : vector<32x256xf32>
    %504 = arith.divf %502, %503 : vector<32x256xf32>
    %505 = arith.mulf %499, %504 : vector<32x256xf32>
    %506 = arith.truncf %505 : vector<32x256xf32> to vector<32x256xbf16>
    %c0_207 = arith.constant 0 : index
    %c0_208 = arith.constant 0 : index
    %507 = vector.load %arg16[%c0_207, %c0_208] : memref<256x64xbf16, #tpu.memory_space<vmem>>, vector<256x64xbf16>
    %cst_209 = arith.constant dense<0.000000e+00> : vector<32x64xf32>
    %508 = tpu.matmul %506, %507, %cst_209 {dimension_numbers = #tpu.dot_dimension_numbers<[1], [0], [0], [1], [0, 0, 1, 1], [], []>} : vector<32x256xbf16>, vector<256x64xbf16>, vector<32x64xf32> -> vector<32x64xf32>
    %509 = vector.broadcast %472 : vector<1x64xf32> to vector<32x64xf32>
    %510 = arith.addf %508, %509 : vector<32x64xf32>
    %cst_210 = arith.constant 5.000000e-01 : f32
    %511 = vector.broadcast %cst_210 : f32 to vector<32x64xf32>
    %512 = arith.mulf %511, %510 : vector<32x64xf32>
    %513 = arith.addf %468, %512 : vector<32x64xf32>
    %c12_211 = arith.constant 12 : index
    %c0_212 = arith.constant 0 : index
    %514 = vector.load %arg4[%c12_211, %c0_212] : memref<14x64xf32, #tpu.memory_space<vmem>>, vector<1x64xf32>
    %c13_213 = arith.constant 13 : index
    %c0_214 = arith.constant 0 : index
    %515 = vector.load %arg4[%c13_213, %c0_214] : memref<14x64xf32, #tpu.memory_space<vmem>>, vector<1x64xf32>
    %cst_215 = arith.constant dense<0.000000e+00> : vector<32xf32>
    %516 = vector.multi_reduction <add>, %513, %cst_215 [1] : vector<32x64xf32> to vector<32xf32>
    %517 = vector.shape_cast %516 : vector<32xf32> to vector<32x1xf32>
    %cst_216 = arith.constant 6.400000e+01 : f32
    %518 = vector.broadcast %cst_216 : f32 to vector<32x1xf32>
    %519 = arith.divf %517, %518 : vector<32x1xf32>
    %520 = vector.broadcast %519 : vector<32x1xf32> to vector<32x64xf32>
    %521 = arith.subf %513, %520 : vector<32x64xf32>
    %522 = arith.mulf %521, %521 : vector<32x64xf32>
    %cst_217 = arith.constant dense<0.000000e+00> : vector<32xf32>
    %523 = vector.multi_reduction <add>, %522, %cst_217 [1] : vector<32x64xf32> to vector<32xf32>
    %524 = vector.shape_cast %523 : vector<32xf32> to vector<32x1xf32>
    %cst_218 = arith.constant 6.400000e+01 : f32
    %525 = vector.broadcast %cst_218 : f32 to vector<32x1xf32>
    %526 = arith.divf %524, %525 : vector<32x1xf32>
    %527 = vector.broadcast %519 : vector<32x1xf32> to vector<32x64xf32>
    %528 = arith.subf %513, %527 : vector<32x64xf32>
    %cst_219 = arith.constant 9.99999974E-6 : f32
    %529 = vector.broadcast %cst_219 : f32 to vector<32x1xf32>
    %530 = arith.addf %526, %529 : vector<32x1xf32>
    %531 = math.rsqrt %530 : vector<32x1xf32>
    %532 = vector.broadcast %531 : vector<32x1xf32> to vector<32x64xf32>
    %533 = arith.mulf %528, %532 : vector<32x64xf32>
    %534 = vector.broadcast %514 : vector<1x64xf32> to vector<32x64xf32>
    %535 = arith.mulf %533, %534 : vector<32x64xf32>
    %536 = vector.broadcast %515 : vector<1x64xf32> to vector<32x64xf32>
    %537 = arith.addf %535, %536 : vector<32x64xf32>
    %538 = vector.shape_cast %537 : vector<32x64xf32> to vector<2x16x64xf32>
    %c0_220 = arith.constant 0 : index
    %c0_221 = arith.constant 0 : index
    %c0_222 = arith.constant 0 : index
    %539 = vector.load %arg17[%c0_220, %c0_221, %c0_222] : memref<2x16x64xf32, #tpu.memory_space<vmem>>, vector<2x16x64xf32>
    tpu.vector_store %arg17[%c0_220, %c0_221, %c0_222], %538 {strides = array<i32>} : memref<2x16x64xf32, #tpu.memory_space<vmem>>, vector<2x16x64xf32>,
    return
  }
  func.func @transform_0(%arg0: i32) -> (i32, i32, i32) {
    %c0_i32 = arith.constant 0 : i32
    %c0_i32_0 = arith.constant 0 : i32
    %c0_i32_1 = arith.constant 0 : i32
    return %arg0, %c0_i32, %c0_i32_0 : i32, i32, i32
  }
  func.func @transform_1(%arg0: i32) -> (i32, i32) {
    %c0_i32 = arith.constant 0 : i32
    %c0_i32_0 = arith.constant 0 : i32
    %c0_i32_1 = arith.constant 0 : i32
    return %c0_i32, %c0_i32_0 : i32, i32
  }
  func.func @transform_2(%arg0: i32) -> (i32, i32) {
    %c0_i32 = arith.constant 0 : i32
    %c0_i32_0 = arith.constant 0 : i32
    %c0_i32_1 = arith.constant 0 : i32
    return %c0_i32, %c0_i32_0 : i32, i32
  }
  func.func @transform_3(%arg0: i32) -> (i32, i32) {
    %c0_i32 = arith.constant 0 : i32
    %c0_i32_0 = arith.constant 0 : i32
    %c0_i32_1 = arith.constant 0 : i32
    return %c0_i32, %c0_i32_0 : i32, i32
  }
  func.func @transform_4(%arg0: i32) -> (i32, i32) {
    %c0_i32 = arith.constant 0 : i32
    %c0_i32_0 = arith.constant 0 : i32
    %c0_i32_1 = arith.constant 0 : i32
    return %c0_i32, %c0_i32_0 : i32, i32
  }
  func.func @transform_5(%arg0: i32) -> (i32, i32) {
    %c0_i32 = arith.constant 0 : i32
    %c0_i32_0 = arith.constant 0 : i32
    %c0_i32_1 = arith.constant 0 : i32
    return %c0_i32, %c0_i32_0 : i32, i32
  }
  func.func @transform_6(%arg0: i32) -> (i32, i32) {
    %c0_i32 = arith.constant 0 : i32
    %c0_i32_0 = arith.constant 0 : i32
    %c0_i32_1 = arith.constant 0 : i32
    return %c0_i32, %c0_i32_0 : i32, i32
  }
  func.func @transform_7(%arg0: i32) -> (i32, i32, i32) {
    %c0_i32 = arith.constant 0 : i32
    %c0_i32_0 = arith.constant 0 : i32
    %c0_i32_1 = arith.constant 0 : i32
    %c0_i32_2 = arith.constant 0 : i32
    return %c0_i32, %c0_i32_0, %c0_i32_1 : i32, i32, i32
  }
  func.func @transform_8(%arg0: i32) -> (i32, i32) {
    %c0_i32 = arith.constant 0 : i32
    %c0_i32_0 = arith.constant 0 : i32
    %c0_i32_1 = arith.constant 0 : i32
    return %c0_i32, %c0_i32_0 : i32, i32
  }
  func.func @transform_9(%arg0: i32) -> (i32, i32) {
    %c0_i32 = arith.constant 0 : i32
    %c0_i32_0 = arith.constant 0 : i32
    %c0_i32_1 = arith.constant 0 : i32
    return %c0_i32, %c0_i32_0 : i32, i32
  }
  func.func @transform_10(%arg0: i32) -> (i32, i32) {
    %c0_i32 = arith.constant 0 : i32
    %c0_i32_0 = arith.constant 0 : i32
    %c0_i32_1 = arith.constant 0 : i32
    return %c0_i32, %c0_i32_0 : i32, i32
  }
  func.func @transform_11(%arg0: i32) -> (i32, i32) {
    %c0_i32 = arith.constant 0 : i32
    %c0_i32_0 = arith.constant 0 : i32
    %c0_i32_1 = arith.constant 0 : i32
    return %c0_i32, %c0_i32_0 : i32, i32
  }
  func.func @transform_12(%arg0: i32) -> (i32, i32) {
    %c0_i32 = arith.constant 0 : i32
    %c0_i32_0 = arith.constant 0 : i32
    %c0_i32_1 = arith.constant 0 : i32
    return %c0_i32, %c0_i32_0 : i32, i32
  }
  func.func @transform_13(%arg0: i32) -> (i32, i32) {
    %c0_i32 = arith.constant 0 : i32
    %c0_i32_0 = arith.constant 0 : i32
    %c0_i32_1 = arith.constant 0 : i32
    return %c0_i32, %c0_i32_0 : i32, i32
  }
  func.func @transform_14(%arg0: i32) -> (i32, i32) {
    %c0_i32 = arith.constant 0 : i32
    %c0_i32_0 = arith.constant 0 : i32
    %c0_i32_1 = arith.constant 0 : i32
    return %c0_i32, %c0_i32_0 : i32, i32
  }
  func.func @transform_15(%arg0: i32) -> (i32, i32) {
    %c0_i32 = arith.constant 0 : i32
    %c0_i32_0 = arith.constant 0 : i32
    %c0_i32_1 = arith.constant 0 : i32
    return %c0_i32, %c0_i32_0 : i32, i32
  }
  func.func @transform_16(%arg0: i32) -> (i32, i32, i32) {
    %c0_i32 = arith.constant 0 : i32
    %c0_i32_0 = arith.constant 0 : i32
    %c0_i32_1 = arith.constant 0 : i32
    return %arg0, %c0_i32, %c0_i32_0 : i32, i32, i32
  }
}

</mosaic_0001>

<bundles_post_ra>
// kernel: tpu_custom_call.1
= control target key start
LH: loop header
LB: loop body
LE: loop exit
PB: predicated region body
PF: predicated region fallthrough
CT: control target
= control target key end

     0   :  { %s6115_s0 = inlined_call_operand.hbm [shape: f32[2,16,64], index: 0, kind: input, shape index: {}]   ;;  %s6116_s1 = inlined_call_operand.hbm [shape: f32[32,64], index: 1, kind: input, shape index: {}]   ;;  %s6117_s2 = inlined_call_operand.hbm [shape: f32[32,64], index: 2, kind: input, shape index: {}]   ;;  %s6118_s3 = inlined_call_operand.hbm [shape: f32[14,64], index: 3, kind: input, shape index: {}]   ;;  %s6119_s4 = inlined_call_operand.vmem [shape: f32[2,256], index: 4, kind: input, shape index: {}]   ;;  %s6120_s5 = inlined_call_operand.vmem [shape: f32[2,128], index: 5, kind: input, shape index: {}]   ;;  %s6121_s6 = inlined_call_operand.vmem [shape: f32[1,256], index: 6, kind: input, shape index: {}]   ;;  %s6122_s7 = inlined_call_operand.vmem [shape: bf16[5,64,64], index: 7, kind: input, shape index: {}]   ;;  %s6123_s8 = inlined_call_operand.hbm [shape: bf16[64,64], index: 8, kind: input, shape index: {}]   ;;  %s6124_s9 = inlined_call_operand.vmem [shape: bf16[64,256], index: 9, kind: input, shape index: {}]   ;;  %s6125_s10 = inlined_call_operand.vmem [shape: bf16[256,64], index: 10, kind: input, shape index: {}]   ;;  %s6126_s11 = inlined_call_operand.vmem [shape: bf16[64,256], index: 11, kind: input, shape index: {}]   ;;  %s6127_s12 = inlined_call_operand.hbm [shape: f32[31,128], index: 12, kind: input, shape index: {}]   ;;  %s6128_s13 = inlined_call_operand.vmem [shape: bf16[128,64], index: 13, kind: input, shape index: {}]   ;;  %s6129_s14 = inlined_call_operand.vmem [shape: bf16[64,256], index: 14, kind: input, shape index: {}]   ;;  %s6130_s15 = inlined_call_operand.vmem [shape: bf16[256,64], index: 15, kind: input, shape index: {}]   ;;  %s6131_s16 = inlined_call_operand.hbm [shape: f32[2,16,64], index: 16, kind: output, shape index: {}]  }
   0x1   :  { %6140 = sst [smem:[#allocation28_spill]] %s6115_s0 }
   0x2   :  { %21 = vsyncpa [#allocation5], 0 }
   0x3   :  { %22 = vsyncpa [#allocation8], 0 }
   0x4   :  { %23 = vsyncpa [#allocation11], 0 }
   0x5   :  { %24 = vsyncpa [#allocation14], 0 }
   0x6   :  { %25 = vsyncpa [#allocation6], 0  ;;  %s43_s23 = sshll.u32 %s6116_s1, 4  ;;  %s4404_s24 = smov [#allocation7]   ;;  %s44_s23 = int_to_ptr.hbm [resolvable:$true] %s43_s23 }
   0x7   :  { %s45_s25 = sshll.u32 %s4404_s24, 4  ;;  %s69_s28 = sshll.u32 %s6118_s3, 4  ;;  %s46_s25 = int_to_ptr.vmem [resolvable:$true] %s45_s25  ;;  %s70_s28 = int_to_ptr.hbm [resolvable:$true] %s69_s28 }
   0x8   :  { %s4405_s29 = smov 128   ;;  %s4406_s30 = smov 8  }
   0x9   :  { %51 = dma.hbm_to_vmem [thread:$0]  %s44_s23, 512, %s46_s25, [#allocation8], %s4405_s29, %s4405_s29, %s4406_s30  }
   0xa   :  { %s4407_s0 = smov [#allocation10]   ;;  %s6141_s1 = sld [smem:[#allocation28_spill]] }
   0xb   :  { %s71_s17 = sshll.u32 %s4407_s0, 4  ;;  %s56_s22 = sshll.u32 %s6117_s2, 4  ;;  %s72_s17 = int_to_ptr.vmem [resolvable:$true] %s71_s17  ;;  %s57_s22 = int_to_ptr.hbm [resolvable:$true] %s56_s22 }
   0xc   :  { %77 = dma.hbm_to_vmem [thread:$0]  %s70_s28, 256, %s72_s17, [#allocation11], %s4405_s29, %s4405_s29, %s4406_s30  }
   0xd   :  { %s4408_s24 = smov [#allocation4]   ;;  %s4409_s23 = smov [#allocation9]  }
   0xe   :  { %s32_s26 = sshll.u32 %s4408_s24, 4  ;;  %s58_s25 = sshll.u32 %s4409_s23, 4  ;;  %s33_s26 = int_to_ptr.vmem [resolvable:$true] %s32_s26  ;;  %s59_s25 = int_to_ptr.vmem [resolvable:$true] %s58_s25 }
   0xf   :  { %s90_s18 = sshll.u32 %s6123_s8, 4  ;;  %s4410_s2 = smov [#allocation12]   ;;  %s91_s18 = int_to_ptr.hbm [resolvable:$true] %s90_s18 }
  0x10   :  { %s30_s20 = sshll.u32 %s6141_s1, 4  ;;  %s92_s28 = sshll.u32 %s4410_s2, 4  ;;  %s31_s20 = int_to_ptr.hbm [resolvable:$true] %s30_s20  ;;  %s93_s28 = int_to_ptr.vmem [resolvable:$true] %s92_s28 }
  0x11   :  { %38 = dma.hbm_to_vmem [thread:$0]  %s31_s20, 512, %s33_s26, [#allocation5], %s4405_s29, %s4405_s29, %s4406_s30  }
  0x12   :  { %64 = dma.hbm_to_vmem [thread:$0]  %s57_s22, 512, %s59_s25, [#allocation8], %s4405_s29, %s4405_s29, %s4406_s30  }
  0x13   :  { %s109_s1 = sshll.u32 %s6127_s12, 4  ;;  %s4411_s20 = smov 64   ;;  %s110_s1 = int_to_ptr.hbm [resolvable:$true] %s109_s1 }
  0x14   :  { %s4412_s3 = smov 4   ;;  %s4413_s21 = smov [#allocation13]  }
  0x15   :  { %98 = dma.hbm_to_vmem [thread:$0]  %s91_s18, 512, %s93_s28, [#allocation11], %s4411_s20, %s4411_s20, %s4412_s3  }
  0x16   :  { %s111_s24 = sshll.u32 %s4413_s21, 4  ;;  %s112_s24 = int_to_ptr.vmem [resolvable:$true] %s111_s24 }
  0x17   :  { %117 = dma.hbm_to_vmem [thread:$0]  %s110_s1, 512, %s112_s24, [#allocation14], %s4405_s29, %s4405_s29, %s4406_s30  }
  0x18   :  { %4394 = dma.done.wait [#allocation5], 512  }
  0x19   :  { %4395 = vsyncadd [#allocation5], 4294966784 }
  0x1a   :  { %4396 = dma.done.wait [#allocation8], 1024  }
  0x1b   :  { %4397 = vsyncadd [#allocation8], 4294966272 }
  0x1c   :  { %4398 = dma.done.wait [#allocation11], 768  }
  0x1d   :  { %4399 = vsyncadd [#allocation11], 4294966528 }
  0x1e   :  { %4400 = dma.done.wait [#allocation14], 512  }
  0x1f   :  { %4401 = vsyncadd [#allocation14], 4294966784  ;;  %vm157_vm0 = vcmask 523264   ;;  %v4542_v0 = vld [vmem:[#allocation4 + $0x10] sm:$0xff]  ;;  %v4544_v1 = vld [vmem:[#allocation4] sm:$0xff]  ;;  %v4414_v8 = vmov 64.0  }
  0x20   :  { %v4546_v2 = vld [vmem:[#allocation4 + $0x18] sm:$0xff]  ;;  %v164_v3 = vsel %vm157_vm0, %v4542_v0, 0.0  ;;  %v158_v4 = vsel %vm157_vm0, %v4544_v1, 0.0  ;;  %v4552_v5 = vld [vmem:[#allocation4 + $0x8] sm:$0xff]  ;;  %4014 = vrcp.f32 %v4414_v8  ;;  %v3467_v35 = vld [vmem:[%s6124_s9 + $0x30] sm:$0xf] }
  0x21   :  { %165 = vadd.xlane.f32.xlu1 %v164_v3  ;;  %159 = vadd.xlane.f32.xlu0 %v158_v4  ;;  %v167_v6 = vsel %vm157_vm0, %v4546_v2, 0.0  ;;  %v161_v7 = vsel %vm157_vm0, %v4552_v5, 0.0  ;;  %v3897_v36 = vld [vmem:[%s6124_s9 + $0x34] sm:$0xf0]  ;;  %v3896_v37 = vld [vmem:[%s6124_s9 + $0x34] sm:$0xf] }
  0x22   :  { %v3468_v38 = vor.u32 %v3897_v36, %v3467_v35  ;;  %v3469_v39 = vld [vmem:[%s6124_s9 + $0x38] sm:$0xf0]  ;;  %v3459_v41 = vld [vmem:[%s6124_s9 + $0x20] sm:$0xf]  ;;  %v3895_v42 = vld [vmem:[%s6124_s9 + $0x24] sm:$0xf0] }
  0x23   :  { %v3472_v40 = vor.u32 %v3896_v37, %v3469_v39  ;;  %v3894_v43 = vld [vmem:[%s6124_s9 + $0x24] sm:$0xf]  ;;  %v3460_v44 = vor.u32 %v3895_v42, %v3459_v41  ;;  %v3461_v45 = vld [vmem:[%s6124_s9 + $0x28] sm:$0xf0]  ;;  %v3451_v47 = vld [vmem:[%s6124_s9 + $0x10] sm:$0xf] }
  0x24   :  { %328 = vmatpush.bf16.msra.mxu0 %v3468_v38  ;;  %v3464_v46 = vor.u32 %v3894_v43, %v3461_v45  ;;  %v3893_v48 = vld [vmem:[%s6124_s9 + $0x14] sm:$0xf0]  ;;  %v3892_v49 = vld [vmem:[%s6124_s9 + $0x14] sm:$0xf]  ;;  %v3453_v51 = vld [vmem:[%s6124_s9 + $0x18] sm:$0xf0] }
  0x25   :  { %347 = vmatpush.bf16.msra.mxu1 %v3472_v40  ;;  %v3452_v50 = vor.u32 %v3893_v48, %v3451_v47  ;;  %v3456_v53 = vor.u32 %v3892_v49, %v3453_v51  ;;  %v3443_v54 = vld [vmem:[%s6124_s9] sm:$0xf]  ;;  %v3891_v55 = vld [vmem:[%s6124_s9 + $0x4] sm:$0xf0]  ;;  %v3890_v56 = vld [vmem:[%s6124_s9 + $0x4] sm:$0xf] }
  0x26   :  { %v4015_v9 = vpop.eup %4014  ;;  %v3444_v59 = vor.u32 %v3891_v55, %v3443_v54  ;;  %v3445_v60 = vld [vmem:[%s6124_s9 + $0x8] sm:$0xf0]  ;;  %v3998_v36 = vld [vmem:[#allocation10] ss:$0 sm:$0xff]  ;;  %v3999_v43 = vld [vmem:[#allocation10 + $0x1] ss:$0 sm:$0xff] }
  0x27   :  { %v171_v10 = vmul.f32 64.0, %v4015_v9  ;;  %vm175_vm1 = vweird.f32 %v4015_v9  ;;  %v3448_v61 = vor.u32 %v3890_v56, %v3445_v60  ;;  %v3903_v60 = vld [vmem:[%s6125_s10 + $0x28] sm:$0xff]  ;;  %s4417_s28 = smov 80   ;;  %s4418_s17 = smov 16  }
  0x28   :  { %329 = vmatpush.bf16.msra.mxu0 %v3460_v44  ;;  %s4419_s19 = smov 32   ;;  %s4420_s1 = smov 48  }
  0x29   :  { %168 = vadd.xlane.f32.xlu1 %v167_v6  ;;  %162 = vadd.xlane.f32.xlu0 %v161_v7  ;;  %v172_v11 = vsub.f32 1.0, %v171_v10  ;;  %s3425_s20 = sshll.u32 %s6131_s16, 4  ;;  %s3426_s20 = int_to_ptr.hbm [resolvable:$true] %s3425_s20 }
  0x2a   :  { %348 = vmatpush.bf16.msra.mxu1 %v3464_v46 }
  0x2b   :  { %v173_v12 = vmul.f32 %v4015_v9, %v172_v11 }
  0x2c   :  { %330 = vmatpush.bf16.msra.mxu0 %v3452_v50 }
  0x2d   :  { %v174_v13 = vadd.f32 %v4015_v9, %v173_v12 }
  0x2e   :  { %349 = vmatpush.bf16.msra.mxu1 %v3456_v53 }
  0x2f   :  { %v4558_v14 = vsel %vm175_vm1, %v4015_v9, %v174_v13 }
  0x30   :  { %6142 = vst [vmem:[#allocation21_spill] sm:$0xff] %v4558_v14  ;;  %331 = vmatpush.bf16.msra.mxu0 %v3444_v59  ;;  %v3913_v59 = vld [vmem:[%s6125_s10 + $0x78] sm:$0xff] }
  0x31   :  { %674 = vmatpush.bf16.msra.mxu3 %v3913_v59 }
  0x32   :  { %350 = vmatpush.bf16.msra.mxu1 %v3448_v61  ;;  %v3911_v61 = vld [vmem:[%s6125_s10 + $0x68] sm:$0xff] }
  0x94   :  { %v166_v15 = vpop.xlane.xlu1 %165  ;;  %v160_v16 = vpop.xlane.xlu0 %159 }
  0x95   :  { %v179_v17 = vmul.f32 %v4558_v14, %v166_v15  ;;  %v177_v18 = vmul.f32 %v4558_v14, %v160_v16 }
  0x97   :  { %v4563_v19 = vsub.f32 %v4542_v0, %v179_v17  ;;  %v4566_v20 = vsub.f32 %v4544_v1, %v177_v18 }
  0x99   :  { %v187_v21 = vmul.f32 %v4563_v19, %v4563_v19  ;;  %v185_v22 = vmul.f32 %v4566_v20, %v4566_v20 }
  0x9b   :  { %v195_v23 = vsel %vm157_vm0, %v187_v21, 0.0  ;;  %v189_v24 = vsel %vm157_vm0, %v185_v22, 0.0 }
  0x9c   :  { %v169_v25 = vpop.xlane.xlu1 %168  ;;  %196 = vadd.xlane.f32.xlu0 %v195_v23  ;;  %190 = vadd.xlane.f32.xlu2 %v189_v24  ;;  %v163_v26 = vpop.xlane.xlu0 %162 }
  0x9d   :  { %v180_v27 = vmul.f32 %v4558_v14, %v169_v25  ;;  %v178_v28 = vmul.f32 %v4558_v14, %v163_v26 }
  0x9f   :  { %v4577_v29 = vsub.f32 %v4546_v2, %v180_v27  ;;  %v4580_v30 = vsub.f32 %v4552_v5, %v178_v28 }
  0xa1   :  { %v188_v31 = vmul.f32 %v4577_v29, %v4577_v29  ;;  %v186_v32 = vmul.f32 %v4580_v30, %v4580_v30 }
  0xa3   :  { %v198_v33 = vsel %vm157_vm0, %v188_v31, 0.0  ;;  %v192_v34 = vsel %vm157_vm0, %v186_v32, 0.0 }
  0xa4   :  { %199 = vadd.xlane.f32.xlu1 %v198_v33  ;;  %193 = vadd.xlane.f32.xlu2 %v192_v34 }
 0x10f   :  { %v191_v52 = vpop.xlane.xlu2 %190  ;;  %v197_v58 = vpop.xlane.xlu0 %196 }
 0x110   :  { %v201_v57 = vmul.f32 %v191_v52, %v4558_v14  ;;  %v203_v63 = vmul.f32 %v197_v58, %v4558_v14  ;;  %v3905_v58 = vld [vmem:[%s6125_s10 + $0x38] sm:$0xff] }
 0x111   :  { %655 = vmatpush.bf16.msra.mxu2 %v3905_v58 }
 0x112   :  { %v205_v62 = vadd.f32 1e-05, %v201_v57  ;;  %v207_v3 = vadd.f32 1e-05, %v203_v63  ;;  %v3902_v63 = vld [vmem:[%s6125_s10 + $0x20] sm:$0xff] }
 0x114   :  { %4016 = vrsqrt.f32 %v205_v62  ;;  %vm215_vm3 = vweird.f32 %v205_v62  ;;  %vm235_vm10 = vweird.f32 %v207_v3 }
 0x115   :  { %4018 = vrsqrt.f32 %v207_v3 }
 0x117   :  { %v200_v4 = vpop.xlane.xlu1 %199  ;;  %v194_v6 = vpop.xlane.xlu2 %193 }
 0x118   :  { %v204_v7 = vmul.f32 %v200_v4, %v4558_v14  ;;  %v202_v8 = vmul.f32 %v194_v6, %v4558_v14 }
 0x11a   :  { %v4017_v9 = vpop.eup %4016  ;;  %v208_v10 = vadd.f32 1e-05, %v204_v7  ;;  %v206_v11 = vadd.f32 1e-05, %v202_v8  ;;  %v3901_v7 = vld [vmem:[%s6125_s10 + $0x18] sm:$0xff] }
 0x11b   :  { %v210_v12 = vmul.f32 %v4017_v9, %v205_v62  ;;  %v4019_v16 = vpop.eup %4018  ;;  %vm216_vm2 = vweird.f32 %v4017_v9  ;;  %v155_v62 = vld [vmem:[%s6119_s4] ss:$2 sm:$0x3]  ;;  %v3909_v8 = vld [vmem:[%s6125_s10 + $0x58] sm:$0xff] }
 0x11c   :  { %4020 = vrsqrt.f32 %v208_v10  ;;  %v230_v24 = vmul.f32 %v4019_v16, %v207_v3  ;;  %vm217_vm4 = vmor %vm215_vm3, %vm216_vm2  ;;  %vm225_vm6 = vweird.f32 %v206_v11  ;;  %vm245_vm8 = vweird.f32 %v208_v10  ;;  %v3910_v3 = vld [vmem:[%s6125_s10 + $0x60] sm:$0xff] }
 0x11d   :  { %v211_v13 = vmul.f32 %v4017_v9, %v210_v12  ;;  %4022 = vrsqrt.f32 %v206_v11  ;;  %vm236_vm11 = vweird.f32 %v4019_v16  ;;  %v274_v4 = vperm.slane %v155_v62, 0 }
 0x11e   :  { %v231_v31 = vmul.f32 %v4019_v16, %v230_v24  ;;  %vm237_vm13 = vmor %vm235_vm10, %vm236_vm11  ;;  %v275_v6 = vperm.slane %v155_v62, 1 }
 0x11f   :  { %v212_v15 = vmul.f32 0.5, %v211_v13  ;;  %v3900_v13 = vld [vmem:[%s6125_s10 + $0x10] sm:$0xff] }
 0x120   :  { %v232_v37 = vmul.f32 0.5, %v231_v31 }
 0x121   :  { %v213_v17 = vsub.f32 1.5, %v212_v15  ;;  %v3908_v15 = vld [vmem:[%s6125_s10 + $0x50] sm:$0xff] }
 0x122   :  { %v4021_v18 = vpop.eup %4020  ;;  %v233_v44 = vsub.f32 1.5, %v232_v37 }
 0x123   :  { %v4023_v21 = vpop.eup %4022  ;;  %v240_v22 = vmul.f32 %v4021_v18, %v208_v10  ;;  %v214_v23 = vmul.f32 %v4017_v9, %v213_v17  ;;  %vm246_vm9 = vweird.f32 %v4021_v18 }
 0x124   :  { %v220_v25 = vmul.f32 %v4023_v21, %v206_v11  ;;  %vm226_vm5 = vweird.f32 %v4023_v21  ;;  %vm247_vm12 = vmor %vm245_vm8, %vm246_vm9  ;;  %v234_v48 = vmul.f32 %v4019_v16, %v233_v44 }
 0x125   :  { %v241_v26 = vmul.f32 %v4021_v18, %v240_v22  ;;  %v218_v28 = vsel %vm217_vm4, %v4017_v9, %v214_v23  ;;  %vm227_vm7 = vmor %vm225_vm6, %vm226_vm5 }
 0x126   :  { %v221_v27 = vmul.f32 %v4023_v21, %v220_v25  ;;  %v249_v35 = vmul.f32 %v218_v28, %v4566_v20 }
 0x127   :  { %v242_v33 = vmul.f32 0.5, %v241_v26  ;;  %v3898_v26 = vld [vmem:[%s6125_s10] sm:$0xff] }
 0x128   :  { %v222_v32 = vmul.f32 0.5, %v221_v27  ;;  %v254_v42 = vmul.f32 %v3998_v36, %v249_v35  ;;  %v3906_v27 = vld [vmem:[%s6125_s10 + $0x40] sm:$0xff] }
 0x129   :  { %v243_v39 = vsub.f32 1.5, %v242_v33 }
 0x12a   :  { %v223_v34 = vsub.f32 1.5, %v222_v32  ;;  %v259_v20 = vadd.f32 %v3999_v43, %v254_v42 }
 0x12b   :  { %v244_v46 = vmul.f32 %v4021_v18, %v243_v39 }
 0x12c   :  { %v224_v38 = vmul.f32 %v4023_v21, %v223_v34 }
 0x12d   :  { %v248_v50 = vsel %vm247_vm12, %v4021_v18, %v244_v46  ;;  %v3899_v18 = vld [vmem:[%s6125_s10 + $0x8] sm:$0xff] }
 0x12e   :  { %v228_v40 = vsel %vm227_vm7, %v4023_v21, %v224_v38  ;;  %v252_v51 = vmul.f32 %v248_v50, %v4577_v29  ;;  %v3912_v29 = vld [vmem:[%s6125_s10 + $0x70] sm:$0xff]  ;;  %v3907_v21 = vld [vmem:[%s6125_s10 + $0x48] sm:$0xff] }
 0x12f   :  { %v250_v41 = vmul.f32 %v228_v40, %v4580_v30  ;;  %v238_v30 = vsel %vm237_vm13, %v4019_v16, %v234_v48  ;;  %675 = vmatpush.bf16.msra.mxu3 %v3912_v29 }
 0x130   :  { %v251_v52 = vmul.f32 %v238_v30, %v4563_v19  ;;  %v257_v53 = vmul.f32 %v3998_v36, %v252_v51  ;;  %v3904_v19 = vld [vmem:[%s6125_s10 + $0x30] sm:$0xff]  ;;  %s4416_s10 = smov 96  }
 0x131   :  { %v255_v45 = vmul.f32 %v3998_v36, %v250_v41  ;;  %656 = vmatpush.bf16.msra.mxu2 %v3904_v19 }
 0x132   :  { %v256_v54 = vmul.f32 %v3998_v36, %v251_v52  ;;  %v262_v55 = vadd.f32 %v3999_v43, %v257_v53 }
 0x133   :  { %v260_v47 = vadd.f32 %v3999_v43, %v255_v45  ;;  %676 = vmatpush.bf16.msra.mxu3 %v3911_v61 }
 0x134   :  { %v261_v56 = vadd.f32 %v3999_v43, %v256_v54 }
 0x135   :  { %v263_v49 = vpack.c.bf16 %v260_v47, %v259_v20  ;;  %657 = vmatpush.bf16.msra.mxu2 %v3903_v60 }
 0x136   :  { %v264_v57 = vpack.c.bf16 %v262_v55, %v261_v56 }
 0x137   :  { %3473 = vmatmul.msk.bf16.vlgmr.msra.gmra.mxu0 %vm157_vm0, %v263_v49  ;;  %3475 = vmatmul.msk.bf16.vlgmr.msra.gmra.mxu1 %vm157_vm0, %v263_v49 }
 0x138   :  { %677 = vmatpush.bf16.msra.mxu3 %v3910_v3 }
 0x139   :  { %658 = vmatpush.bf16.msra.mxu2 %v3902_v63 }
 0x13c   :  { %678 = vmatpush.bf16.msra.mxu3 %v3909_v8 }
 0x13d   :  { %659 = vmatpush.bf16.msra.mxu2 %v3901_v7 }
 0x140   :  { %679 = vmatpush.bf16.msra.mxu3 %v3908_v15 }
 0x141   :  { %660 = vmatpush.bf16.msra.mxu2 %v3900_v13 }
 0x144   :  { %680 = vmatpush.bf16.msra.mxu3 %v3907_v21 }
 0x145   :  { %661 = vmatpush.bf16.msra.mxu2 %v3899_v18 }
 0x147   :  { %3474 = vmatmul.msk.bf16.gmra.mxu0 %vm157_vm0, %v264_v57  ;;  %3476 = vmatmul.msk.bf16.gmra.mxu1 %vm157_vm0, %v264_v57 }
 0x148   :  { %681 = vmatpush.bf16.msra.mxu3 %v3906_v27 }
 0x149   :  { %662 = vmatpush.bf16.msra.mxu2 %v3898_v26 }
 0x1b4   :  { %v333_v9 = vpop.f32.mrf.mxu0  ;;  %v352_v10 = vpop.f32.mrf.mxu1 }
 0x1b5   :  { %v4681_v11 = vadd.f32 %v333_v9, %v274_v4  ;;  %v4683_v12 = vadd.f32 %v352_v10, %v275_v6 }
 0x1b7   :  { %v3477_v16 = vmul.f32 -1.442695, %v4681_v11  ;;  %v3478_v17 = vmul.f32 -1.442695, %v4683_v12 }
 0x1b9   :  { %4024 = vpow2.f32 %v3477_v16 }
 0x1ba   :  { %4026 = vpow2.f32 %v3478_v17 }
 0x1bc   :  { %v335_v22 = vpop.f32.mrf.mxu0  ;;  %v354_v23 = vpop.f32.mrf.mxu1 }
 0x1bd   :  { %v4699_v24 = vadd.f32 %v335_v22, %v274_v4  ;;  %v4701_v25 = vadd.f32 %v354_v23, %v275_v6 }
 0x1bf   :  { %v4025_v28 = vpop.eup %4024  ;;  %v3479_v31 = vmul.f32 -1.442695, %v4699_v24  ;;  %v3480_v34 = vmul.f32 -1.442695, %v4701_v25 }
 0x1c0   :  { %v4027_v32 = vpop.eup %4026  ;;  %v386_v33 = vadd.f32 1.0, %v4025_v28 }
 0x1c1   :  { %v4711_v35 = vadd.f32 1.0, %v4027_v32  ;;  %4028 = vpow2.f32 %v3479_v31 }
 0x1c2   :  { %4030 = vrcp.f32 %v386_v33  ;;  %v403_v58 = vand.u32 2147483647, %v386_v33  ;;  %v405_v60 = vand.u32 2147483648, %v386_v33  ;;  %vm399_vm14 = vweird.f32 %v386_v33 }
 0x1c3   :  { %4032 = vrcp.f32 %v4711_v35  ;;  %v420_v61 = vand.u32 2147483648, %v4711_v35  ;;  %vm414_vm15 = vweird.f32 %v4711_v35 }
 0x1c4   :  { %4034 = vpow2.f32 %v3480_v34  ;;  %v338_v36 = vpop.f32.mrf.mxu0  ;;  %v357_v37 = vpop.f32.mrf.mxu1  ;;  %vm4756_vm2 = vcmp.eq.f32.partialorder %v403_v58, 8.507059e+37  ;;  %v406_v15 = vor.u32 1.1754944e-38, %v405_v60 }
 0x1c5   :  { %v4714_v38 = vadd.f32 %v338_v36, %v274_v4  ;;  %v4716_v39 = vadd.f32 %v357_v37, %v275_v6  ;;  %v421_v16 = vor.u32 1.1754944e-38, %v420_v61 }
 0x1c7   :  { %v4029_v40 = vpop.eup %4028  ;;  %v3481_v41 = vmul.f32 -1.442695, %v4714_v38  ;;  %v3482_v42 = vmul.f32 -1.442695, %v4716_v39 }
 0x1c8   :  { %v4720_v43 = vpop.eup %4030  ;;  %v4722_v44 = vadd.f32 1.0, %v4029_v40 }
 0x1c9   :  { %v4724_v45 = vpop.eup %4032  ;;  %v395_v46 = vmul.f32 %v4720_v43, %v386_v33  ;;  %4036 = vpow2.f32 %v3481_v41  ;;  %vm400_vm1 = vweird.f32 %v4720_v43 }
 0x1ca   :  { %v4035_v20 = vpop.eup %4034  ;;  %v410_v47 = vmul.f32 %v4724_v45, %v4711_v35  ;;  %4038 = vrcp.f32 %v4722_v44  ;;  %v433_v7 = vand.u32 2147483647, %v4722_v44  ;;  %v435_v10 = vand.u32 2147483648, %v4722_v44  ;;  %vm4763_vm3 = vmor %vm399_vm14, %vm400_vm1 }
 0x1cb   :  { %v396_v48 = vsub.f32 1.0, %v395_v46  ;;  %v4730_v49 = vadd.f32 1.0, %v4035_v20  ;;  %4040 = vpow2.f32 %v3482_v42  ;;  %vm415_vm4 = vweird.f32 %v4724_v45 }
 0x1cc   :  { %v340_v50 = vpop.f32.mrf.mxu0  ;;  %v359_v30 = vpop.f32.mrf.mxu1  ;;  %v411_v53 = vsub.f32 1.0, %v410_v47  ;;  %vm429_vm5 = vweird.f32 %v4722_v44  ;;  %vm4778_vm7 = vcmp.eq.f32.partialorder %v433_v7, 8.507059e+37  ;;  %v436_v33 = vor.u32 1.1754944e-38, %v435_v10  ;;  %vm4785_vm8 = vmor %vm414_vm15, %vm415_vm4 }
 0x1cd   :  { %4042 = vrcp.f32 %v4730_v49  ;;  %v4733_v51 = vadd.f32 %v340_v50, %v274_v4  ;;  %v4735_v52 = vadd.f32 %v359_v30, %v275_v6  ;;  %v397_v55 = vmul.f32 %v4720_v43, %v396_v48 }
 0x1ce   :  { %v412_v63 = vmul.f32 %v4724_v45, %v411_v53  ;;  %v418_v6 = vand.u32 2147483647, %v4711_v35  ;;  %v448_v34 = vand.u32 2147483647, %v4730_v49  ;;  %v450_v42 = vand.u32 2147483648, %v4730_v49 }
 0x1cf   :  { %v4037_v54 = vpop.eup %4036  ;;  %v3483_v56 = vmul.f32 -1.442695, %v4733_v51  ;;  %v3484_v19 = vmul.f32 -1.442695, %v4735_v52  ;;  %v398_v4 = vadd.f32 %v4720_v43, %v397_v55  ;;  %vm444_vm12 = vweird.f32 %v4730_v49 }
 0x1d0   :  { %v4039_v57 = vpop.eup %4038  ;;  %v4739_v59 = vadd.f32 1.0, %v4037_v54  ;;  %v413_v21 = vadd.f32 %v4724_v45, %v412_v63  ;;  %vm419_vm11 = vcmp.eq.f32.partialorder %v418_v6, 8.507059e+37  ;;  %v451_v58 = vor.u32 1.1754944e-38, %v450_v42 }
 0x1d1   :  { %v4041_v29 = vpop.eup %4040  ;;  %4044 = vpow2.f32 %v3483_v56  ;;  %v425_v62 = vmul.f32 %v4039_v57, %v4722_v44  ;;  %v402_v23 = vsel %vm4763_vm3, %v4720_v43, %v398_v4  ;;  %vm430_vm6 = vweird.f32 %v4039_v57 }
 0x1d2   :  { %4046 = vrcp.f32 %v4739_v59  ;;  %v4753_v8 = vadd.f32 1.0, %v4041_v29  ;;  %v407_v46 = vsel %vm4756_vm2, %v406_v15, %v402_v23  ;;  %v417_v35 = vsel %vm4785_vm8, %v4724_v45, %v413_v21  ;;  %vm431_vm9 = vmor %vm429_vm5, %vm430_vm6 }
 0x1d3   :  { %v4747_v3 = vpop.eup %4042  ;;  %4048 = vpow2.f32 %v3484_v19  ;;  %v426_v9 = vsub.f32 1.0, %v425_v62  ;;  %v514_v53 = vmul.f32 %v407_v46, %v4681_v11  ;;  %v422_v44 = vsel %vm419_vm11, %v421_v16, %v417_v35 }
 0x1d4   :  { %v440_v17 = vmul.f32 %v4747_v3, %v4730_v49  ;;  %4050 = vrcp.f32 %v4753_v8  ;;  %vm445_vm10 = vweird.f32 %v4747_v3  ;;  %v463_v56 = vand.u32 2147483647, %v4739_v59 }
 0x1d5   :  { %v427_v26 = vmul.f32 %v4039_v57, %v426_v9  ;;  %vm446_vm13 = vmor %vm444_vm12, %vm445_vm10  ;;  %v465_v49 = vand.u32 2147483648, %v4739_v59  ;;  %vm449_vm14 = vcmp.eq.f32.partialorder %v448_v34, 8.507059e+37  ;;  %v515_v62 = vmul.f32 %v422_v44, %v4683_v12 }
 0x1d6   :  { %v441_v27 = vsub.f32 1.0, %v440_v17  ;;  %vm459_vm1 = vweird.f32 %v4739_v59  ;;  %vm4829_vm2 = vcmp.eq.f32.partialorder %v463_v56, 8.507059e+37  ;;  %vm474_vm3 = vweird.f32 %v4753_v8 }
 0x1d7   :  { %v4045_v22 = vpop.eup %4044  ;;  %v428_v40 = vadd.f32 %v4039_v57, %v427_v26  ;;  %v466_v9 = vor.u32 1.1754944e-38, %v465_v49  ;;  %v480_v23 = vand.u32 2147483648, %v4753_v8 }
 0x1d8   :  { %v4774_v28 = vpop.eup %4046  ;;  %v4776_v31 = vadd.f32 1.0, %v4045_v22  ;;  %v442_v41 = vmul.f32 %v4747_v3, %v441_v27 }
 0x1d9   :  { %v455_v37 = vmul.f32 %v4774_v28, %v4739_v59  ;;  %v4049_v43 = vpop.eup %4048  ;;  %v432_v48 = vsel %vm431_vm9, %v4039_v57, %v428_v40  ;;  %vm460_vm15 = vweird.f32 %v4774_v28  ;;  %v481_v42 = vor.u32 1.1754944e-38, %v480_v23 }
 0x1da   :  { %4052 = vrcp.f32 %v4776_v31  ;;  %v4803_v47 = vadd.f32 1.0, %v4049_v43  ;;  %v443_v50 = vadd.f32 %v4747_v3, %v442_v41  ;;  %v4806_v30 = vpop.eup %4050  ;;  %v437_v45 = vsel %vm4778_vm7, %v436_v33, %v432_v48  ;;  %vm4836_vm4 = vmor %vm459_vm1, %vm460_vm15 }
 0x1db   :  { %v456_v20 = vsub.f32 1.0, %v455_v37  ;;  %v470_v54 = vmul.f32 %v4806_v30, %v4753_v8  ;;  %v516_v57 = vmul.f32 %v437_v45, %v4699_v24  ;;  %v495_v10 = vand.u32 2147483648, %v4776_v31 }
 0x1dc   :  { %4054 = vrcp.f32 %v4803_v47  ;;  %v447_v11 = vsel %vm446_vm13, %v4747_v3, %v443_v50  ;;  %v493_v17 = vand.u32 2147483647, %v4776_v31  ;;  %vm475_vm6 = vweird.f32 %v4806_v30 }
 0x1dd   :  { %v457_v55 = vmul.f32 %v4774_v28, %v456_v20  ;;  %v471_v19 = vsub.f32 1.0, %v470_v54  ;;  %v522_v60 = vpack.c.bf16 %v516_v57, %v514_v53  ;;  %v452_v61 = vsel %vm449_vm14, %v451_v58, %v447_v11  ;;  %vm4855_vm10 = vmor %vm474_vm3, %vm475_vm6 }
 0x1de   :  { %v517_v6 = vmul.f32 %v452_v61, %v4701_v25  ;;  %v478_v25 = vand.u32 2147483647, %v4753_v8  ;;  %vm489_vm7 = vweird.f32 %v4776_v31  ;;  %v510_v27 = vand.u32 2147483648, %v4803_v47 }
 0x1df   :  { %v458_v4 = vadd.f32 %v4774_v28, %v457_v55  ;;  %v472_v24 = vmul.f32 %v4806_v30, %v471_v19  ;;  %663 = vmatmul.bf16.vlgmr.msra.gmra.mxu2 %v522_v60  ;;  %v496_v32 = vor.u32 1.1754944e-38, %v495_v10  ;;  %v508_v34 = vand.u32 2147483647, %v4803_v47 }
 0x1e0   :  { %v4053_v29 = vpop.eup %4052  ;;  %v523_v15 = vpack.c.bf16 %v517_v6, %v515_v62  ;;  %vm494_vm11 = vcmp.eq.f32.partialorder %v493_v17, 8.507059e+37  ;;  %vm504_vm12 = vweird.f32 %v4803_v47  ;;  %v511_v46 = vor.u32 1.1754944e-38, %v510_v27 }
 0x1e1   :  { %v485_v63 = vmul.f32 %v4053_v29, %v4776_v31  ;;  %vm490_vm5 = vweird.f32 %v4053_v29  ;;  %v462_v18 = vsel %vm4836_vm4, %v4774_v28, %v458_v4  ;;  %v473_v21 = vadd.f32 %v4806_v30, %v472_v24 }
 0x1e2   :  { %v4055_v7 = vpop.eup %4054  ;;  %682 = vmatmul.bf16.vlgmr.msra.gmra.mxu3 %v523_v15  ;;  %vm491_vm8 = vmor %vm489_vm7, %vm490_vm5  ;;  %v467_v28 = vsel %vm4829_vm2, %v466_v9, %v462_v18  ;;  %vm479_vm14 = vcmp.eq.f32.partialorder %v478_v25, 8.507059e+37  ;;  %vm509_vm15 = vcmp.eq.f32.partialorder %v508_v34, 8.507059e+37 }
 0x1e3   :  { %v486_v12 = vsub.f32 1.0, %v485_v63  ;;  %v500_v13 = vmul.f32 %v4055_v7, %v4803_v47  ;;  %vm505_vm9 = vweird.f32 %v4055_v7  ;;  %v477_v31 = vsel %vm4855_vm10, %v4806_v30, %v473_v21  ;;  %v4000_v47 = vld [vmem:[#allocation10 + $0x2] ss:$0 sm:$0xff] }
 0x1e4   :  { %vm506_vm13 = vmor %vm504_vm12, %vm505_vm9  ;;  %v518_v8 = vmul.f32 %v467_v28, %v4714_v38  ;;  %v482_v20 = vsel %vm479_vm14, %v481_v42, %v477_v31  ;;  %v3917_v31 = vld [vmem:[%s6122_s7 + $0x18] sm:$0xff]  ;;  %vm1443_vm14 = vcmask 261248  }
 0x1e5   :  { %v487_v59 = vmul.f32 %v4053_v29, %v486_v12  ;;  %v501_v22 = vsub.f32 1.0, %v500_v13  ;;  %v519_v30 = vmul.f32 %v482_v20, %v4716_v39  ;;  %v3929_v42 = vld [vmem:[%s6122_s7 + $0x78] sm:$0xff]  ;;  %845 = vmatpush.bf16.msrb.mxu0 %v3917_v31  ;;  %v3930_v31 = vld [vmem:[%s6122_s7 + $0x80] sm:$0xff] }
 0x1e6   :  { %1001 = vmatpush.bf16.msrb.mxu3 %v3929_v42 }
 0x1e7   :  { %v488_v26 = vadd.f32 %v4053_v29, %v487_v59  ;;  %v502_v33 = vmul.f32 %v4055_v7, %v501_v22 }
 0x1e9   :  { %v492_v37 = vsel %vm491_vm8, %v4053_v29, %v488_v26  ;;  %v503_v41 = vadd.f32 %v4055_v7, %v502_v33 }
 0x1ea   :  { %v497_v40 = vsel %vm494_vm11, %v496_v32, %v492_v37 }
 0x1eb   :  { %v520_v43 = vmul.f32 %v497_v40, %v4733_v51  ;;  %v507_v35 = vsel %vm506_vm13, %v4055_v7, %v503_v41  ;;  %v3921_v40 = vld [vmem:[%s6122_s7 + $0x38] sm:$0xff]  ;;  %vm1122_vm13 = vcmask 130048  }
 0x1ec   :  { %v512_v48 = vsel %vm509_vm15, %v511_v46, %v507_v35  ;;  %v3925_v41 = vld [vmem:[%s6122_s7 + $0x58] sm:$0xff]  ;;  %897 = vmatpush.bf16.msrb.mxu1 %v3921_v40  ;;  %v3916_v46 = vld [vmem:[%s6122_s7 + $0x10] sm:$0xff]  ;;  %vm1610_vm15 = vcmask 392448  }
 0x1ed   :  { %v521_v50 = vmul.f32 %v512_v48, %v4735_v52  ;;  %v524_v45 = vpack.c.bf16 %v520_v43, %v518_v8  ;;  %949 = vmatpush.bf16.msrb.mxu2 %v3925_v41  ;;  %v3920_v8 = vld [vmem:[%s6122_s7 + $0x30] sm:$0xff]  ;;  %846 = vmatpush.bf16.msrb.mxu0 %v3916_v46 }
 0x1ee   :  { %v3924_v35 = vld [vmem:[%s6122_s7 + $0x50] sm:$0xff] }
 0x1ef   :  { %668 = vmatmul.bf16.gmra.mxu2 %v524_v45  ;;  %v525_v53 = vpack.c.bf16 %v521_v50, %v519_v30  ;;  %v3928_v48 = vld [vmem:[%s6122_s7 + $0x70] sm:$0xff]  ;;  %v3915_v45 = vld [vmem:[%s6122_s7 + $0x8] sm:$0xff] }
 0x1f0   :  { %898 = vmatpush.bf16.msrb.mxu1 %v3920_v8  ;;  %1002 = vmatpush.bf16.msrb.mxu3 %v3928_v48  ;;  %v3919_v30 = vld [vmem:[%s6122_s7 + $0x28] sm:$0xff] }
 0x1f1   :  { %950 = vmatpush.bf16.msrb.mxu2 %v3924_v35  ;;  %847 = vmatpush.bf16.msrb.mxu0 %v3915_v45 }
 0x1f2   :  { %687 = vmatmul.bf16.gmra.mxu3 %v525_v53  ;;  %v3923_v53 = vld [vmem:[%s6122_s7 + $0x48] sm:$0xff] }
 0x1f4   :  { %899 = vmatpush.bf16.msrb.mxu1 %v3919_v30 }
 0x1f5   :  { %951 = vmatpush.bf16.msrb.mxu2 %v3923_v53 }
 0x262   :  { %v664_v44 = vpop.f32.mrf.mxu2 }
 0x263   :  { %v665_v51 = vadd.f32 %v4000_v47, %v664_v44 }
 0x265   :  { %v683_v54 = vpop.f32.mrf.mxu3 }
 0x266   :  { %v684_v55 = vadd.f32 %v683_v54, %v665_v51  ;;  %v3914_v51 = vld [vmem:[%s6122_s7] sm:$0xff] }
 0x267   :  { %v3918_v54 = vld [vmem:[%s6122_s7 + $0x20] sm:$0xff]  ;;  %848 = vmatpush.bf16.msrb.mxu0 %v3914_v51 }
 0x268   :  { %v693_v56 = vmul.f32 0.5, %v684_v55  ;;  %v3922_v55 = vld [vmem:[%s6122_s7 + $0x40] sm:$0xff]  ;;  %900 = vmatpush.bf16.msrb.mxu1 %v3918_v54 }
 0x269   :  { %952 = vmatpush.bf16.msrb.mxu2 %v3922_v55 }
 0x26a   :  { %v666_v38 = vpop.f32.mrf.mxu2  ;;  %v4868_v57 = vadd.f32 %v693_v56, %v4544_v1 }
 0x26b   :  { %v667_v58 = vadd.f32 %v4000_v47, %v666_v38  ;;  %v3926_v38 = vld [vmem:[%s6122_s7 + $0x60] sm:$0xff] }
 0x26c   :  { %v703_v52 = vsel %vm157_vm0, %v4868_v57, 0.0 }
 0x26d   :  { %v685_v49 = vpop.f32.mrf.mxu3  ;;  %704 = vadd.xlane.f32.xlu2 %v703_v52 }
 0x26e   :  { %v686_v39 = vadd.f32 %v685_v49, %v667_v58 }
 0x270   :  { %v694_v19 = vmul.f32 0.5, %v686_v39 }
 0x272   :  { %v669_v11 = vpop.f32.mrf.mxu2  ;;  %v4873_v29 = vadd.f32 %v694_v19, %v4552_v5 }
 0x273   :  { %v670_v60 = vadd.f32 %v4000_v47, %v669_v11 }
 0x274   :  { %v706_v61 = vsel %vm157_vm0, %v4873_v29, 0.0 }
 0x275   :  { %v688_v62 = vpop.f32.mrf.mxu3  ;;  %707 = vadd.xlane.f32.xlu0 %v706_v61 }
 0x276   :  { %v689_v1 = vadd.f32 %v688_v62, %v670_v60 }
 0x278   :  { %v695_v63 = vmul.f32 0.5, %v689_v1 }
 0x27a   :  { %v671_v4 = vpop.f32.mrf.mxu2  ;;  %v4878_v24 = vadd.f32 %v695_v63, %v4542_v0 }
 0x27b   :  { %v672_v6 = vadd.f32 %v4000_v47, %v671_v4  ;;  %v3927_v47 = vld [vmem:[%s6122_s7 + $0x68] sm:$0xff] }
 0x27c   :  { %v709_v7 = vsel %vm157_vm0, %v4878_v24, 0.0  ;;  %1003 = vmatpush.bf16.msrb.mxu3 %v3927_v47 }
 0x27d   :  { %v690_v3 = vpop.f32.mrf.mxu3  ;;  %710 = vadd.xlane.f32.xlu1 %v709_v7 }
 0x27e   :  { %v691_v5 = vadd.f32 %v690_v3, %v672_v6 }
 0x280   :  { %v696_v9 = vmul.f32 0.5, %v691_v5  ;;  %1004 = vmatpush.bf16.msrb.mxu3 %v3926_v38 }
 0x282   :  { %v4883_v12 = vadd.f32 %v696_v9, %v4546_v2  ;;  %v3933_v9 = vld [vmem:[%s6122_s7 + $0x98] sm:$0xff] }
 0x283   :  { %1053 = vmatpush.bf16.msra.mxu0 %v3933_v9 }
 0x284   :  { %v712_v10 = vsel %vm157_vm0, %v4883_v12, 0.0 }
 0x285   :  { %713 = vadd.xlane.f32.xlu2 %v712_v10 }
 0x2e0   :  { %v705_v13 = vpop.xlane.xlu2 %704 }
 0x2e1   :  { %v715_v15 = vmul.f32 %v705_v13, %v4558_v14 }
 0x2e3   :  { %v4889_v0 = vsub.f32 %v4868_v57, %v715_v15  ;;  %v3932_v15 = vld [vmem:[%s6122_s7 + $0x90] sm:$0xff] }
 0x2e4   :  { %1054 = vmatpush.bf16.msra.mxu0 %v3932_v15 }
 0x2e5   :  { %v723_v16 = vmul.f32 %v4889_v0, %v4889_v0 }
 0x2e7   :  { %v727_v25 = vsel %vm157_vm0, %v723_v16, 0.0 }
 0x2e8   :  { %728 = vadd.xlane.f32.xlu0 %v727_v25  ;;  %v708_v59 = vpop.xlane.xlu0 %707  ;;  %v4001_v25 = vld [vmem:[#allocation10 + $0x3] ss:$0 sm:$0xff] }
 0x2e9   :  { %v716_v2 = vmul.f32 %v708_v59, %v4558_v14 }
 0x2eb   :  { %v4896_v17 = vsub.f32 %v4873_v29, %v716_v2 }
 0x2ed   :  { %v724_v18 = vmul.f32 %v4896_v17, %v4896_v17 }
 0x2ef   :  { %v730_v21 = vsel %vm157_vm0, %v724_v18, 0.0 }
 0x2f0   :  { %v711_v22 = vpop.xlane.xlu1 %710  ;;  %731 = vadd.xlane.f32.xlu1 %v730_v21 }
 0x2f1   :  { %v717_v23 = vmul.f32 %v711_v22, %v4558_v14 }
 0x2f3   :  { %v4903_v26 = vsub.f32 %v4878_v24, %v717_v23 }
 0x2f5   :  { %v725_v27 = vmul.f32 %v4903_v26, %v4903_v26 }
 0x2f7   :  { %v733_v32 = vsel %vm157_vm0, %v725_v27, 0.0  ;;  %v3931_v27 = vld [vmem:[%s6122_s7 + $0x88] sm:$0xff]  ;;  %s4415_s7 = smov 112  }
 0x2f8   :  { %v714_v33 = vpop.xlane.xlu2 %713  ;;  %734 = vadd.xlane.f32.xlu2 %v733_v32  ;;  %v4002_v32 = vld [vmem:[#allocation10 + $0x4] ss:$0 sm:$0xff]  ;;  %1055 = vmatpush.bf16.msra.mxu0 %v3931_v27 }
 0x2f9   :  { %v718_v34 = vmul.f32 %v714_v33, %v4558_v14 }
 0x2fb   :  { %v4910_v28 = vsub.f32 %v4883_v12, %v718_v34 }
 0x2fc   :  { %1056 = vmatpush.bf16.msra.mxu0 %v3930_v31  ;;  %v1071_v31 = vld [vmem:[#allocation7 + $0x18] sm:$0xff] }
 0x2fd   :  { %v726_v36 = vmul.f32 %v4910_v28, %v4910_v28 }
 0x2ff   :  { %v736_v37 = vsel %vm157_vm0, %v726_v36, 0.0 }
 0x300   :  { %737 = vadd.xlane.f32.xlu0 %v736_v37 }
 0x35b   :  { %v729_v43 = vpop.xlane.xlu0 %728 }
 0x35c   :  { %v739_v20 = vmul.f32 %v729_v43, %v4558_v14 }
 0x35e   :  { %v743_v50 = vadd.f32 1e-05, %v739_v20 }
 0x360   :  { %4056 = vrsqrt.f32 %v743_v50  ;;  %vm753_vm2 = vweird.f32 %v743_v50 }
 0x363   :  { %v732_v44 = vpop.xlane.xlu1 %731 }
 0x364   :  { %v740_v56 = vmul.f32 %v732_v44, %v4558_v14 }
 0x366   :  { %v4057_v58 = vpop.eup %4056  ;;  %v744_v52 = vadd.f32 1e-05, %v740_v56  ;;  %v1068_v56 = vld [vmem:[#allocation7] sm:$0xff] }
 0x367   :  { %v748_v49 = vmul.f32 %v4057_v58, %v743_v50  ;;  %vm754_vm1 = vweird.f32 %v4057_v58 }
 0x368   :  { %4058 = vrsqrt.f32 %v744_v52  ;;  %vm755_vm3 = vmor %vm753_vm2, %vm754_vm1  ;;  %vm763_vm5 = vweird.f32 %v744_v52  ;;  %vm1777_vm1 = vcmask 523648  }
 0x369   :  { %v749_v39 = vmul.f32 %v4057_v58, %v748_v49  ;;  %v1069_v49 = vld [vmem:[#allocation7 + $0x8] sm:$0xff] }
 0x36b   :  { %v750_v19 = vmul.f32 0.5, %v749_v39  ;;  %v735_v11 = vpop.xlane.xlu2 %734  ;;  %v1073_v39 = vld [vmem:[#allocation9 + $0x8] sm:$0xff] }
 0x36c   :  { %v741_v60 = vmul.f32 %v735_v11, %v4558_v14 }
 0x36d   :  { %v751_v61 = vsub.f32 1.5, %v750_v19 }
 0x36e   :  { %v4059_v62 = vpop.eup %4058  ;;  %v745_v1 = vadd.f32 1e-05, %v741_v60 }
 0x36f   :  { %v752_v63 = vmul.f32 %v4057_v58, %v751_v61  ;;  %v758_v4 = vmul.f32 %v4059_v62, %v744_v52  ;;  %vm764_vm4 = vweird.f32 %v4059_v62 }
 0x370   :  { %4060 = vrsqrt.f32 %v745_v1  ;;  %vm765_vm6 = vmor %vm763_vm5, %vm764_vm4  ;;  %vm773_vm8 = vweird.f32 %v745_v1 }
 0x371   :  { %v759_v6 = vmul.f32 %v4059_v62, %v758_v4  ;;  %v756_v7 = vsel %vm755_vm3, %v4057_v58, %v752_v63 }
 0x372   :  { %v787_v59 = vmul.f32 %v756_v7, %v4889_v0 }
 0x373   :  { %v760_v3 = vmul.f32 0.5, %v759_v6  ;;  %v738_v5 = vpop.xlane.xlu0 %737 }
 0x374   :  { %v742_v10 = vmul.f32 %v738_v5, %v4558_v14  ;;  %v792_v33 = vmul.f32 %v4001_v25, %v787_v59 }
 0x375   :  { %v761_v13 = vsub.f32 1.5, %v760_v3 }
 0x376   :  { %v4061_v16 = vpop.eup %4060  ;;  %v746_v2 = vadd.f32 1e-05, %v742_v10  ;;  %v797_v41 = vadd.f32 %v4002_v32, %v792_v33 }
 0x377   :  { %v762_v18 = vmul.f32 %v4059_v62, %v761_v13  ;;  %v768_v21 = vmul.f32 %v4061_v16, %v745_v1  ;;  %vm774_vm7 = vweird.f32 %v4061_v16 }
 0x378   :  { %4062 = vrsqrt.f32 %v746_v2  ;;  %vm775_vm9 = vmor %vm773_vm8, %vm774_vm7  ;;  %vm783_vm11 = vweird.f32 %v746_v2 }
 0x379   :  { %v766_v22 = vsel %vm765_vm6, %v4059_v62, %v762_v18  ;;  %v769_v23 = vmul.f32 %v4061_v16, %v768_v21  ;;  %v1070_v18 = vld [vmem:[#allocation7 + $0x10] sm:$0xff] }
 0x37a   :  { %v788_v34 = vmul.f32 %v766_v22, %v4896_v17  ;;  %v1074_v22 = vld [vmem:[#allocation9 + $0x10] sm:$0xff] }
 0x37b   :  { %v770_v36 = vmul.f32 0.5, %v769_v23 }
 0x37c   :  { %v793_v37 = vmul.f32 %v4001_v25, %v788_v34 }
 0x37d   :  { %v771_v0 = vsub.f32 1.5, %v770_v36 }
 0x37e   :  { %v4063_v40 = vpop.eup %4062  ;;  %v798_v42 = vadd.f32 %v4002_v32, %v793_v37 }
 0x37f   :  { %v772_v43 = vmul.f32 %v4061_v16, %v771_v0  ;;  %v778_v46 = vmul.f32 %v4063_v40, %v746_v2  ;;  %vm784_vm10 = vweird.f32 %v4063_v40 }
 0x380   :  { %v801_v8 = vpack.c.bf16 %v798_v42, %v797_v41  ;;  %vm785_vm12 = vmor %vm783_vm11, %vm784_vm10 }
 0x381   :  { %v779_v35 = vmul.f32 %v4063_v40, %v778_v46  ;;  %v776_v17 = vsel %vm775_vm9, %v4061_v16, %v772_v43 }
 0x382   :  { %3565 = vmatmul.msk.bf16.vlgmr.msrb.gmra.mxu0 %vm157_vm0, %v801_v8  ;;  %3591 = vmatmul.msk.bf16.vlgmr.msrb.gmra.mxu1 %vm157_vm0, %v801_v8  ;;  %v789_v50 = vmul.f32 %v776_v17, %v4903_v26 }
 0x383   :  { %v780_v20 = vmul.f32 0.5, %v779_v35  ;;  %3617 = vmatmul.msk.bf16.vlgmr.msrb.gmra.mxu2 %vm157_vm0, %v801_v8  ;;  %3643 = vmatmul.msk.bf16.vlgmr.msrb.gmra.mxu3 %vm157_vm0, %v801_v8 }
 0x384   :  { %v794_v53 = vmul.f32 %v4001_v25, %v789_v50 }
 0x385   :  { %v781_v48 = vsub.f32 1.5, %v780_v20 }
 0x386   :  { %v799_v51 = vadd.f32 %v4002_v32, %v794_v53 }
 0x387   :  { %v782_v45 = vmul.f32 %v4063_v40, %v781_v48 }
 0x389   :  { %v786_v30 = vsel %vm785_vm12, %v4063_v40, %v782_v45  ;;  %v1075_v40 = vld [vmem:[#allocation9 + $0x18] sm:$0xff] }
 0x38a   :  { %v790_v47 = vmul.f32 %v786_v30, %v4910_v28  ;;  %v1072_v28 = vld [vmem:[#allocation9] sm:$0xff] }
 0x38c   :  { %v795_v44 = vmul.f32 %v4001_v25, %v790_v47 }
 0x38e   :  { %v800_v54 = vadd.f32 %v4002_v32, %v795_v44 }
 0x390   :  { %v802_v55 = vpack.c.bf16 %v800_v54, %v799_v51 }
 0x392   :  { %3566 = vmatmul.msk.bf16.gmra.mxu0 %vm157_vm0, %v802_v55  ;;  %3592 = vmatmul.msk.bf16.gmra.mxu1 %vm157_vm0, %v802_v55 }
 0x393   :  { %3618 = vmatmul.msk.bf16.gmra.mxu2 %vm157_vm0, %v802_v55  ;;  %3644 = vmatmul.msk.bf16.gmra.mxu3 %vm157_vm0, %v802_v55 }
 0x3a2   :  { %3669 = vmatmul.msk.bf16.vlgmr.msra.gmra.mxu0 %vm157_vm0, %v801_v8 }
 0x3b2   :  { %3670 = vmatmul.msk.bf16.gmra.mxu0 %vm157_vm0, %v802_v55 }
 0x3ff   :  { %v850_v26 = vpop.f32.mrf.mxu0  ;;  %v902_v38 = vpop.f32.mrf.mxu1 }
 0x400   :  { %v1076_v58 = vmul.f32 %v1068_v56, %v850_v26  ;;  %v1080_v52 = vmul.f32 %v1072_v28, %v902_v38 }
 0x402   :  { %v1084_v19 = vadd.f32 %v1080_v52, %v1076_v58 }
 0x404   :  { %v1100_v7 = vpack.c.bf16 %v1084_v19, %v1084_v19 }
 0x406   :  { %v954_v11 = vpop.f32.mrf.mxu2  ;;  %v1006_v60 = vpop.f32.mrf.mxu3  ;;  %v1114_v10 = vunpack.c.l.b16 %v1100_v7 }
 0x407   :  { %v852_v61 = vpop.f32.mrf.mxu0  ;;  %v904_v62 = vpop.f32.mrf.mxu1  ;;  %v1088_v4 = vmul.f32 %v1068_v56, %v954_v11  ;;  %v1092_v6 = vmul.f32 %v1072_v28, %v1006_v60 }
 0x408   :  { %v1077_v1 = vmul.f32 %v1069_v49, %v852_v61  ;;  %v1081_v63 = vmul.f32 %v1073_v39, %v904_v62 }
 0x409   :  { %v1096_v9 = vadd.f32 %v1092_v6, %v1088_v4 }
 0x40a   :  { %v1085_v3 = vadd.f32 %v1081_v63, %v1077_v1 }
 0x40b   :  { %v1104_v27 = vpack.c.bf16 %v1096_v9, %v1096_v9 }
 0x40c   :  { %v1101_v5 = vpack.c.bf16 %v1085_v3, %v1085_v3 }
 0x40d   :  { %v1119_v37 = vunpack.c.l.b16 %v1104_v27 }
 0x40e   :  { %v1115_v13 = vunpack.c.l.b16 %v1101_v5  ;;  %v956_v15 = vpop.f32.mrf.mxu2  ;;  %v1008_v16 = vpop.f32.mrf.mxu3 }
 0x40f   :  { %v1089_v25 = vmul.f32 %v1069_v49, %v956_v15  ;;  %v1093_v59 = vmul.f32 %v1073_v39, %v1008_v16  ;;  %v855_v2 = vpop.f32.mrf.mxu0  ;;  %v907_v21 = vpop.f32.mrf.mxu1 }
 0x410   :  { %v1116_v23 = vpack.c.b16 %v1115_v13, %v1114_v10  ;;  %v1078_v33 = vmul.f32 %v1070_v18, %v855_v2  ;;  %v1082_v34 = vmul.f32 %v1074_v22, %v907_v21 }
 0x411   :  { %v1097_v32 = vadd.f32 %v1093_v59, %v1089_v25 }
 0x412   :  { %1281 = vrot.lane.b32.xlu2 %v1116_v23, %s4415_s7  ;;  %v1086_v41 = vadd.f32 %v1082_v34, %v1078_v33 }
 0x413   :  { %v1105_v36 = vpack.c.bf16 %v1097_v32, %v1097_v32 }
 0x414   :  { %v1102_v30 = vpack.c.bf16 %v1086_v41, %v1086_v41 }
 0x415   :  { %v1120_v0 = vunpack.c.l.b16 %v1105_v36 }
 0x416   :  { %v959_v42 = vpop.f32.mrf.mxu2  ;;  %v1011_v43 = vpop.f32.mrf.mxu3  ;;  %v1145_v51 = vunpack.c.l.b16 %v1102_v30 }
 0x417   :  { %v1121_v46 = vpack.c.b16 %v1120_v0, %v1119_v37  ;;  %v857_v8 = vpop.f32.mrf.mxu0  ;;  %v909_v35 = vpop.f32.mrf.mxu1  ;;  %v1090_v48 = vmul.f32 %v1070_v18, %v959_v42  ;;  %v1094_v50 = vmul.f32 %v1074_v22, %v1011_v43 }
 0x418   :  { %v1079_v17 = vmul.f32 %v1071_v31, %v857_v8  ;;  %v1083_v20 = vmul.f32 %v1075_v40, %v909_v35 }
 0x419   :  { %1283 = vrot.lane.b32.xlu1 %v1121_v46, %s4415_s7  ;;  %v1127_v45 = vsel %vm1122_vm13, %v1121_v46, 0  ;;  %v1098_v44 = vadd.f32 %v1094_v50, %v1090_v48 }
 0x41a   :  { %v1087_v53 = vadd.f32 %v1083_v20, %v1079_v17  ;;  %1136 = vmatpush.bf16.xpose.msra.mxu1 %v1127_v45  ;;  %1450 = vrot.lane.b32.xlu2 %v1121_v46, %s4416_s10 }
 0x41b   :  { %v1106_v52 = vpack.c.bf16 %v1098_v44, %v1098_v44 }
 0x41c   :  { %v1103_v47 = vpack.c.bf16 %v1087_v53, %v1087_v53 }
 0x41d   :  { %v1150_v19 = vunpack.c.l.b16 %v1106_v52 }
 0x41e   :  { %v1146_v54 = vunpack.c.l.b16 %v1103_v47  ;;  %v961_v55 = vpop.f32.mrf.mxu2  ;;  %v1013_v26 = vpop.f32.mrf.mxu3 }
 0x41f   :  { %v1091_v56 = vmul.f32 %v1071_v31, %v961_v55  ;;  %v1095_v38 = vmul.f32 %v1075_v40, %v1013_v26  ;;  %v1058_v28 = vpop.f32.mrf.mxu0 }
 0x420   :  { %v1147_v58 = vpack.c.b16 %v1146_v54, %v1145_v51  ;;  %v1108_v60 = vpack.c.bf16 %v1058_v28, %v1058_v28 }
 0x421   :  { %v1099_v49 = vadd.f32 %v1095_v38, %v1091_v56  ;;  %3671 = vmatmul.msk.bf16.vlgmr.msra.gmra.mxu1 %vm1122_vm13, %v1116_v23 }
 0x422   :  { %1305 = vrot.lane.b32.xlu1 %v1147_v58, %s4415_s7  ;;  %v1228_v4 = vunpack.c.l.b16 %v1108_v60 }
 0x423   :  { %v1107_v39 = vpack.c.bf16 %v1099_v49, %v1099_v49 }
 0x425   :  { %v1151_v11 = vunpack.c.l.b16 %v1107_v39 }
 0x427   :  { %v1152_v61 = vpack.c.b16 %v1151_v11, %v1150_v19  ;;  %v1060_v62 = vpop.f32.mrf.mxu0 }
 0x428   :  { %v1109_v1 = vpack.c.bf16 %v1060_v62, %v1060_v62 }
 0x429   :  { %1474 = vrot.lane.b32.xlu2 %v1152_v61, %s4416_s10  ;;  %1307 = vrot.lane.b32.xlu0 %v1152_v61, %s4415_s7  ;;  %v1157_v63 = vsel %vm1122_vm13, %v1152_v61, 0 }
 0x42a   :  { %v1229_v6 = vunpack.c.l.b16 %v1109_v1  ;;  %1166 = vmatpush.bf16.xpose.msrb.mxu1 %v1157_v63  ;;  %1617 = vrot.lane.b32.xlu1 %v1121_v46, %s4417_s28 }
 0x42c   :  { %v5003_v7 = vpack.c.b16 %v1229_v6, %v1228_v4 }
 0x42e   :  { %1242 = vmatpush.bf16.msra.mxu2 %v5003_v7 }
 0x42f   :  { %v1063_v3 = vpop.f32.mrf.mxu0 }
 0x430   :  { %v1110_v5 = vpack.c.bf16 %v1063_v3, %v1063_v3 }
 0x431   :  { %1615 = vrot.lane.b32.xlu2 %v1116_v23, %s4417_s28  ;;  %1448 = vrot.lane.b32.xlu0 %v1116_v23, %s4416_s10 }
 0x432   :  { %3672 = vmatmul.msk.bf16.vlgmr.msrb.gmra.mxu1 %vm1122_vm13, %v1147_v58  ;;  %1641 = vrot.lane.b32.xlu1 %v1152_v61, %s4417_s28  ;;  %v1256_v13 = vunpack.c.l.b16 %v1110_v5 }
 0x437   :  { %v1065_v9 = vpop.f32.mrf.mxu0 }
 0x438   :  { %v1111_v10 = vpack.c.bf16 %v1065_v9, %v1065_v9 }
 0x439   :  { %1472 = vrot.lane.b32.xlu0 %v1147_v58, %s4416_s10 }
 0x43a   :  { %v1257_v15 = vunpack.c.l.b16 %v1111_v10  ;;  %1382 = vrot.lane.b32.xlu1 %v5003_v7, %s4415_s7 }
 0x43c   :  { %v5013_v16 = vpack.c.b16 %v1257_v15, %v1256_v13 }
 0x43e   :  { %1270 = vmatpush.bf16.msra.mxu3 %v5013_v16 }
 0x441   :  { %1639 = vrot.lane.b32.xlu0 %v1147_v58, %s4417_s28 }
 0x449   :  { %1407 = vrot.lane.b32.xlu0 %v5013_v16, %s4415_s7 }
 0x46c   :  { %v1282_v25 = vpop.permute.xlu2 %1281 }
 0x474   :  { %v1451_v59 = vpop.permute.xlu2 %1450 }
 0x475   :  { %v1456_v21 = vsel %vm1122_vm13, %v1451_v59, 0 }
 0x483   :  { %v1475_v23 = vpop.permute.xlu2 %1474 }
 0x484   :  { %v1480_v34 = vsel %vm1122_vm13, %v1475_v23, 0 }
 0x48b   :  { %v1284_v2 = vpop.permute.xlu1 %1283  ;;  %v1616_v20 = vpop.permute.xlu2 %1615 }
 0x48c   :  { %v1289_v18 = vsel %vm1122_vm13, %v1284_v2, 0 }
 0x48d   :  { %1298 = vmatpush.bf16.xpose.msrb.mxu0 %v1289_v18 }
 0x494   :  { %3675 = vmatmul.msk.bf16.vlgmr.msrb.gmra.mxu0 %vm1122_vm13, %v1282_v25  ;;  %v1306_v22 = vpop.permute.xlu1 %1305 }
 0x495   :  { %1465 = vmatpush.bf16.xpose.msra.mxu0 %v1456_v21 }
 0x49b   :  { %v1308_v27 = vpop.permute.xlu0 %1307 }
 0x49c   :  { %v1313_v32 = vsel %vm1122_vm13, %v1308_v27, 0  ;;  %v1618_v33 = vpop.permute.xlu1 %1617 }
 0x49d   :  { %1322 = vmatpush.bf16.xpose.msra.mxu1 %v1313_v32  ;;  %v1623_v36 = vsel %vm1122_vm13, %v1618_v33, 0 }
 0x49e   :  { %v1138_v37 = vpop.f32.mrf.mxu1  ;;  %1632 = vmatpush.bf16.xpose.msrb.mxu0 %v1623_v36 }
 0x49f   :  { %v1173_v0 = vsel %vm1122_vm13, %v1138_v37, -inf }
 0x4a0   :  { %1174 = vmax.xlane.f32.xlu2 %v1173_v0 }
 0x4a3   :  { %v1449_v31 = vpop.permute.xlu0 %1448 }
 0x4a4   :  { %3676 = vmatmul.msk.bf16.vlgmr.msra.gmra.mxu1 %vm1122_vm13, %v1306_v22  ;;  %3679 = vmatmul.msk.bf16.vlgmr.msra.gmra.mxu0 %vm1122_vm13, %v1449_v31  ;;  %v1642_v40 = vpop.permute.xlu1 %1641 }
 0x4a5   :  { %1489 = vmatpush.bf16.xpose.msrb.mxu1 %v1480_v34  ;;  %v1647_v41 = vsel %vm1122_vm13, %v1642_v40, 0 }
 0x4a6   :  { %v1140_v42 = vpop.f32.mrf.mxu1 }
 0x4a7   :  { %v1176_v43 = vsel %vm1122_vm13, %v1140_v42, -inf }
 0x4a8   :  { %1177 = vmax.xlane.f32.xlu1 %v1176_v43 }
 0x4ab   :  { %v1473_v46 = vpop.permute.xlu0 %1472 }
 0x4ac   :  { %v1383_v8 = vpop.permute.xlu1 %1382 }
 0x4ad   :  { %1656 = vmatpush.bf16.xpose.msra.mxu1 %v1647_v41  ;;  %1395 = vmatpush.bf16.msrb.mxu2 %v1383_v8 }
 0x4af   :  { %v1168_v35 = vpop.f32.mrf.mxu1 }
 0x4b0   :  { %v1179_v17 = vsel %vm1122_vm13, %v1168_v35, -inf }
 0x4b1   :  { %1180 = vmax.xlane.f32.xlu0 %v1179_v17 }
 0x4b3   :  { %v1640_v48 = vpop.permute.xlu0 %1639 }
 0x4b4   :  { %3680 = vmatmul.msk.bf16.vlgmr.msrb.gmra.mxu1 %vm1122_vm13, %v1473_v46  ;;  %3683 = vmatmul.msk.bf16.vlgmr.msrb.gmra.mxu0 %vm1122_vm13, %v1616_v20 }
 0x4b7   :  { %v1170_v50 = vpop.f32.mrf.mxu1 }
 0x4b8   :  { %v1182_v45 = vsel %vm1122_vm13, %v1170_v50, -inf }
 0x4b9   :  { %1183 = vmax.xlane.f32.xlu2 %v1182_v45 }
 0x4bb   :  { %v1408_v30 = vpop.permute.xlu0 %1407 }
 0x4bc   :  { %1420 = vmatpush.bf16.msrb.mxu3 %v1408_v30 }
 0x4c4   :  { %3684 = vmatmul.msk.bf16.vlgmr.msra.gmra.mxu1 %vm1122_vm13, %v1640_v48 }
 0x511   :  { %v5035_v53 = vpop.f32.mrf.mxu0 }
 0x512   :  { %v1329_v47 = vsel %vm1122_vm13, %v5035_v53, -inf }
 0x513   :  { %v1175_v44 = vpop.xlane.xlu2 %1174  ;;  %1330 = vmax.xlane.f32.xlu1 %v1329_v47 }
 0x514   :  { %v1185_v51 = vsub.f32 %v1138_v37, %v1175_v44 }
 0x516   :  { %v1189_v54 = vmul.f32 1.442695, %v1185_v51 }
 0x518   :  { %4064 = vpow2.f32 %v1189_v54 }
 0x519   :  { %v5039_v55 = vpop.f32.mrf.mxu0 }
 0x51a   :  { %v1332_v26 = vsel %vm1122_vm13, %v5039_v55, -inf }
 0x51b   :  { %v1178_v56 = vpop.xlane.xlu1 %1177  ;;  %1333 = vmax.xlane.f32.xlu0 %v1332_v26 }
 0x51c   :  { %v1186_v38 = vsub.f32 %v1140_v42, %v1178_v56 }
 0x51e   :  { %v1191_v28 = vmul.f32 1.442695, %v1186_v38  ;;  %v5043_v58 = vpop.eup %4064 }
 0x51f   :  { %v1197_v19 = vsel %vm1122_vm13, %v5043_v58, 0.0 }
 0x520   :  { %4066 = vpow2.f32 %v1191_v28 }
 0x521   :  { %v5045_v52 = vpop.f32.mrf.mxu1  ;;  %v5047_v49 = vpop.f32.mrf.mxu0 }
 0x522   :  { %v1335_v39 = vsel %vm1122_vm13, %v5045_v52, -inf  ;;  %v1496_v6 = vsel %vm1122_vm13, %v5047_v49, -inf }
 0x523   :  { %1336 = vmax.xlane.f32.xlu2 %v1335_v39  ;;  %1198 = vadd.xlane.f32.xlu0 %v1197_v19 }
 0x524   :  { %v1181_v60 = vpop.xlane.xlu0 %1180 }
 0x525   :  { %v1187_v62 = vsub.f32 %v1168_v35, %v1181_v60 }
 0x526   :  { %v5053_v11 = vpop.eup %4066 }
 0x527   :  { %v1200_v1 = vsel %vm1122_vm13, %v5053_v11, 0.0  ;;  %v1193_v9 = vmul.f32 1.442695, %v1187_v62 }
 0x529   :  { %v5055_v61 = vpop.f32.mrf.mxu1  ;;  %v5061_v4 = vpop.f32.mrf.mxu0 }
 0x52a   :  { %v1338_v63 = vsel %vm1122_vm13, %v5055_v61, -inf  ;;  %v1499_v25 = vsel %vm1122_vm13, %v5061_v4, -inf }
 0x52b   :  { %1201 = vadd.xlane.f32.xlu2 %v1200_v1  ;;  %1339 = vmax.xlane.f32.xlu1 %v1338_v63 }
 0x52c   :  { %v1184_v3 = vpop.xlane.xlu2 %1183  ;;  %1497 = vmax.xlane.f32.xlu0 %v1496_v6 }
 0x52d   :  { %v1188_v5 = vsub.f32 %v1170_v50, %v1184_v3 }
 0x52f   :  { %v1195_v10 = vmul.f32 1.442695, %v1188_v5 }
 0x531   :  { %4068 = vpow2.f32 %v1195_v10  ;;  %v5065_v13 = vpop.f32.mrf.mxu1  ;;  %v5071_v59 = vpop.f32.mrf.mxu0 }
 0x532   :  { %4070 = vpow2.f32 %v1193_v9  ;;  %v1502_v15 = vsel %vm1122_vm13, %v5065_v13, -inf  ;;  %v1663_v36 = vsel %vm1122_vm13, %v5071_v59, -inf }
 0x533   :  { %1503 = vmax.xlane.f32.xlu1 %v1502_v15  ;;  %1500 = vmax.xlane.f32.xlu2 %v1499_v25 }
 0x537   :  { %v5073_v2 = vpop.eup %4068 }
 0x538   :  { %v5075_v18 = vpop.eup %4070  ;;  %v1206_v22 = vsel %vm1122_vm13, %v5073_v2, 0.0 }
 0x539   :  { %v5077_v21 = vpop.f32.mrf.mxu1  ;;  %v1203_v27 = vsel %vm1122_vm13, %v5075_v18, 0.0  ;;  %v5085_v32 = vpop.f32.mrf.mxu0 }
 0x53a   :  { %v1505_v23 = vsel %vm1122_vm13, %v5077_v21, -inf  ;;  %v1666_v34 = vsel %vm1122_vm13, %v5085_v32, -inf }
 0x53b   :  { %1207 = vadd.xlane.f32.xlu1 %v1206_v22  ;;  %1506 = vmax.xlane.f32.xlu0 %v1505_v23 }
 0x53c   :  { %1204 = vadd.xlane.f32.xlu2 %v1203_v27 }
 0x541   :  { %v5087_v33 = vpop.f32.mrf.mxu1 }
 0x542   :  { %v1669_v0 = vsel %vm1122_vm13, %v5087_v33, -inf }
 0x543   :  { %1667 = vmax.xlane.f32.xlu1 %v1666_v34 }
 0x544   :  { %1664 = vmax.xlane.f32.xlu2 %v1663_v36 }
 0x549   :  { %v5093_v37 = vpop.f32.mrf.mxu1 }
 0x54a   :  { %v1672_v31 = vsel %vm1122_vm13, %v5093_v37, -inf }
 0x54b   :  { %1670 = vmax.xlane.f32.xlu1 %v1669_v0  ;;  %1673 = vmax.xlane.f32.xlu0 %v1672_v31 }
 0x564   :  { %1574 = vrot.lane.b32.xlu1 %v5013_v16, %s4416_s10 }
 0x586   :  { %v1331_v40 = vpop.xlane.xlu1 %1330 }
 0x587   :  { %v1341_v41 = vsub.f32 %v5035_v53, %v1331_v40 }
 0x589   :  { %v1345_v42 = vmul.f32 1.442695, %v1341_v41 }
 0x58b   :  { %4072 = vpow2.f32 %v1345_v42 }
 0x58e   :  { %v1334_v43 = vpop.xlane.xlu0 %1333 }
 0x58f   :  { %v1342_v46 = vsub.f32 %v5039_v55, %v1334_v43 }
 0x591   :  { %v5103_v8 = vpop.eup %4072  ;;  %v1347_v35 = vmul.f32 1.442695, %v1342_v46 }
 0x592   :  { %v1353_v17 = vsel %vm1122_vm13, %v5103_v8, 0.0 }
 0x593   :  { %4074 = vpow2.f32 %v1347_v35  ;;  %1354 = vadd.xlane.f32.xlu0 %v1353_v17 }
 0x596   :  { %v1337_v20 = vpop.xlane.xlu2 %1336  ;;  %v1199_v48 = vpop.xlane.xlu0 %1198 }
 0x597   :  { %v1343_v50 = vsub.f32 %v5045_v52, %v1337_v20  ;;  %4076 = vrcp.f32 %v1199_v48 }
 0x599   :  { %v5108_v45 = vpop.eup %4074  ;;  %v1349_v30 = vmul.f32 1.442695, %v1343_v50 }
 0x59a   :  { %v1356_v53 = vsel %vm1122_vm13, %v5108_v45, 0.0 }
 0x59b   :  { %4078 = vpow2.f32 %v1349_v30  ;;  %1357 = vadd.xlane.f32.xlu2 %v1356_v53 }
 0x59d   :  { %v4077_v51 = vpop.eup %4076 }
 0x59e   :  { %v1202_v47 = vpop.xlane.xlu2 %1201  ;;  %v1340_v44 = vpop.xlane.xlu1 %1339  ;;  %v1213_v28 = vmul.f32 %v4077_v51, %v5043_v58 }
 0x59f   :  { %4080 = vrcp.f32 %v1202_v47  ;;  %v1344_v54 = vsub.f32 %v5055_v61, %v1340_v44  ;;  %v1498_v55 = vpop.xlane.xlu0 %1497 }
 0x5a0   :  { %v1508_v26 = vsub.f32 %v5047_v49, %v1498_v55  ;;  %v1217_v60 = vpack.c.bf16 %v1213_v28, %v1213_v28 }
 0x5a1   :  { %v5114_v56 = vpop.eup %4078  ;;  %v1351_v38 = vmul.f32 1.442695, %v1344_v54 }
 0x5a2   :  { %v1512_v52 = vmul.f32 1.442695, %v1508_v26  ;;  %v1359_v39 = vsel %vm1122_vm13, %v5114_v56, 0.0  ;;  %v1223_v10 = vunpack.c.l.b16 %v1217_v60 }
 0x5a3   :  { %4082 = vpow2.f32 %v1351_v38  ;;  %1360 = vadd.xlane.f32.xlu0 %v1359_v39 }
 0x5a4   :  { %4084 = vpow2.f32 %v1512_v52 }
 0x5a5   :  { %v4081_v19 = vpop.eup %4080 }
 0x5a6   :  { %v1214_v62 = vmul.f32 %v4081_v19, %v5053_v11  ;;  %v1504_v61 = vpop.xlane.xlu1 %1503  ;;  %v1501_v1 = vpop.xlane.xlu2 %1500 }
 0x5a7   :  { %v1510_v49 = vsub.f32 %v5065_v13, %v1504_v61  ;;  %v1509_v63 = vsub.f32 %v5061_v4, %v1501_v1 }
 0x5a8   :  { %v1218_v6 = vpack.c.bf16 %v1214_v62, %v1214_v62 }
 0x5a9   :  { %v5122_v3 = vpop.eup %4082  ;;  %v1516_v58 = vmul.f32 1.442695, %v1510_v49  ;;  %v1514_v5 = vmul.f32 1.442695, %v1509_v63 }
 0x5aa   :  { %v5124_v9 = vpop.eup %4084  ;;  %v1224_v15 = vunpack.c.l.b16 %v1218_v6  ;;  %v1362_v25 = vsel %vm1122_vm13, %v5122_v3, 0.0 }
 0x5ab   :  { %4086 = vpow2.f32 %v1516_v58  ;;  %1363 = vadd.xlane.f32.xlu2 %v1362_v25  ;;  %v1520_v11 = vsel %vm1122_vm13, %v5124_v9, 0.0 }
 0x5ac   :  { %v1225_v13 = vpack.c.b16 %v1224_v15, %v1223_v10  ;;  %4088 = vpow2.f32 %v1514_v5  ;;  %1521 = vadd.xlane.f32.xlu0 %v1520_v11 }
 0x5ae   :  { %v1208_v4 = vpop.xlane.xlu1 %1207  ;;  %3673 = vmatmul.msk.bf16.vlgmr.msra.gmra.mxu2 %vm1122_vm13, %v1225_v13  ;;  %v1507_v22 = vpop.xlane.xlu0 %1506 }
 0x5af   :  { %4090 = vrcp.f32 %v1208_v4  ;;  %v1205_v23 = vpop.xlane.xlu2 %1204  ;;  %v1511_v27 = vsub.f32 %v5077_v21, %v1507_v22 }
 0x5b0   :  { %4092 = vrcp.f32 %v1205_v23 }
 0x5b1   :  { %v5132_v34 = vpop.eup %4086  ;;  %v1518_v36 = vmul.f32 1.442695, %v1511_v27 }
 0x5b2   :  { %v5134_v0 = vpop.eup %4088  ;;  %v1526_v31 = vsel %vm1122_vm13, %v5132_v34, 0.0 }
 0x5b3   :  { %4094 = vpow2.f32 %v1518_v36  ;;  %1527 = vadd.xlane.f32.xlu1 %v1526_v31  ;;  %v1523_v40 = vsel %vm1122_vm13, %v5134_v0, 0.0 }
 0x5b4   :  { %1524 = vadd.xlane.f32.xlu2 %v1523_v40 }
 0x5b5   :  { %v4091_v41 = vpop.eup %4090 }
 0x5b6   :  { %v4093_v42 = vpop.eup %4092  ;;  %v1216_v43 = vmul.f32 %v4091_v41, %v5073_v2  ;;  %v1668_v21 = vpop.xlane.xlu1 %1667 }
 0x5b7   :  { %v1215_v46 = vmul.f32 %v4093_v42, %v5075_v18  ;;  %v1676_v35 = vsub.f32 %v5085_v32, %v1668_v21  ;;  %v1665_v54 = vpop.xlane.xlu2 %1664 }
 0x5b8   :  { %v1220_v17 = vpack.c.bf16 %v1216_v43, %v1216_v43  ;;  %v1675_v55 = vsub.f32 %v5071_v59, %v1665_v54 }
 0x5b9   :  { %v5143_v20 = vpop.eup %4094  ;;  %v1219_v48 = vpack.c.bf16 %v1215_v46, %v1215_v46  ;;  %v1681_v50 = vmul.f32 1.442695, %v1676_v35 }
 0x5ba   :  { %v1252_v30 = vunpack.c.l.b16 %v1220_v17  ;;  %v1529_v53 = vsel %vm1122_vm13, %v5143_v20, 0.0  ;;  %v1679_v26 = vmul.f32 1.442695, %v1675_v55 }
 0x5bb   :  { %v1251_v47 = vunpack.c.l.b16 %v1219_v48  ;;  %4096 = vpow2.f32 %v1681_v50  ;;  %1530 = vadd.xlane.f32.xlu0 %v1529_v53 }
 0x5bc   :  { %4098 = vpow2.f32 %v1679_v26 }
 0x5bd   :  { %v1253_v44 = vpack.c.b16 %v1252_v30, %v1251_v47 }
 0x5be   :  { %v1671_v32 = vpop.xlane.xlu1 %1670  ;;  %v1674_v52 = vpop.xlane.xlu0 %1673 }
 0x5bf   :  { %3674 = vmatmul.msk.bf16.vlgmr.msra.gmra.mxu3 %vm1122_vm13, %v1253_v44  ;;  %v1677_v38 = vsub.f32 %v5087_v33, %v1671_v32  ;;  %v1678_v19 = vsub.f32 %v5093_v37, %v1674_v52 }
 0x5c1   :  { %v5148_v2 = vpop.eup %4096  ;;  %v1683_v28 = vmul.f32 1.442695, %v1677_v38  ;;  %v1685_v60 = vmul.f32 1.442695, %v1678_v19 }
 0x5c2   :  { %v1690_v18 = vsel %vm1122_vm13, %v5148_v2, 0.0  ;;  %v5160_v39 = vpop.eup %4098 }
 0x5c3   :  { %1691 = vadd.xlane.f32.xlu1 %v1690_v18  ;;  %4100 = vpow2.f32 %v1683_v28 }
 0x5c4   :  { %4102 = vpow2.f32 %v1685_v60 }
 0x5cc   :  { %1549 = vrot.lane.b32.xlu2 %v5003_v7, %s4416_s10 }
 0x5cf   :  { %1716 = vrot.lane.b32.xlu0 %v5003_v7, %s4417_s28  ;;  %v1687_v7 = vsel %vm1122_vm13, %v5160_v39, 0.0 }
 0x5d6   :  { %v1575_v51 = vpop.permute.xlu1 %1574 }
 0x5d7   :  { %1587 = vmatpush.bf16.msra.mxu3 %v1575_v51 }
 0x5dc   :  { %1741 = vrot.lane.b32.xlu1 %v5013_v16, %s4417_s28  ;;  %v5165_v16 = vpop.eup %4100 }
 0x5dd   :  { %v1693_v59 = vsel %vm1122_vm13, %v5165_v16, 0.0  ;;  %v5169_v33 = vpop.eup %4102 }
 0x5de   :  { %v1696_v62 = vsel %vm1122_vm13, %v5169_v33, 0.0 }
 0x5f5   :  { %1688 = vadd.xlane.f32.xlu2 %v1687_v7 }
 0x5fd   :  { %1694 = vadd.xlane.f32.xlu2 %v1693_v59 }
 0x605   :  { %1697 = vadd.xlane.f32.xlu2 %v1696_v62 }
 0x606   :  { %v1355_v61 = vpop.xlane.xlu0 %1354 }
 0x607   :  { %4104 = vrcp.f32 %v1355_v61 }
 0x60d   :  { %v4105_v1 = vpop.eup %4104 }
 0x60e   :  { %v1358_v37 = vpop.xlane.xlu2 %1357  ;;  %v1369_v49 = vmul.f32 %v4105_v1, %v5103_v8 }
 0x60f   :  { %4106 = vrcp.f32 %v1358_v37 }
 0x610   :  { %v1373_v6 = vpack.c.bf16 %v1369_v49, %v1369_v49 }
 0x612   :  { %v1379_v15 = vunpack.c.l.b16 %v1373_v6 }
 0x615   :  { %v4107_v63 = vpop.eup %4106 }
 0x616   :  { %v1370_v58 = vmul.f32 %v4107_v63, %v5108_v45  ;;  %v1361_v5 = vpop.xlane.xlu0 %1360 }
 0x617   :  { %4108 = vrcp.f32 %v1361_v5 }
 0x618   :  { %v1374_v10 = vpack.c.bf16 %v1370_v58, %v1370_v58 }
 0x61a   :  { %v1380_v25 = vunpack.c.l.b16 %v1374_v10 }
 0x61c   :  { %v1381_v11 = vpack.c.b16 %v1380_v25, %v1379_v15 }
 0x61d   :  { %v4109_v4 = vpop.eup %4108 }
 0x61e   :  { %v1364_v13 = vpop.xlane.xlu2 %1363  ;;  %3677 = vmatmul.msk.bf16.vlgmr.msrb.gmra.mxu2 %vm1122_vm13, %v1381_v11  ;;  %v1371_v23 = vmul.f32 %v4109_v4, %v5114_v56 }
 0x61f   :  { %4110 = vrcp.f32 %v1364_v13  ;;  %v1522_v22 = vpop.xlane.xlu0 %1521 }
 0x620   :  { %4112 = vrcp.f32 %v1522_v22  ;;  %v1375_v27 = vpack.c.bf16 %v1371_v23, %v1371_v23 }
 0x622   :  { %v1404_v42 = vunpack.c.l.b16 %v1375_v27 }
 0x625   :  { %v4111_v8 = vpop.eup %4110 }
 0x626   :  { %v1372_v36 = vmul.f32 %v4111_v8, %v5122_v3  ;;  %v1528_v45 = vpop.xlane.xlu1 %1527  ;;  %v4113_v40 = vpop.eup %4112 }
 0x627   :  { %v1525_v31 = vpop.xlane.xlu2 %1524  ;;  %v1536_v21 = vmul.f32 %v4113_v40, %v5124_v9 }
 0x628   :  { %v1376_v41 = vpack.c.bf16 %v1372_v36, %v1372_v36  ;;  %4114 = vrcp.f32 %v1525_v31 }
 0x629   :  { %4116 = vrcp.f32 %v1528_v45  ;;  %v1540_v48 = vpack.c.bf16 %v1536_v21, %v1536_v21 }
 0x62a   :  { %v1405_v43 = vunpack.c.l.b16 %v1376_v41 }
 0x62b   :  { %v1546_v44 = vunpack.c.l.b16 %v1540_v48  ;;  %v3937_v48 = vld [vmem:[#allocation12 + $0x18] sm:$0xff] }
 0x62c   :  { %v1406_v46 = vpack.c.b16 %v1405_v43, %v1404_v42  ;;  %1832 = vmatpush.bf16.msra.mxu0 %v3937_v48  ;;  %v3942_v48 = vld [vmem:[%s6126_s11 + $0x24] sm:$0xf] }
 0x62e   :  { %v4115_v35 = vpop.eup %4114  ;;  %v1531_v17 = vpop.xlane.xlu0 %1530  ;;  %3678 = vmatmul.msk.bf16.vlgmr.msrb.gmra.mxu3 %vm1122_vm13, %v1406_v46 }
 0x62f   :  { %v4117_v56 = vpop.eup %4116  ;;  %v1537_v50 = vmul.f32 %v4115_v35, %v5134_v0  ;;  %v1550_v3 = vpop.permute.xlu2 %1549  ;;  %4118 = vrcp.f32 %v1531_v17 }
 0x630   :  { %1562 = vmatpush.bf16.msra.mxu2 %v1550_v3  ;;  %v1538_v47 = vmul.f32 %v4117_v56, %v5132_v34  ;;  %v3935_v3 = vld [vmem:[#allocation12 + $0x8] sm:$0xff] }
 0x631   :  { %v1541_v30 = vpack.c.bf16 %v1537_v50, %v1537_v50  ;;  %v1244_v53 = vpop.f32.mrf.mxu2  ;;  %v3936_v50 = vld [vmem:[#allocation12 + $0x10] sm:$0xff] }
 0x632   :  { %1277 = vst.msk [vmem:[#allocation2] sm:$0xff] %vm1122_vm13, %v1244_v53  ;;  %v1542_v51 = vpack.c.bf16 %v1538_v47, %v1538_v47  ;;  %1833 = vmatpush.bf16.msra.mxu0 %v3936_v50 }
 0x633   :  { %v1547_v9 = vunpack.c.l.b16 %v1541_v30  ;;  %v3934_v30 = vld [vmem:[#allocation12] sm:$0xff] }
 0x634   :  { %v1571_v26 = vunpack.c.l.b16 %v1542_v51 }
 0x635   :  { %v4119_v18 = vpop.eup %4118  ;;  %v1548_v32 = vpack.c.b16 %v1547_v9, %v1546_v44 }
 0x636   :  { %v1539_v54 = vmul.f32 %v4119_v18, %v5143_v20  ;;  %v1692_v19 = vpop.xlane.xlu1 %1691  ;;  %1834 = vmatpush.bf16.msra.mxu0 %v3935_v3  ;;  %v3725_v3 = vld [vmem:[%s6126_s11 + $0x28] sm:$0xf0] }
 0x637   :  { %3681 = vmatmul.msk.bf16.vlgmr.msra.gmra.mxu2 %vm1122_vm13, %v1548_v32  ;;  %4120 = vrcp.f32 %v1692_v19 }
 0x638   :  { %v1543_v55 = vpack.c.bf16 %v1539_v54, %v1539_v54 }
 0x639   :  { %v1246_v0 = vpop.f32.mrf.mxu2 }
 0x63a   :  { %v1572_v38 = vunpack.c.l.b16 %v1543_v55  ;;  %1278 = vst.msk [vmem:[#allocation2 + $0x8] sm:$0xff] %vm1122_vm13, %v1246_v0  ;;  %1835 = vmatpush.bf16.msra.mxu0 %v3934_v30  ;;  %v3728_v30 = vor.u32 %v3942_v48, %v3725_v3 }
 0x63c   :  { %v1573_v28 = vpack.c.b16 %v1572_v38, %v1571_v26 }
 0x63d   :  { %v4121_v59 = vpop.eup %4120 }
 0x63e   :  { %3682 = vmatmul.msk.bf16.vlgmr.msra.gmra.mxu3 %vm1122_vm13, %v1573_v28  ;;  %v1704_v62 = vmul.f32 %v4121_v59, %v5148_v2 }
 0x640   :  { %v1708_v37 = vpack.c.bf16 %v1704_v62, %v1704_v62 }
 0x641   :  { %v1717_v34 = vpop.permute.xlu0 %1716 }
 0x642   :  { %v1272_v52 = vpop.f32.mrf.mxu3  ;;  %1729 = vmatpush.bf16.msrb.mxu2 %v1717_v34  ;;  %v1714_v6 = vunpack.c.l.b16 %v1708_v37 }
 0x643   :  { %1279 = vst.msk [vmem:[#allocation2 + $0x10] sm:$0xff] %vm1122_vm13, %v1272_v52  ;;  %v4003_v52 = vld [vmem:[#allocation10 + $0x5] ss:$0 sm:$0xff] }
 0x64a   :  { %v1274_v7 = vpop.f32.mrf.mxu3 }
 0x64b   :  { %1280 = vst.msk [vmem:[#allocation2 + $0x18] sm:$0xff] %vm1122_vm13, %v1274_v7 }
 0x64e   :  { %v1742_v20 = vpop.permute.xlu1 %1741 }
 0x64f   :  { %1754 = vmatpush.bf16.msrb.mxu3 %v1742_v20 }
 0x668   :  { %v1689_v60 = vpop.xlane.xlu2 %1688 }
 0x669   :  { %4122 = vrcp.f32 %v1689_v60 }
 0x66f   :  { %v4123_v61 = vpop.eup %4122 }
 0x670   :  { %v1703_v1 = vmul.f32 %v4123_v61, %v5160_v39  ;;  %v1695_v49 = vpop.xlane.xlu2 %1694 }
 0x671   :  { %4124 = vrcp.f32 %v1695_v49 }
 0x672   :  { %v1707_v63 = vpack.c.bf16 %v1703_v1, %v1703_v1 }
 0x674   :  { %v1713_v58 = vunpack.c.l.b16 %v1707_v63 }
 0x676   :  { %v1715_v5 = vpack.c.b16 %v1714_v6, %v1713_v58 }
 0x677   :  { %v4125_v15 = vpop.eup %4124 }
 0x678   :  { %v1698_v10 = vpop.xlane.xlu2 %1697  ;;  %3685 = vmatmul.msk.bf16.vlgmr.msrb.gmra.mxu2 %vm1122_vm13, %v1715_v5  ;;  %v1705_v25 = vmul.f32 %v4125_v15, %v5165_v16 }
 0x679   :  { %4126 = vrcp.f32 %v1698_v10 }
 0x67a   :  { %v1709_v13 = vpack.c.bf16 %v1705_v25, %v1705_v25 }
 0x67c   :  { %v1738_v22 = vunpack.c.l.b16 %v1709_v13 }
 0x67f   :  { %v4127_v11 = vpop.eup %4126 }
 0x680   :  { %v1706_v2 = vmul.f32 %v4127_v11, %v5169_v33 }
 0x682   :  { %v1710_v4 = vpack.c.bf16 %v1706_v2, %v1706_v2 }
 0x684   :  { %v1739_v39 = vunpack.c.l.b16 %v1710_v4 }
 0x686   :  { %v1740_v23 = vpack.c.b16 %v1739_v39, %v1738_v22 }
 0x688   :  { %3686 = vmatmul.msk.bf16.vlgmr.msrb.gmra.mxu3 %vm1122_vm13, %v1740_v23 }
 0x6a1   :  { %v1397_v8 = vpop.f32.mrf.mxu2 }
 0x6a2   :  { %1431 = vrot.lane.b32.xlu0 %v1397_v8, %s4418_s17 }
 0x6a9   :  { %v1399_v27 = vpop.f32.mrf.mxu2 }
 0x6aa   :  { %1433 = vrot.lane.b32.xlu2 %v1399_v27, %s4418_s17 }
 0x6b1   :  { %v1422_v36 = vpop.f32.mrf.mxu3 }
 0x6b9   :  { %v1424_v45 = vpop.f32.mrf.mxu3 }
 0x6ba   :  { %v1564_v31 = vpop.f32.mrf.mxu2 }
 0x6bb   :  { %1598 = vrot.lane.b32.xlu1 %v1564_v31, %s4419_s19 }
 0x6c1   :  { %v1589_v16 = vpop.f32.mrf.mxu3 }
 0x6c2   :  { %v1566_v40 = vpop.f32.mrf.mxu2  ;;  %1602 = vrot.lane.b32.xlu2 %v1589_v16, %s4419_s19 }
 0x6c3   :  { %1600 = vrot.lane.b32.xlu0 %v1566_v40, %s4419_s19 }
 0x6c9   :  { %v1591_v41 = vpop.f32.mrf.mxu3 }
 0x6fb   :  { %v1731_v33 = vpop.f32.mrf.mxu2 }
 0x6fc   :  { %1765 = vrot.lane.b32.xlu1 %v1731_v33, %s4420_s1 }
 0x703   :  { %v1733_v42 = vpop.f32.mrf.mxu2 }
 0x704   :  { %1767 = vrot.lane.b32.xlu0 %v1733_v42, %s4420_s1  ;;  %1435 = vrot.lane.b32.xlu1 %v1422_v36, %s4418_s17  ;;  %v1434_v43 = vpop.permute.xlu2 %1433  ;;  %v3945_v42 = vld [vmem:[%s6126_s11 + $0x34] sm:$0xf0] }
 0x705   :  { %1445 = vst.msk [vmem:[#allocation2 + $0x8] sm:$0xff] %vm1443_vm14, %v1434_v43  ;;  %v3944_v43 = vld [vmem:[%s6126_s11 + $0x34] sm:$0xf] }
 0x70b   :  { %v1756_v21 = vpop.f32.mrf.mxu3 }
 0x70c   :  { %1437 = vrot.lane.b32.xlu0 %v1424_v45, %s4418_s17  ;;  %1604 = vrot.lane.b32.xlu1 %v1591_v41, %s4419_s19  ;;  %v3731_v41 = vld [vmem:[%s6126_s11 + $0x30] sm:$0xf] }
 0x713   :  { %v1758_v46 = vpop.f32.mrf.mxu3 }
 0x714   :  { %1769 = vrot.lane.b32.xlu0 %v1756_v21, %s4420_s1  ;;  %1771 = vrot.lane.b32.xlu2 %v1758_v46, %s4420_s1  ;;  %v1432_v35 = vpop.permute.xlu0 %1431  ;;  %v3732_v21 = vor.u32 %v3945_v42, %v3731_v41  ;;  %v3733_v46 = vld [vmem:[%s6126_s11 + $0x38] sm:$0xf0]  ;;  %v4005_v41 = vld [vmem:[#allocation10 + $0x7] ss:$0 sm:$0xff] }
 0x715   :  { %1444 = vst.msk [vmem:[#allocation2] sm:$0xff] %vm1443_vm14, %v1432_v35  ;;  %v3736_v35 = vor.u32 %v3944_v43, %v3733_v46 }
 0x716   :  { %2017 = vmatpush.bf16.msrb.mxu1 %v3732_v21 }
 0x717   :  { %2036 = vmatpush.bf16.msra.mxu2 %v3736_v35 }
 0x71b   :  { %2037 = vmatpush.bf16.msra.mxu2 %v3728_v30 }
 0x71c   :  { %v1603_v9 = vpop.permute.xlu2 %1602 }
 0x72d   :  { %v1599_v17 = vpop.permute.xlu1 %1598 }
 0x72e   :  { %1611 = vst.msk [vmem:[#allocation2] sm:$0xff] %vm1610_vm15, %v1599_v17  ;;  %v3723_v17 = vld [vmem:[%s6126_s11 + $0x20] sm:$0xf] }
 0x735   :  { %v1601_v56 = vpop.permute.xlu0 %1600 }
 0x736   :  { %1612 = vst.msk [vmem:[#allocation2 + $0x8] sm:$0xff] %vm1610_vm15, %v1601_v56  ;;  %v3943_v56 = vld [vmem:[%s6126_s11 + $0x24] sm:$0xf0] }
 0x737   :  { %v3724_v50 = vor.u32 %v3943_v56, %v3723_v17 }
 0x739   :  { %2018 = vmatpush.bf16.msrb.mxu1 %v3724_v50 }
 0x76e   :  { %v1766_v53 = vpop.permute.xlu1 %1765  ;;  %v1772_v0 = vpop.permute.xlu2 %1771 }
 0x76f   :  { %1778 = vst.msk [vmem:[#allocation2] sm:$0xff] %vm1777_vm1, %v1766_v53 }
 0x776   :  { %v1768_v47 = vpop.permute.xlu0 %1767  ;;  %v1436_v44 = vpop.permute.xlu1 %1435  ;;  %v1782_v51 = vld [vmem:[#allocation2] sm:$0xff] }
 0x777   :  { %1779 = vst.msk [vmem:[#allocation2 + $0x8] sm:$0xff] %vm1777_vm1, %v1768_v47 }
 0x778   :  { %1446 = vst.msk [vmem:[#allocation2 + $0x10] sm:$0xff] %vm1443_vm14, %v1436_v44  ;;  %v3715_v44 = vld [vmem:[%s6126_s11 + $0x10] sm:$0xf] }
 0x779   :  { %1613 = vst.msk [vmem:[#allocation2 + $0x10] sm:$0xff] %vm1610_vm15, %v1603_v9  ;;  %v3941_v9 = vld [vmem:[%s6126_s11 + $0x14] sm:$0xf0] }
 0x77e   :  { %v1438_v18 = vpop.permute.xlu0 %1437  ;;  %v1605_v32 = vpop.permute.xlu1 %1604  ;;  %v1783_v54 = vld [vmem:[#allocation2 + $0x8] sm:$0xff] }
 0x77f   :  { %1447 = vst.msk [vmem:[#allocation2 + $0x18] sm:$0xff] %vm1443_vm14, %v1438_v18  ;;  %v1786_v55 = vpack.c.bf16 %v1783_v54, %v1782_v51  ;;  %v3940_v18 = vld [vmem:[%s6126_s11 + $0x14] sm:$0xf]  ;;  %v3717_v51 = vld [vmem:[%s6126_s11 + $0x18] sm:$0xf0] }
 0x780   :  { %1614 = vst.msk [vmem:[#allocation2 + $0x18] sm:$0xff] %vm1610_vm15, %v1605_v32  ;;  %v3716_v32 = vor.u32 %v3941_v9, %v3715_v44 }
 0x781   :  { %1781 = vst.msk [vmem:[#allocation2 + $0x18] sm:$0xff] %vm1777_vm1, %v1772_v0  ;;  %3703 = vmatmul.msk.bf16.vlgmr.msra.gmra.mxu0 %vm157_vm0, %v1786_v55  ;;  %v3720_v55 = vor.u32 %v3940_v18, %v3717_v51  ;;  %v3707_v0 = vld [vmem:[%s6126_s11] sm:$0xf] }
 0x782   :  { %2019 = vmatpush.bf16.msrb.mxu1 %v3716_v32 }
 0x783   :  { %2038 = vmatpush.bf16.msra.mxu2 %v3720_v55 }
 0x786   :  { %v1770_v26 = vpop.permute.xlu0 %1769 }
 0x787   :  { %1780 = vst.msk [vmem:[#allocation2 + $0x10] sm:$0xff] %vm1777_vm1, %v1770_v26  ;;  %v3939_v26 = vld [vmem:[%s6126_s11 + $0x4] sm:$0xf0] }
 0x788   :  { %v1785_v28 = vld [vmem:[#allocation2 + $0x18] sm:$0xff] }
 0x78e   :  { %v1784_v38 = vld [vmem:[#allocation2 + $0x10] sm:$0xff] }
 0x78f   :  { %v1787_v34 = vpack.c.bf16 %v1785_v28, %v1784_v38  ;;  %v3938_v38 = vld [vmem:[%s6126_s11 + $0x4] sm:$0xf]  ;;  %v3708_v28 = vor.u32 %v3939_v26, %v3707_v0 }
 0x791   :  { %3704 = vmatmul.msk.bf16.gmra.mxu0 %vm157_vm0, %v1787_v34  ;;  %v3709_v34 = vld [vmem:[%s6126_s11 + $0x8] sm:$0xf0]  ;;  %2020 = vmatpush.bf16.msrb.mxu1 %v3708_v28 }
 0x7fe   :  { %v1837_v19 = vpop.f32.mrf.mxu0 }
 0x7ff   :  { %v1838_v7 = vadd.f32 %v4003_v52, %v1837_v19 }
 0x801   :  { %v5210_v20 = vadd.f32 %v1838_v7, %v4868_v57 }
 0x803   :  { %6157 = vst [vmem:[#allocation22_spill] sm:$0xff] %v5210_v20  ;;  %v1853_v60 = vsel %vm157_vm0, %v5210_v20, 0.0 }
 0x804   :  { %1854 = vadd.xlane.f32.xlu1 %v1853_v60 }
 0x806   :  { %v1839_v59 = vpop.f32.mrf.mxu0 }
 0x807   :  { %v1840_v62 = vadd.f32 %v4003_v52, %v1839_v59 }
 0x809   :  { %v5215_v61 = vadd.f32 %v1840_v62, %v4873_v29 }
 0x80b   :  { %6158 = vst [vmem:[#allocation23_spill] sm:$0xff] %v5215_v61  ;;  %v1856_v37 = vsel %vm157_vm0, %v5215_v61, 0.0 }
 0x80c   :  { %1857 = vadd.xlane.f32.xlu0 %v1856_v37 }
 0x80e   :  { %v1842_v1 = vpop.f32.mrf.mxu0 }
 0x80f   :  { %v1843_v49 = vadd.f32 %v4003_v52, %v1842_v1 }
 0x811   :  { %v5220_v63 = vadd.f32 %v1843_v49, %v4878_v24 }
 0x813   :  { %6159 = vst [vmem:[#allocation24_spill] sm:$0xff] %v5220_v63  ;;  %v1859_v57 = vsel %vm157_vm0, %v5220_v63, 0.0 }
 0x814   :  { %1860 = vadd.xlane.f32.xlu2 %v1859_v57 }
 0x816   :  { %v1844_v6 = vpop.f32.mrf.mxu0 }
 0x817   :  { %v1845_v58 = vadd.f32 %v4003_v52, %v1844_v6  ;;  %v3712_v52 = vor.u32 %v3938_v38, %v3709_v34  ;;  %v4421_v38 = vmov 0.0  }
 0x818   :  { %2131 = vst [vmem:[#allocation3] sm:$0xff] %v4421_v38 }
 0x819   :  { %v5225_v5 = vadd.f32 %v1845_v58, %v4883_v12  ;;  %2039 = vmatpush.bf16.msra.mxu2 %v3712_v52  ;;  %2132 = vst [vmem:[#allocation3 + $0x8] sm:$0xff] %v4421_v38 }
 0x81a   :  { %2133 = vst [vmem:[#allocation3 + $0x30] sm:$0xff] %v4421_v38 }
 0x81b   :  { %6160 = vst [vmem:[#allocation25_spill] sm:$0xff] %v5225_v5  ;;  %v1862_v29 = vsel %vm157_vm0, %v5225_v5, 0.0 }
 0x81c   :  { %1863 = vadd.xlane.f32.xlu1 %v1862_v29  ;;  %2135 = vst [vmem:[#allocation3 + $0x20] sm:$0xff] %v4421_v38 }
 0x81d   :  { %2136 = vst [vmem:[#allocation3 + $0x28] sm:$0xff] %v4421_v38 }
 0x81e   :  { %2134 = vst [vmem:[#allocation3 + $0x38] sm:$0xff] %v4421_v38 }
 0x81f   :  { %2137 = vst [vmem:[#allocation3 + $0x50] sm:$0xff] %v4421_v38 }
 0x820   :  { %2138 = vst [vmem:[#allocation3 + $0x58] sm:$0xff] %v4421_v38 }
 0x877   :  { %v1855_v10 = vpop.xlane.xlu1 %1854 }
 0x878   :  { %v1865_v15 = vmul.f32 %v1855_v10, %v4558_v14 }
 0x87a   :  { %v5231_v25 = vsub.f32 %v5210_v20, %v1865_v15 }
 0x87c   :  { %v1873_v24 = vmul.f32 %v5231_v25, %v5231_v25 }
 0x87e   :  { %v1877_v11 = vsel %vm157_vm0, %v1873_v24, 0.0 }
 0x87f   :  { %1878 = vadd.xlane.f32.xlu0 %v1877_v11  ;;  %v1858_v13 = vpop.xlane.xlu0 %1857 }
 0x880   :  { %v1866_v12 = vmul.f32 %v1858_v13, %v4558_v14 }
 0x882   :  { %v5238_v2 = vsub.f32 %v5215_v61, %v1866_v12 }
 0x884   :  { %v1874_v4 = vmul.f32 %v5238_v2, %v5238_v2 }
 0x886   :  { %v1880_v22 = vsel %vm157_vm0, %v1874_v4, 0.0 }
 0x887   :  { %1881 = vadd.xlane.f32.xlu2 %v1880_v22  ;;  %v1861_v39 = vpop.xlane.xlu2 %1860 }
 0x888   :  { %v1867_v23 = vmul.f32 %v1861_v39, %v4558_v14 }
 0x88a   :  { %v5245_v8 = vsub.f32 %v5220_v63, %v1867_v23  ;;  %v4004_v23 = vld [vmem:[#allocation10 + $0x6] ss:$0 sm:$0xff] }
 0x88c   :  { %v1875_v27 = vmul.f32 %v5245_v8, %v5245_v8 }
 0x88e   :  { %v1883_v36 = vsel %vm157_vm0, %v1875_v27, 0.0 }
 0x88f   :  { %v1864_v45 = vpop.xlane.xlu1 %1863  ;;  %1884 = vadd.xlane.f32.xlu1 %v1883_v36 }
 0x890   :  { %v1868_v31 = vmul.f32 %v1864_v45, %v4558_v14 }
 0x892   :  { %v5252_v16 = vsub.f32 %v5225_v5, %v1868_v31 }
 0x894   :  { %v1876_v40 = vmul.f32 %v5252_v16, %v5252_v16 }
 0x896   :  { %v1886_v33 = vsel %vm157_vm0, %v1876_v40, 0.0 }
 0x897   :  { %1887 = vadd.xlane.f32.xlu0 %v1886_v33 }
 0x8f2   :  { %v1879_v53 = vpop.xlane.xlu0 %1878 }
 0x8f3   :  { %v1889_v47 = vmul.f32 %v1879_v53, %v4558_v14 }
 0x8f5   :  { %v1893_v54 = vadd.f32 1e-05, %v1889_v47 }
 0x8f7   :  { %4128 = vrsqrt.f32 %v1893_v54  ;;  %vm1903_vm3 = vweird.f32 %v1893_v54 }
 0x8fa   :  { %v1882_v19 = vpop.xlane.xlu2 %1881 }
 0x8fb   :  { %v1890_v7 = vmul.f32 %v1882_v19, %v4558_v14  ;;  %v5320_v19 = vld [vmem:[#allocation13] sm:$0xff] }
 0x8fd   :  { %v4129_v60 = vpop.eup %4128  ;;  %v1894_v59 = vadd.f32 1e-05, %v1890_v7  ;;  %v5323_v7 = vperm.slane %v5320_v19, 0 }
 0x8fe   :  { %v1898_v62 = vmul.f32 %v4129_v60, %v1893_v54  ;;  %vm1904_vm2 = vweird.f32 %v4129_v60 }
 0x8ff   :  { %4130 = vrsqrt.f32 %v1894_v59  ;;  %vm1905_vm4 = vmor %vm1903_vm3, %vm1904_vm2  ;;  %vm1913_vm6 = vweird.f32 %v1894_v59 }
 0x900   :  { %v1899_v37 = vmul.f32 %v4129_v60, %v1898_v62  ;;  %v2147_v62 = vld [vmem:[#allocation3 + $0x1] sm:$0xff] }
 0x902   :  { %v1900_v1 = vmul.f32 0.5, %v1899_v37  ;;  %v1885_v49 = vpop.xlane.xlu1 %1884  ;;  %v2160_v37 = vld [vmem:[#allocation3 + $0x2] sm:$0xff] }
 0x903   :  { %v1891_v57 = vmul.f32 %v1885_v49, %v4558_v14 }
 0x904   :  { %v1901_v6 = vsub.f32 1.5, %v1900_v1 }
 0x905   :  { %v4131_v58 = vpop.eup %4130  ;;  %v1895_v29 = vadd.f32 1e-05, %v1891_v57 }
 0x906   :  { %v1902_v10 = vmul.f32 %v4129_v60, %v1901_v6  ;;  %v1908_v15 = vmul.f32 %v4131_v58, %v1894_v59  ;;  %vm1914_vm5 = vweird.f32 %v4131_v58  ;;  %v2152_v6 = vmul.f32 %v5323_v7, %v2147_v62 }
 0x907   :  { %4132 = vrsqrt.f32 %v1895_v29  ;;  %vm1915_vm7 = vmor %vm1913_vm6, %vm1914_vm5  ;;  %vm1923_vm9 = vweird.f32 %v1895_v29 }
 0x908   :  { %v1909_v24 = vmul.f32 %v4131_v58, %v1908_v15  ;;  %v1906_v11 = vsel %vm1905_vm4, %v4129_v60, %v1902_v10  ;;  %v5326_v60 = vperm.slane %v5320_v19, 1  ;;  %v2173_v15 = vld [vmem:[#allocation3 + $0x3] sm:$0xff] }
 0x909   :  { %v1937_v27 = vmul.f32 %v1906_v11, %v5231_v25 }
 0x90a   :  { %v1910_v13 = vmul.f32 0.5, %v1909_v24  ;;  %v1888_v12 = vpop.xlane.xlu0 %1887 }
 0x90b   :  { %v1892_v4 = vmul.f32 %v1888_v12, %v4558_v14  ;;  %v1942_v42 = vmul.f32 %v4004_v23, %v1937_v27 }
 0x90c   :  { %v1911_v22 = vsub.f32 1.5, %v1910_v13  ;;  %v5335_v13 = vperm.slane %v5320_v19, 3 }
 0x90d   :  { %v4133_v39 = vpop.eup %4132  ;;  %v1896_v36 = vadd.f32 1e-05, %v1892_v4  ;;  %v1947_v56 = vadd.f32 %v4005_v41, %v1942_v42  ;;  %v2186_v4 = vld [vmem:[#allocation3 + $0x4] sm:$0xff] }
 0x90e   :  { %v1912_v45 = vmul.f32 %v4131_v58, %v1911_v22  ;;  %v1918_v31 = vmul.f32 %v4133_v39, %v1895_v29  ;;  %vm1924_vm8 = vweird.f32 %v4133_v39  ;;  %v5331_v29 = vperm.slane %v5320_v19, 2 }
 0x90f   :  { %4134 = vrsqrt.f32 %v1896_v36  ;;  %vm1925_vm10 = vmor %vm1923_vm9, %vm1924_vm8  ;;  %vm1933_vm12 = vweird.f32 %v1896_v36 }
 0x910   :  { %v1916_v40 = vsel %vm1915_vm7, %v4131_v58, %v1912_v45  ;;  %v1919_v33 = vmul.f32 %v4133_v39, %v1918_v31  ;;  %v2165_v58 = vmul.f32 %v5326_v60, %v2160_v37  ;;  %v2178_v11 = vmul.f32 %v5331_v29, %v2173_v15 }
 0x911   :  { %v1938_v43 = vmul.f32 %v1916_v40, %v5238_v2  ;;  %v2191_v45 = vmul.f32 %v5335_v13, %v2186_v4  ;;  %v5339_v31 = vperm.slane %v5320_v19, 4 }
 0x912   :  { %v1920_v21 = vmul.f32 0.5, %v1919_v33  ;;  %v2169_v24 = vadd.f32 %v2165_v58, %v2152_v6  ;;  %v2162_v6 = vld [vmem:[#allocation3 + $0x32] sm:$0xff] }
 0x913   :  { %v1943_v46 = vmul.f32 %v4004_v23, %v1938_v43  ;;  %v5345_v43 = vperm.slane %v5320_v19, 5 }
 0x914   :  { %v1921_v35 = vsub.f32 1.5, %v1920_v21 }
 0x915   :  { %v4135_v17 = vpop.eup %4134  ;;  %v1948_v48 = vadd.f32 %v4005_v41, %v1943_v46 }
 0x916   :  { %v1922_v50 = vmul.f32 %v4133_v39, %v1921_v35  ;;  %v1928_v25 = vmul.f32 %v4135_v17, %v1896_v36  ;;  %vm1934_vm11 = vweird.f32 %v4135_v17  ;;  %v2182_v36 = vadd.f32 %v2178_v11, %v2169_v24 }
 0x917   :  { %v1951_v3 = vpack.c.bf16 %v1948_v48, %v1947_v56  ;;  %vm1935_vm13 = vmor %vm1933_vm12, %vm1934_vm11 }
 0x918   :  { %v1929_v30 = vmul.f32 %v4135_v17, %v1928_v25  ;;  %v1926_v53 = vsel %vm1925_vm10, %v4133_v39, %v1922_v50  ;;  %v2195_v46 = vadd.f32 %v2191_v45, %v2182_v36  ;;  %v2144_v36 = vld [vmem:[#allocation13 + $0x8] sm:$0xff] }
 0x919   :  { %3737 = vmatmul.msk.bf16.vlgmr.msrb.gmra.mxu1 %vm157_vm0, %v1951_v3  ;;  %3739 = vmatmul.msk.bf16.vlgmr.msra.gmra.mxu2 %vm157_vm0, %v1951_v3  ;;  %v1939_v44 = vmul.f32 %v1926_v53, %v5245_v8  ;;  %v1961_v8 = vld [vmem:[%s6121_s6] sm:$0x3]  ;;  %v2175_v45 = vld [vmem:[#allocation3 + $0x33] sm:$0xff] }
 0x91a   :  { %v1930_v47 = vmul.f32 0.5, %v1929_v30  ;;  %v5348_v56 = vperm.slane %v1961_v8, 0 }
 0x91b   :  { %v1944_v51 = vmul.f32 %v4004_v23, %v1939_v44 }
 0x91c   :  { %v1931_v2 = vsub.f32 1.5, %v1930_v47  ;;  %v5352_v47 = vperm.slane %v5320_v19, 6 }
 0x91d   :  { %v1949_v55 = vadd.f32 %v4005_v41, %v1944_v51 }
 0x91e   :  { %v1932_v9 = vmul.f32 %v4135_v17, %v1931_v2 }
 0x920   :  { %v1936_v18 = vsel %vm1935_vm13, %v4135_v17, %v1932_v9  ;;  %v2212_v17 = vld [vmem:[#allocation3 + $0x6] sm:$0xff] }
 0x921   :  { %v1940_v32 = vmul.f32 %v1936_v18, %v5252_v16  ;;  %v1964_v16 = vperm.slane %v1961_v8, 1  ;;  %v2217_v53 = vmul.f32 %v5345_v43, %v2212_v17 }
 0x923   :  { %v1945_v54 = vmul.f32 %v4004_v23, %v1940_v32 }
 0x925   :  { %v1950_v0 = vadd.f32 %v4005_v41, %v1945_v54  ;;  %v2199_v41 = vld [vmem:[#allocation3 + $0x5] sm:$0xff] }
 0x926   :  { %v2204_v35 = vmul.f32 %v5339_v31, %v2199_v41  ;;  %v5379_v41 = vperm.slane %v2144_v36, 0 }
 0x927   :  { %v1952_v26 = vpack.c.bf16 %v1950_v0, %v1949_v55 }
 0x928   :  { %v2208_v18 = vadd.f32 %v2204_v35, %v2195_v46  ;;  %v5383_v46 = vperm.slane %v2144_v36, 1 }
 0x929   :  { %3738 = vmatmul.msk.bf16.gmra.mxu1 %vm157_vm0, %v1952_v26  ;;  %3740 = vmatmul.msk.bf16.gmra.mxu2 %vm157_vm0, %v1952_v26  ;;  %v2225_v26 = vld [vmem:[#allocation3 + $0x7] sm:$0xff] }
 0x92a   :  { %6161 = vst [vmem:[#allocation26_spill] sm:$0xff] %v5383_v46 }
 0x996   :  { %v2022_v39 = vpop.f32.mrf.mxu1 }
 0x997   :  { %v2023_v51 = vadd.f32 %v2022_v39, %v5348_v56 }
 0x99c   :  { %v2041_v28 = vpop.f32.mrf.mxu2 }
 0x99d   :  { %v2042_v34 = vadd.f32 %v2041_v28, %v1964_v16 }
 0x99e   :  { %v2024_v55 = vpop.f32.mrf.mxu1 }
 0x99f   :  { %v3741_v52 = vmul.f32 -1.442695, %v2042_v34  ;;  %v2025_v39 = vadd.f32 %v2024_v55, %v5348_v56 }
 0x9a1   :  { %4136 = vpow2.f32 %v3741_v52  ;;  %v2221_v52 = vadd.f32 %v2217_v53, %v2208_v18 }
 0x9a4   :  { %v2043_v59 = vpop.f32.mrf.mxu2 }
 0x9a5   :  { %v2044_v1 = vadd.f32 %v2043_v59, %v1964_v16  ;;  %v2230_v59 = vmul.f32 %v5352_v47, %v2225_v26 }
 0x9a7   :  { %v4137_v49 = vpop.eup %4136  ;;  %v3742_v57 = vmul.f32 -1.442695, %v2044_v1  ;;  %v2234_v15 = vadd.f32 %v2230_v59, %v2221_v52 }
 0x9a8   :  { %v2063_v10 = vadd.f32 1.0, %v4137_v49  ;;  %v5366_v49 = vperm.slane %v5320_v19, 7  ;;  %v2167_v19 = vmul.f32 %v5326_v60, %v2162_v6  ;;  %v5407_v6 = vperm.slane %v2144_v36, 4 }
 0x9a9   :  { %4138 = vpow2.f32 %v3742_v57  ;;  %v2149_v57 = vld [vmem:[#allocation3 + $0x31] sm:$0xff] }
 0x9aa   :  { %4140 = vrcp.f32 %v2063_v10  ;;  %v2078_v48 = vand.u32 2147483648, %v2063_v10  ;;  %v2076_v3 = vand.u32 2147483647, %v2063_v10  ;;  %vm2072_vm15 = vweird.f32 %v2063_v10 }
 0x9ab   :  { %v5370_v24 = vmul.f32 0.0, %v5366_v49 }
 0x9ac   :  { %v2046_v12 = vpop.f32.mrf.mxu2  ;;  %v2079_v54 = vor.u32 1.1754944e-38, %v2078_v48  ;;  %vm2077_vm2 = vcmp.eq.f32.partialorder %v2076_v3, 8.507059e+37  ;;  %v2188_v3 = vld [vmem:[#allocation3 + $0x34] sm:$0xff] }
 0x9ad   :  { %v2047_v22 = vadd.f32 %v2046_v12, %v1964_v16  ;;  %v2247_v48 = vadd.f32 %v5370_v24, %v2234_v15 }
 0x9af   :  { %v4139_v23 = vpop.eup %4138  ;;  %v3743_v27 = vmul.f32 -1.442695, %v2047_v22  ;;  %v2154_v22 = vmul.f32 %v5323_v7, %v2149_v57 }
 0x9b0   :  { %v4141_v40 = vpop.eup %4140  ;;  %v5341_v33 = vadd.f32 1.0, %v4139_v23 }
 0x9b1   :  { %v2068_v42 = vmul.f32 %v4141_v40, %v2063_v10  ;;  %4142 = vpow2.f32 %v3743_v27  ;;  %vm2073_vm14 = vweird.f32 %v4141_v40 }
 0x9b2   :  { %4144 = vrcp.f32 %v5341_v33  ;;  %vm2074_vm1 = vmor %vm2072_vm15, %vm2073_vm14  ;;  %v2093_v62 = vand.u32 2147483648, %v5341_v33  ;;  %v2091_v1 = vand.u32 2147483647, %v5341_v33  ;;  %vm2087_vm4 = vweird.f32 %v5341_v33 }
 0x9b3   :  { %v2069_v21 = vsub.f32 1.0, %v2068_v42 }
 0x9b4   :  { %v2048_v50 = vpop.f32.mrf.mxu2  ;;  %v2094_v12 = vor.u32 1.1754944e-38, %v2093_v62  ;;  %vm2092_vm6 = vcmp.eq.f32.partialorder %v2091_v1, 8.507059e+37 }
 0x9b5   :  { %v2070_v25 = vmul.f32 %v4141_v40, %v2069_v21  ;;  %v2049_v30 = vadd.f32 %v2048_v50, %v1964_v16  ;;  %v2171_v50 = vadd.f32 %v2167_v19, %v2154_v22 }
 0x9b7   :  { %v4143_v2 = vpop.eup %4142  ;;  %v2071_v44 = vadd.f32 %v4141_v40, %v2070_v25  ;;  %v3744_v9 = vmul.f32 -1.442695, %v2049_v30  ;;  %v2180_v25 = vmul.f32 %v5331_v29, %v2175_v45  ;;  %v2214_v45 = vld [vmem:[#allocation3 + $0x36] sm:$0xff] }
 0x9b8   :  { %v4145_v32 = vpop.eup %4144  ;;  %v5355_v0 = vadd.f32 1.0, %v4143_v2 }
 0x9b9   :  { %v2075_v38 = vsel %vm2074_vm1, %v4141_v40, %v2071_v44  ;;  %v2083_v8 = vmul.f32 %v4145_v32, %v5341_v33  ;;  %4146 = vpow2.f32 %v3744_v9  ;;  %vm2088_vm3 = vweird.f32 %v4145_v32  ;;  %v2027_v33 = vpop.f32.mrf.mxu1 }
 0x9ba   :  { %v2080_v16 = vsel %vm2077_vm2, %v2079_v54, %v2075_v38  ;;  %4148 = vrcp.f32 %v5355_v0  ;;  %vm2089_vm5 = vmor %vm2087_vm4, %vm2088_vm3  ;;  %v2108_v35 = vand.u32 2147483648, %v5355_v0  ;;  %v2106_v53 = vand.u32 2147483647, %v5355_v0 }
 0x9bb   :  { %v5359_v28 = vmul.f32 %v2080_v16, %v2023_v51  ;;  %v2084_v34 = vsub.f32 1.0, %v2083_v8  ;;  %v5394_v9 = vperm.slane %v2144_v36, 2  ;;  %vm2102_vm8 = vweird.f32 %v5355_v0 }
 0x9bc   :  { %v5399_v51 = vperm.slane %v2144_v36, 3  ;;  %v2193_v54 = vmul.f32 %v5335_v13, %v2188_v3  ;;  %v2109_v26 = vor.u32 1.1754944e-38, %v2108_v35  ;;  %v2184_v16 = vadd.f32 %v2180_v25, %v2171_v50 }
 0x9bd   :  { %2139 = vst [vmem:[#allocation3 + $0x10] sm:$0xff] %v5359_v28  ;;  %v2085_v37 = vmul.f32 %v4145_v32, %v2084_v34  ;;  %v2201_v34 = vld [vmem:[#allocation3 + $0x35] sm:$0xff]  ;;  %v2028_v52 = vadd.f32 %v2027_v33, %v5348_v56  ;;  %vm2107_vm10 = vcmp.eq.f32.partialorder %v2106_v53, 8.507059e+37  ;;  %v5419_v50 = vperm.slane %v2144_v36, 6 }
 0x9be   :  { %6162 = vst [vmem:[#allocation27_spill] sm:$0xff] %v5399_v51  ;;  %v2206_v22 = vmul.f32 %v5339_v31, %v2201_v34  ;;  %v5421_v25 = vperm.slane %v2144_v36, 7  ;;  %v2227_v34 = vld [vmem:[#allocation3 + $0x37] sm:$0xff] }
 0x9bf   :  { %v4147_v58 = vpop.eup %4146  ;;  %v2086_v10 = vadd.f32 %v4145_v32, %v2085_v37 }
 0x9c0   :  { %v4149_v11 = vpop.eup %4148  ;;  %v5372_v4 = vadd.f32 1.0, %v4147_v58 }
 0x9c1   :  { %v2090_v23 = vsel %vm2089_vm5, %v4145_v32, %v2086_v10  ;;  %v2098_v27 = vmul.f32 %v4149_v11, %v5355_v0  ;;  %vm2103_vm7 = vweird.f32 %v4149_v11 }
 0x9c2   :  { %v2095_v40 = vsel %vm2092_vm6, %v2094_v12, %v2090_v23  ;;  %4150 = vrcp.f32 %v5372_v4  ;;  %vm2104_vm9 = vmor %vm2102_vm8, %vm2103_vm7  ;;  %v5411_v12 = vperm.slane %v2144_v36, 5  ;;  %v2123_v19 = vand.u32 2147483648, %v5372_v4 }
 0x9c3   :  { %v5381_v42 = vmul.f32 %v2095_v40, %v2025_v39  ;;  %v2099_v21 = vsub.f32 1.0, %v2098_v27  ;;  %v2197_v27 = vadd.f32 %v2193_v54, %v2184_v16  ;;  %v2121_v33 = vand.u32 2147483647, %v5372_v4  ;;  %v5426_v54 = vld [vmem:[#allocation13 + $0x10] sm:$0xff] }
 0x9c4   :  { %v5386_v17 = vld [vmem:[#allocation3 + $0x9] sm:$0xff]  ;;  %vm2117_vm12 = vweird.f32 %v5372_v4 }
 0x9c5   :  { %2140 = vst [vmem:[#allocation3 + $0x18] sm:$0xff] %v5381_v42  ;;  %v2100_v30 = vmul.f32 %v4149_v11, %v2099_v21  ;;  %v2161_v2 = vld [vmem:[#allocation3 + $0xa] sm:$0xff]  ;;  %v2254_v44 = vmul.f32 %v5379_v41, %v5386_v17  ;;  %vm2122_vm14 = vcmp.eq.f32.partialorder %v2121_v33, 8.507059e+37 }
 0x9c6   :  { %v5397_v32 = vld [vmem:[#allocation3 + $0xb] sm:$0xff]  ;;  %v2265_v8 = vmul.f32 %v5383_v46, %v2161_v2  ;;  %v2166_v36 = vmul.f32 %v5326_v60, %v2161_v2  ;;  %v2331_v2 = vmul.f32 %v5421_v25, %v5359_v28 }
 0x9c7   :  { %v2101_v18 = vadd.f32 %v4149_v11, %v2100_v30  ;;  %v2258_v38 = vadd.f32 %v2254_v44, %v2247_v48  ;;  %v2187_v62 = vld [vmem:[#allocation3 + $0xc] sm:$0xff]  ;;  %v2276_v57 = vmul.f32 %v5394_v9, %v5397_v32  ;;  %v2219_v44 = vmul.f32 %v5345_v43, %v2214_v45 }
 0x9c8   :  { %v4151_v55 = vpop.eup %4150  ;;  %v2200_v15 = vld [vmem:[#allocation3 + $0xd] sm:$0xff]  ;;  %v2287_v23 = vmul.f32 %v5399_v51, %v2187_v62 }
 0x9c9   :  { %v2105_v59 = vsel %vm2104_vm9, %v4149_v11, %v2101_v18  ;;  %v2113_v0 = vmul.f32 %v4151_v55, %v5372_v4  ;;  %v2269_v1 = vadd.f32 %v2265_v8, %v2258_v38  ;;  %v2029_v11 = vpop.f32.mrf.mxu1  ;;  %vm2118_vm11 = vweird.f32 %v4151_v55  ;;  %v2213_v21 = vld [vmem:[#allocation3 + $0xe] sm:$0xff] }
 0x9ca   :  { %v2110_v37 = vsel %vm2107_vm10, %v2109_v26, %v2105_v59  ;;  %v2298_v48 = vmul.f32 %v5407_v6, %v2200_v15  ;;  %v2030_v3 = vadd.f32 %v2029_v11, %v5348_v56  ;;  %v2226_v53 = vld [vmem:[#allocation3 + $0xf] sm:$0xff]  ;;  %vm2119_vm13 = vmor %vm2117_vm12, %vm2118_vm11  ;;  %v2124_v18 = vor.u32 1.1754944e-38, %v2123_v19 }
 0x9cb   :  { %v5409_v58 = vmul.f32 %v2110_v37, %v2028_v52  ;;  %v2114_v10 = vsub.f32 1.0, %v2113_v0  ;;  %v2280_v39 = vadd.f32 %v2276_v57, %v2269_v1  ;;  %v2309_v38 = vmul.f32 %v5411_v12, %v2213_v21 }
 0x9cc   :  { %v2210_v8 = vadd.f32 %v2206_v22, %v2197_v27  ;;  %v5431_v56 = vperm.slane %v5426_v54, 0  ;;  %v2320_v59 = vmul.f32 %v5419_v50, %v2226_v53  ;;  %v2153_v0 = vmul.f32 %v5323_v7, %v5386_v17  ;;  %v2251_v1 = vld [vmem:[#allocation3 + $0x11] sm:$0xff]  ;;  %v5538_v63 = vld [vmem:[#allocation3 + $0x1b] sm:$0xff] }
 0x9cd   :  { %2141 = vst [vmem:[#allocation3 + $0x40] sm:$0xff] %v5409_v58  ;;  %v2115_v40 = vmul.f32 %v4151_v55, %v2114_v10  ;;  %v2291_v35 = vadd.f32 %v2287_v23, %v2280_v39  ;;  %v5439_v57 = vperm.slane %v5426_v54, 1  ;;  %v2232_v22 = vmul.f32 %v5352_v47, %v2227_v34  ;;  %v2262_v11 = vld [vmem:[#allocation3 + $0x12] sm:$0xff] }
 0x9ce   :  { %v2223_v10 = vadd.f32 %v2219_v44, %v2210_v8  ;;  %v5446_v19 = vperm.slane %v5426_v54, 2  ;;  %v2179_v17 = vmul.f32 %v5331_v29, %v5397_v32  ;;  %v2342_v23 = vmul.f32 %v5431_v56, %v2251_v1  ;;  %v2273_v33 = vld [vmem:[#allocation3 + $0x13] sm:$0xff] }
 0x9cf   :  { %v2116_v30 = vadd.f32 %v4151_v55, %v2115_v40  ;;  %v2302_v26 = vadd.f32 %v2298_v48, %v2291_v35  ;;  %v2170_v27 = vadd.f32 %v2166_v36, %v2153_v0  ;;  %v2192_v40 = vmul.f32 %v5335_v13, %v2187_v62  ;;  %v5457_v48 = vld [vmem:[#allocation3 + $0x14] sm:$0xff] }
 0x9d0   :  { %v5455_v35 = vperm.slane %v5426_v54, 3  ;;  %v2205_v32 = vmul.f32 %v5339_v31, %v2200_v15  ;;  %v5468_v8 = vld [vmem:[#allocation3 + $0x15] sm:$0xff]  ;;  %v2364_v36 = vmul.f32 %v5446_v19, %v2273_v33 }
 0x9d1   :  { %v2120_v16 = vsel %vm2119_vm13, %v4151_v55, %v2116_v30  ;;  %v2313_v52 = vadd.f32 %v2309_v38, %v2302_v26  ;;  %v2353_v30 = vmul.f32 %v5439_v57, %v2262_v11  ;;  %v2183_v44 = vadd.f32 %v2179_v17, %v2170_v27  ;;  %v2146_v27 = vld [vmem:[#allocation13 + $0x18] sm:$0x7f] }
 0x9d2   :  { %v2125_v4 = vsel %vm2122_vm14, %v2124_v18, %v2120_v16  ;;  %v2236_v18 = vadd.f32 %v2232_v22, %v2223_v10  ;;  %v5462_v26 = vperm.slane %v5426_v54, 4  ;;  %v2375_v15 = vmul.f32 %v5455_v35, %v5457_v48 }
 0x9d3   :  { %v5436_v37 = vmul.f32 %v2125_v4, %v2030_v3  ;;  %v2324_v55 = vadd.f32 %v2320_v59, %v2313_v52  ;;  %v2196_v34 = vadd.f32 %v2192_v40, %v2183_v44  ;;  %v2218_v52 = vmul.f32 %v5345_v43, %v2213_v21  ;;  %v5492_v40 = vld [vmem:[#allocation3 + $0x17] sm:$0xff] }
 0x9d4   :  { %v5451_v45 = vld [vmem:[#allocation3 + $0x39] sm:$0xff]  ;;  %v2249_v4 = vadd.f32 %v5370_v24, %v2236_v18  ;;  %v5476_v59 = vperm.slane %v5426_v54, 5  ;;  %v2231_v24 = vmul.f32 %v5352_v47, %v2226_v53  ;;  %v2386_v21 = vmul.f32 %v5462_v26, %v5468_v8 }
 0x9d5   :  { %2142 = vst [vmem:[#allocation3 + $0x48] sm:$0xff] %v5436_v37  ;;  %v2335_v39 = vadd.f32 %v2331_v2, %v2324_v55  ;;  %v5464_v38 = vld [vmem:[#allocation3 + $0x3a] sm:$0xff]  ;;  %v2256_v62 = vmul.f32 %v5379_v41, %v5451_v45  ;;  %v2209_v10 = vadd.f32 %v2205_v32, %v2196_v34  ;;  %v2244_v53 = vmul.f32 %v5366_v49, %v5359_v28 }
 0x9d6   :  { %v5478_v0 = vld [vmem:[#allocation3 + $0x3b] sm:$0xff]  ;;  %v2267_v17 = vmul.f32 %v5383_v46, %v5464_v38  ;;  %v5510_v28 = vperm.slane %v2146_v27, 0 }
 0x9d7   :  { %v2346_v3 = vadd.f32 %v2342_v23, %v2335_v39  ;;  %v5480_v55 = vld [vmem:[#allocation3 + $0x16] sm:$0xff]  ;;  %v2260_v22 = vadd.f32 %v2256_v62, %v2249_v4  ;;  %v5488_v39 = vperm.slane %v5426_v54, 6  ;;  %v2278_v18 = vmul.f32 %v5394_v9, %v5478_v0 }
 0x9d8   :  { %v5490_v23 = vld [vmem:[#allocation3 + $0x3c] sm:$0xff]  ;;  %v2397_v32 = vmul.f32 %v5476_v59, %v5480_v55  ;;  %v5501_v62 = vperm.slane %v5426_v54, 7 }
 0x9d9   :  { %v2357_v16 = vadd.f32 %v2353_v30, %v2346_v3  ;;  %v2222_v30 = vadd.f32 %v2218_v52, %v2209_v10  ;;  %v2271_v44 = vadd.f32 %v2267_v17, %v2260_v22  ;;  %v2289_v52 = vmul.f32 %v5399_v51, %v5490_v23  ;;  %v5512_v10 = vld [vmem:[#allocation3 + $0x3e] sm:$0xff] }
 0x9da   :  { %v5514_v22 = vld [vmem:[#allocation3 + $0x19] sm:$0xff] }
 0x9db   :  { %v2368_v2 = vadd.f32 %v2364_v36, %v2357_v16  ;;  %v5503_v16 = vld [vmem:[#allocation3 + $0x3d] sm:$0xff]  ;;  %v2235_v34 = vadd.f32 %v2231_v24, %v2222_v30  ;;  %v2282_v4 = vadd.f32 %v2278_v18, %v2271_v44  ;;  %v5523_v30 = vperm.slane %v2146_v27, 2 }
 0x9dc   :  { %v2300_v24 = vmul.f32 %v5407_v6, %v5503_v16  ;;  %v5525_v44 = vld [vmem:[#allocation3 + $0x3f] sm:$0xff] }
 0x9dd   :  { %v2379_v3 = vadd.f32 %v2375_v15, %v2368_v2  ;;  %v2255_v15 = vmul.f32 %v5379_v41, %v2251_v1  ;;  %v2408_v2 = vmul.f32 %v5488_v39, %v5492_v40  ;;  %v2248_v17 = vadd.f32 %v2244_v53, %v2235_v34  ;;  %v5527_v18 = vld [vmem:[#allocation3 + $0x1a] sm:$0xff] }
 0x9de   :  { %v2293_v14 = vadd.f32 %v2289_v52, %v2282_v4  ;;  %v2419_v1 = vmul.f32 %v5501_v62, %v5381_v42  ;;  %v2277_v34 = vmul.f32 %v5394_v9, %v2273_v33  ;;  %v5534_v4 = vperm.slane %v2146_v27, 3 }
 0x9df   :  { %v2390_v36 = vadd.f32 %v2386_v21, %v2379_v3  ;;  %v2266_v21 = vmul.f32 %v5383_v46, %v2262_v11  ;;  %v5521_v3 = vperm.slane %v2146_v27, 1  ;;  %v2430_v11 = vmul.f32 %v5510_v28, %v5514_v22 }
 0x9e0   :  { %v2304_v53 = vadd.f32 %v2300_v24, %v2293_v14  ;;  %v5536_v52 = vperm.slane %v2146_v27, 4  ;;  %v2322_v14 = vmul.f32 %v5419_v50, %v5525_v44  ;;  %v5552_v24 = vld [vmem:[#allocation3 + $0x1c] sm:$0xff] }
 0x9e1   :  { %v2401_v54 = vadd.f32 %v2397_v32, %v2390_v36  ;;  %v2259_v32 = vadd.f32 %v2255_v15, %v2248_v17  ;;  %v2311_v36 = vmul.f32 %v5411_v12, %v5512_v10  ;;  %v2288_v15 = vmul.f32 %v5399_v51, %v5457_v48  ;;  %v5550_v17 = vld [vmem:[#allocation3 + $0x41] sm:$0xff] }
 0x9e2   :  { %v2441_v33 = vmul.f32 %v5521_v3, %v5527_v18  ;;  %v2299_v48 = vmul.f32 %v5407_v6, %v5468_v8  ;;  %v5562_v51 = vld [vmem:[#allocation3 + $0x42] sm:$0xff]  ;;  %v2310_v8 = vmul.f32 %v5411_v12, %v5480_v55  ;;  %v2321_v55 = vmul.f32 %v5419_v50, %v5492_v40 }
 0x9e3   :  { %v2412_v5 = vadd.f32 %v2408_v2, %v2401_v54  ;;  %v2270_v20 = vadd.f32 %v2266_v21, %v2259_v32  ;;  %v2315_v46 = vadd.f32 %v2311_v36, %v2304_v53  ;;  %v5546_v2 = vperm.slane %v2146_v27, 5 }
 0x9e4   :  { %v2168_v54 = vmul.f32 %v5326_v60, %v5464_v38  ;;  %v2333_v32 = vmul.f32 %v5421_v25, %v5409_v58  ;;  %v2452_v53 = vmul.f32 %v5523_v30, %v5538_v63  ;;  %v5560_v36 = vperm.slane %v2146_v27, 6  ;;  %v5566_v38 = vld [vmem:[#allocation3 + $0x1d] sm:$0xff] }
 0x9e5   :  { %v2423_v61 = vadd.f32 %v2419_v1, %v2412_v5  ;;  %v2281_v21 = vadd.f32 %v2277_v34, %v2270_v20  ;;  %v2326_v1 = vadd.f32 %v2322_v14, %v2315_v46  ;;  %v2155_v60 = vmul.f32 %v5323_v7, %v5451_v45  ;;  %v5576_v14 = vld [vmem:[#allocation3 + $0x43] sm:$0xff] }
 0x9e6   :  { %v2344_v34 = vmul.f32 %v5431_v56, %v5550_v17  ;;  %v2463_v27 = vmul.f32 %v5534_v4, %v5552_v24  ;;  %v5578_v45 = vld [vmem:[#allocation3 + $0x1e] sm:$0xff]  ;;  %v2332_v40 = vmul.f32 %v5421_v25, %v5381_v42 }
 0x9e7   :  { %v2434_v5 = vadd.f32 %v2430_v11, %v2423_v61  ;;  %v2292_v61 = vadd.f32 %v2288_v15, %v2281_v21  ;;  %v2337_v46 = vadd.f32 %v2333_v32, %v2326_v1  ;;  %v2181_v11 = vmul.f32 %v5331_v29, %v5478_v0  ;;  %v5588_v0 = vld [vmem:[#allocation3 + $0x44] sm:$0xff] }
 0x9e8   :  { %v2172_v7 = vadd.f32 %v2168_v54, %v2155_v60  ;;  %v2355_v21 = vmul.f32 %v5439_v57, %v5562_v51  ;;  %v2474_v1 = vmul.f32 %v5536_v52, %v5566_v38  ;;  %v2194_v29 = vmul.f32 %v5335_v13, %v5490_v23  ;;  %v5590_v32 = vld [vmem:[#allocation3 + $0x1f] sm:$0xff] }
 0x9e9   :  { %v2445_v20 = vadd.f32 %v2441_v33, %v2434_v5  ;;  %v2303_v15 = vadd.f32 %v2299_v48, %v2292_v61  ;;  %v2348_v5 = vadd.f32 %v2344_v34, %v2337_v46  ;;  %v2485_v61 = vmul.f32 %v5546_v2, %v5578_v45  ;;  %v5600_v23 = vld [vmem:[#allocation3 + $0x45] sm:$0xff] }
 0x9ea   :  { %v2185_v54 = vadd.f32 %v2181_v11, %v2172_v7  ;;  %v2207_v13 = vmul.f32 %v5339_v31, %v5503_v16  ;;  %v2343_v7 = vmul.f32 %v5431_v56, %v5514_v22  ;;  %v2496_v42 = vmul.f32 %v5560_v36, %v5590_v32 }
 0x9eb   :  { %v2456_v33 = vadd.f32 %v2452_v53, %v2445_v20  ;;  %v2314_v48 = vadd.f32 %v2310_v8, %v2303_v15  ;;  %v2359_v60 = vadd.f32 %v2355_v21, %v2348_v5  ;;  %v2366_v20 = vmul.f32 %v5446_v19, %v5576_v14  ;;  %v5610_v15 = vld [vmem:[#allocation3 + $0x46] sm:$0xff]  ;;  %v5615_v5 = vld [vmem:[%s6120_s5] ss:$0 sm:$0xff] }
 0x9ec   :  { %v2198_v46 = vadd.f32 %v2194_v29, %v2185_v54  ;;  %v2377_v8 = vmul.f32 %v5455_v35, %v5588_v0  ;;  %v2388_v22 = vmul.f32 %v5462_v26, %v5600_v23 }
 0x9ed   :  { %v2467_v53 = vadd.f32 %v2463_v27, %v2456_v33  ;;  %v2325_v11 = vadd.f32 %v2321_v55, %v2314_v48  ;;  %v2370_v27 = vadd.f32 %v2366_v20, %v2359_v60  ;;  %v2220_v33 = vmul.f32 %v5345_v43, %v5512_v10  ;;  %v5623_v10 = vld [vmem:[#allocation3 + $0x47] sm:$0xff] }
 0x9ee   :  { %v2211_v31 = vadd.f32 %v2207_v13, %v2198_v46  ;;  %v2233_v43 = vmul.f32 %v5352_v47, %v5525_v44  ;;  %v2399_v60 = vmul.f32 %v5476_v59, %v5610_v15  ;;  %v2365_v20 = vmul.f32 %v5446_v19, %v5538_v63 }
 0x9ef   :  { %v2478_v34 = vadd.f32 %v2474_v1, %v2467_v53  ;;  %v2336_v21 = vadd.f32 %v2332_v40, %v2325_v11  ;;  %v2381_v55 = vadd.f32 %v2377_v8, %v2370_v27  ;;  %v2354_v1 = vmul.f32 %v5439_v57, %v5527_v18  ;;  %v5640_v11 = vld [vmem:[#allocation3 + $0x49] sm:$0xff] }
 0x9f0   :  { %v2224_v29 = vadd.f32 %v2220_v33, %v2211_v31  ;;  %v2246_v40 = vmul.f32 %v5366_v49, %v5409_v58  ;;  %v2410_v13 = vmul.f32 %v5488_v39, %v5623_v10  ;;  %v2376_v46 = vmul.f32 %v5455_v35, %v5552_v24  ;;  %v5649_v24 = vld [vmem:[#allocation3 + $0x4a] sm:$0xff] }
 0x9f1   :  { %v2489_v16 = vadd.f32 %v2485_v61, %v2478_v34  ;;  %v2347_v53 = vadd.f32 %v2343_v7, %v2336_v21  ;;  %v2392_v48 = vadd.f32 %v2388_v22, %v2381_v55  ;;  %v2257_v34 = vmul.f32 %v5379_v41, %v5550_v17  ;;  %v5655_v55 = vld [vmem:[#allocation3 + $0x4b] sm:$0xff] }
 0x9f2   :  { %v2237_v61 = vadd.f32 %v2233_v43, %v2224_v29  ;;  %v2421_v8 = vmul.f32 %v5501_v62, %v5436_v37  ;;  %v2387_v7 = vmul.f32 %v5462_v26, %v5566_v38  ;;  %v2279_v21 = vmul.f32 %v5394_v9, %v5576_v14 }
 0x9f3   :  { %v2500_v54 = vadd.f32 %v2496_v42, %v2489_v16  ;;  %v2358_v47 = vadd.f32 %v2354_v1, %v2347_v53  ;;  %v2403_v44 = vadd.f32 %v2399_v60, %v2392_v48  ;;  %v6163_v42 = vld [vmem:[#allocation26_spill] sm:$0xff]  ;;  %v2432_v16 = vmul.f32 %v5510_v28, %v5640_v11  ;;  %v6164_v53 = vld [vmem:[#allocation27_spill] sm:$0xff]  ;;  %v5666_v60 = vld [vmem:[#allocation3 + $0x4c] sm:$0xff] }
 0x9f4   :  { %v2250_v63 = vadd.f32 %v2246_v40, %v2237_v61  ;;  %v2268_v33 = vmul.f32 %v6163_v42, %v5562_v51  ;;  %v2398_v38 = vmul.f32 %v5476_v59, %v5578_v45  ;;  %v2443_v43 = vmul.f32 %v5521_v3, %v5649_v24  ;;  %v2438_v61 = vld [vmem:[#allocation3 + $0x22] sm:$0xff] }
 0x9f5   :  { %v5632_v18 = vadd.f32 %v5615_v5, %v2500_v54  ;;  %v2369_v58 = vadd.f32 %v2365_v20, %v2358_v47  ;;  %v2414_v27 = vadd.f32 %v2410_v13, %v2403_v44  ;;  %v5662_v29 = vmul.f32 0.0, %v5501_v62  ;;  %v2427_v54 = vld [vmem:[#allocation3 + $0x21] sm:$0xff]  ;;  %v5674_v47 = vld [vmem:[#allocation3 + $0x4d] sm:$0xff] }
 0x9f6   :  { %v2261_v31 = vadd.f32 %v2257_v34, %v2250_v63  ;;  %v2290_v48 = vmul.f32 %v6164_v53, %v5588_v0  ;;  %v2409_v14 = vmul.f32 %v5488_v39, %v5590_v32  ;;  %v2454_v40 = vmul.f32 %v5523_v30, %v5655_v55  ;;  %v2449_v34 = vld [vmem:[#allocation3 + $0x23] sm:$0xff] }
 0x9f7   :  { %v3745_v49 = vmul.f32 -1.442695, %v5632_v18  ;;  %v2380_v41 = vadd.f32 %v2376_v46, %v2369_v58  ;;  %v2425_v17 = vadd.f32 %v2421_v8, %v2414_v27  ;;  %v2301_v62 = vmul.f32 %v5407_v6, %v5600_v23  ;;  %v2395_v27 = vld [vmem:[#allocation3 + $0x4e] sm:$0xff] }
 0x9f8   :  { %v2272_v22 = vadd.f32 %v2268_v33, %v2261_v31  ;;  %v2431_v0 = vmul.f32 %v5510_v28, %v2427_v54  ;;  %v2465_v32 = vmul.f32 %v5534_v4, %v5666_v60  ;;  %v2312_v58 = vmul.f32 %v5411_v12, %v5610_v15 }
 0x9f9   :  { %4152 = vpow2.f32 %v3745_v49  ;;  %v2391_v1 = vadd.f32 %v2387_v7, %v2380_v41  ;;  %v2436_v51 = vadd.f32 %v2432_v16, %v2425_v17  ;;  %v2442_v23 = vmul.f32 %v5521_v3, %v2438_v61  ;;  %v2460_v7 = vld [vmem:[#allocation3 + $0x24] sm:$0xff]  ;;  %v2406_v17 = vld [vmem:[#allocation3 + $0x4f] sm:$0xff] }
 0x9fa   :  { %v2283_v9 = vadd.f32 %v2279_v21, %v2272_v22  ;;  %v2476_v33 = vmul.f32 %v5536_v52, %v5674_v47  ;;  %v2453_v31 = vmul.f32 %v5523_v30, %v2449_v34  ;;  %v2323_v41 = vmul.f32 %v5419_v50, %v5623_v10 }
 0x9fb   :  { %v2402_v20 = vadd.f32 %v2398_v38, %v2391_v1  ;;  %v2447_v45 = vadd.f32 %v2443_v43, %v2436_v51  ;;  %v2487_v15 = vmul.f32 %v5546_v2, %v2395_v27  ;;  %v2464_v22 = vmul.f32 %v5534_v4, %v2460_v7  ;;  %v2471_v38 = vld [vmem:[#allocation3 + $0x25] sm:$0xff] }
 0x9fc   :  { %v2294_v44 = vadd.f32 %v2290_v48, %v2283_v9  ;;  %v2334_v1 = vmul.f32 %v5421_v25, %v5436_v37  ;;  %v2498_v54 = vmul.f32 %v5560_v36, %v2406_v17  ;;  %v2482_v48 = vld [vmem:[#allocation3 + $0x26] sm:$0xff]  ;;  %v2475_v50 = vmul.f32 %v5536_v52, %v2471_v38 }
 0x9fd   :  { %v2413_v46 = vadd.f32 %v2409_v14, %v2402_v20  ;;  %v2458_v63 = vadd.f32 %v2454_v40, %v2447_v45  ;;  %v2493_v45 = vld [vmem:[#allocation3 + $0x27] sm:$0xff]  ;;  %v2345_v40 = vmul.f32 %v5431_v56, %v5640_v11  ;;  %v2486_v25 = vmul.f32 %v5546_v2, %v2482_v48 }
 0x9fe   :  { %v2305_v8 = vadd.f32 %v2301_v62, %v2294_v44  ;;  %v2356_v44 = vmul.f32 %v5439_v57, %v5649_v24  ;;  %v2497_v34 = vmul.f32 %v5560_v36, %v2493_v45  ;;  %v2367_v56 = vmul.f32 %v5446_v19, %v5655_v55 }
 0x9ff   :  { %v4153_v13 = vpop.eup %4152  ;;  %v2424_v6 = vadd.f32 %v5662_v29, %v2413_v46  ;;  %v2469_v42 = vadd.f32 %v2465_v32, %v2458_v63  ;;  %v2378_v57 = vmul.f32 %v5455_v35, %v5666_v60 }
 0xa00   :  { %v2522_v49 = vadd.f32 1.0, %v4153_v13  ;;  %v2316_v21 = vadd.f32 %v2312_v58, %v2305_v8 }
 0xa01   :  { %v2435_v16 = vadd.f32 %v2431_v0, %v2424_v6  ;;  %v2480_v12 = vadd.f32 %v2476_v33, %v2469_v42  ;;  %v2389_v33 = vmul.f32 %v5462_v26, %v5674_v47  ;;  %v2411_v26 = vmul.f32 %v5488_v39, %v2406_v17  ;;  %v2439_v47 = vld [vmem:[#allocation3 + $0x52] sm:$0xff] }
 0xa02   :  { %4154 = vrcp.f32 %v2522_v49  ;;  %v2327_v53 = vadd.f32 %v2323_v41, %v2316_v21  ;;  %v2535_v32 = vand.u32 2147483647, %v2522_v49  ;;  %v2537_v58 = vand.u32 2147483648, %v2522_v49 }
 0xa03   :  { %v2446_v51 = vadd.f32 %v2442_v23, %v2435_v16  ;;  %v2491_v43 = vadd.f32 %v2487_v15, %v2480_v12  ;;  %vm2531_vm1 = vweird.f32 %v2522_v49  ;;  %v2400_v16 = vmul.f32 %v5476_v59, %v2395_v27  ;;  %v2428_v15 = vld [vmem:[#allocation3 + $0x51] sm:$0xff] }
 0xa04   :  { %v2338_v14 = vadd.f32 %v2334_v1, %v2327_v53  ;;  %v2538_v42 = vor.u32 1.1754944e-38, %v2537_v58  ;;  %vm2536_vm3 = vcmp.eq.f32.partialorder %v2535_v32, 8.507059e+37  ;;  %v2433_v38 = vmul.f32 %v5510_v28, %v2428_v15  ;;  %v2450_v27 = vld [vmem:[#allocation3 + $0x53] sm:$0xff] }
 0xa05   :  { %v2457_v9 = vadd.f32 %v2453_v31, %v2446_v51  ;;  %v2502_v10 = vadd.f32 %v2498_v54, %v2491_v43  ;;  %v2461_v51 = vld [vmem:[#allocation3 + $0x54] sm:$0xff]  ;;  %v2455_v53 = vmul.f32 %v5523_v30, %v2450_v27 }
 0xa06   :  { %v2349_v13 = vadd.f32 %v2345_v40, %v2338_v14  ;;  %v2466_v17 = vmul.f32 %v5534_v4, %v2461_v51  ;;  %v2483_v14 = vld [vmem:[#allocation3 + $0x56] sm:$0xff] }
 0xa07   :  { %v2468_v62 = vadd.f32 %v2464_v22, %v2457_v9  ;;  %v5698_v37 = vadd.f32 %v5615_v5, %v2502_v10  ;;  %v2494_v40 = vld [vmem:[#allocation3 + $0x57] sm:$0xff] }
 0xa08   :  { %v4155_v20 = vpop.eup %4154  ;;  %v2360_v11 = vadd.f32 %v2356_v44, %v2349_v13  ;;  %v2499_v13 = vmul.f32 %v5560_v36, %v2494_v40 }
 0xa09   :  { %v2527_v61 = vmul.f32 %v4155_v20, %v2522_v49  ;;  %v2479_v46 = vadd.f32 %v2475_v50, %v2468_v62  ;;  %v3747_v63 = vmul.f32 -1.442695, %v5698_v37  ;;  %vm2532_vm15 = vweird.f32 %v4155_v20  ;;  %v2472_v50 = vld [vmem:[#allocation3 + $0x55] sm:$0xff] }
 0xa0a   :  { %v2371_v24 = vadd.f32 %v2367_v56, %v2360_v11  ;;  %vm2533_vm2 = vmor %vm2531_vm1, %vm2532_vm15 }
 0xa0b   :  { %v2528_v0 = vsub.f32 1.0, %v2527_v61  ;;  %v2490_v6 = vadd.f32 %v2486_v25, %v2479_v46  ;;  %4156 = vpow2.f32 %v3747_v63 }
 0xa0c   :  { %v2382_v31 = vadd.f32 %v2378_v57, %v2371_v24 }
 0xa0d   :  { %v2529_v8 = vmul.f32 %v4155_v20, %v2528_v0  ;;  %v2501_v7 = vadd.f32 %v2497_v34, %v2490_v6 }
 0xa0e   :  { %v2393_v12 = vadd.f32 %v2389_v33, %v2382_v31 }
 0xa0f   :  { %v2530_v23 = vadd.f32 %v4155_v20, %v2529_v8  ;;  %v5711_v19 = vadd.f32 %v5615_v5, %v2501_v7 }
 0xa10   :  { %v2404_v22 = vadd.f32 %v2400_v16, %v2393_v12 }
 0xa11   :  { %v2534_v41 = vsel %vm2533_vm2, %v4155_v20, %v2530_v23  ;;  %v4157_v35 = vpop.eup %4156  ;;  %v3746_v49 = vmul.f32 -1.442695, %v5711_v19 }
 0xa12   :  { %v2539_v55 = vsel %vm2536_vm3, %v2538_v42, %v2534_v41  ;;  %v2524_v21 = vadd.f32 1.0, %v4157_v35  ;;  %v2415_v59 = vadd.f32 %v2411_v26, %v2404_v22 }
 0xa13   :  { %v5715_v60 = vmul.f32 %v2539_v55, %v5632_v18  ;;  %4158 = vpow2.f32 %v3746_v49  ;;  %v2444_v18 = vmul.f32 %v5521_v3, %v2439_v47  ;;  %v2488_v3 = vmul.f32 %v5546_v2, %v2483_v14 }
 0xa14   :  { %4160 = vrcp.f32 %v2524_v21  ;;  %v2426_v1 = vadd.f32 %v5662_v29, %v2415_v59  ;;  %v2477_v29 = vmul.f32 %v5536_v52, %v2472_v50  ;;  %v2567_v45 = vand.u32 2147483648, %v2524_v21 }
 0xa15   :  { %2590 = vadd.xlane.f32.xlu2 %v5715_v60  ;;  %v2565_v30 = vand.u32 2147483647, %v2524_v21  ;;  %vm2561_vm5 = vweird.f32 %v2524_v21 }
 0xa16   :  { %v2437_v54 = vadd.f32 %v2433_v38, %v2426_v1  ;;  %v2568_v0 = vor.u32 1.1754944e-38, %v2567_v45  ;;  %v3953_v45 = vld [vmem:[%s6128_s13 + $0x38] sm:$0xff] }
 0xa17   :  { %vm2566_vm7 = vcmp.eq.f32.partialorder %v2565_v30, 8.507059e+37  ;;  %2751 = vmatpush.bf16.msra.mxu3 %v3953_v45  ;;  %v6165_v45 = vld [vmem:[#allocation22_spill] sm:$0xff] }
 0xa18   :  { %v2448_v39 = vadd.f32 %v2444_v18, %v2437_v54 }
 0xa19   :  { %v4159_v43 = vpop.eup %4158 }
 0xa1a   :  { %v4161_v48 = vpop.eup %4160  ;;  %v2523_v9 = vadd.f32 1.0, %v4159_v43  ;;  %v2459_v20 = vadd.f32 %v2455_v53, %v2448_v39 }
 0xa1b   :  { %v2557_v10 = vmul.f32 %v4161_v48, %v2524_v21  ;;  %vm2562_vm4 = vweird.f32 %v4161_v48 }
 0xa1c   :  { %4162 = vrcp.f32 %v2523_v9  ;;  %v2470_v62 = vadd.f32 %v2466_v17, %v2459_v20  ;;  %vm2563_vm6 = vmor %vm2561_vm5, %vm2562_vm4  ;;  %v2552_v56 = vand.u32 2147483648, %v2523_v9  ;;  %v2550_v8 = vand.u32 2147483647, %v2523_v9 }
 0xa1d   :  { %v2558_v28 = vsub.f32 1.0, %v2557_v10  ;;  %vm2546_vm9 = vweird.f32 %v2523_v9 }
 0xa1e   :  { %v2481_v44 = vadd.f32 %v2477_v29, %v2470_v62  ;;  %v2553_v24 = vor.u32 1.1754944e-38, %v2552_v56  ;;  %vm2551_vm11 = vcmp.eq.f32.partialorder %v2550_v8, 8.507059e+37  ;;  %v3950_v62 = vld [vmem:[%s6128_s13 + $0x20] sm:$0xff] }
 0xa1f   :  { %v2559_v61 = vmul.f32 %v4161_v48, %v2558_v28 }
 0xa20   :  { %v2492_v52 = vadd.f32 %v2488_v3, %v2481_v44  ;;  %v3952_v3 = vld [vmem:[%s6128_s13 + $0x30] sm:$0xff]  ;;  %v3949_v44 = vld [vmem:[%s6128_s13 + $0x18] sm:$0xff] }
 0xa21   :  { %v2560_v25 = vadd.f32 %v4161_v48, %v2559_v61  ;;  %2752 = vmatpush.bf16.msra.mxu3 %v3952_v3  ;;  %v3951_v61 = vld [vmem:[%s6128_s13 + $0x28] sm:$0xff] }
 0xa22   :  { %v4163_v4 = vpop.eup %4162  ;;  %v2503_v58 = vadd.f32 %v2499_v13, %v2492_v52  ;;  %v3948_v13 = vld [vmem:[%s6128_s13 + $0x10] sm:$0xff]  ;;  %v3946_v52 = vld [vmem:[%s6128_s13] sm:$0xff] }
 0xa23   :  { %v2542_v46 = vmul.f32 %v4163_v4, %v2523_v9  ;;  %v2564_v34 = vsel %vm2563_vm6, %v4161_v48, %v2560_v25  ;;  %vm2547_vm8 = vweird.f32 %v4163_v4 }
 0xa24   :  { %v2569_v63 = vsel %vm2566_vm7, %v2568_v0, %v2564_v34  ;;  %v2509_v6 = vadd.f32 %v5615_v5, %v2503_v58  ;;  %vm2548_vm10 = vmor %vm2546_vm9, %vm2547_vm8  ;;  %v3947_v0 = vld [vmem:[%s6128_s13 + $0x8] sm:$0xff] }
 0xa25   :  { %v2543_v32 = vsub.f32 1.0, %v2542_v46  ;;  %v2588_v2 = vmul.f32 %v2569_v63, %v5698_v37  ;;  %2753 = vmatpush.bf16.msra.mxu3 %v3951_v61 }
 0xa26   :  { %v3748_v57 = vmul.f32 -1.442695, %v2509_v6 }
 0xa27   :  { %v2544_v11 = vmul.f32 %v4163_v4, %v2543_v32  ;;  %2594 = vadd.xlane.f32.xlu0 %v2588_v2 }
 0xa28   :  { %4164 = vpow2.f32 %v3748_v57 }
 0xa29   :  { %v2545_v36 = vadd.f32 %v4163_v4, %v2544_v11  ;;  %2754 = vmatpush.bf16.msra.mxu3 %v3950_v62 }
 0xa2b   :  { %v2549_v23 = vsel %vm2548_vm10, %v4163_v4, %v2545_v36 }
 0xa2c   :  { %v2554_v7 = vsel %vm2551_vm11, %v2553_v24, %v2549_v23 }
 0xa2d   :  { %v2587_v42 = vmul.f32 %v2554_v7, %v5711_v19  ;;  %v4422_v19 = vmov 128.0   ;;  %2755 = vmatpush.bf16.msra.mxu3 %v3949_v44 }
 0xa2e   :  { %v4165_v37 = vpop.eup %4164 }
 0xa2f   :  { %2592 = vadd.xlane.f32.xlu1 %v2587_v42  ;;  %v2525_v33 = vadd.f32 1.0, %v4165_v37 }
 0xa31   :  { %4166 = vrcp.f32 %v2525_v33  ;;  %v2582_v16 = vand.u32 2147483648, %v2525_v33  ;;  %v2580_v12 = vand.u32 2147483647, %v2525_v33  ;;  %vm2576_vm13 = vweird.f32 %v2525_v33  ;;  %2756 = vmatpush.bf16.msra.mxu3 %v3948_v13  ;;  %v6167_v13 = vld [vmem:[#allocation24_spill] sm:$0xff] }
 0xa32   :  { %4168 = vrcp.f32 %v4422_v19 }
 0xa33   :  { %v2583_v49 = vor.u32 1.1754944e-38, %v2582_v16  ;;  %vm2581_vm15 = vcmp.eq.f32.partialorder %v2580_v12, 8.507059e+37 }
 0xa35   :  { %2757 = vmatpush.bf16.msra.mxu3 %v3947_v0 }
 0xa37   :  { %v4167_v31 = vpop.eup %4166 }
 0xa38   :  { %v2572_v41 = vmul.f32 %v4167_v31, %v2525_v33  ;;  %vm2577_vm12 = vweird.f32 %v4167_v31  ;;  %v4169_v26 = vpop.eup %4168 }
 0xa39   :  { %vm2578_vm14 = vmor %vm2576_vm13, %vm2577_vm12  ;;  %v2599_v47 = vmul.f32 128.0, %v4169_v26  ;;  %vm2603_vm1 = vweird.f32 %v4169_v26  ;;  %2758 = vmatpush.bf16.msra.mxu3 %v3946_v52  ;;  %v6168_v52 = vld [vmem:[#allocation25_spill] sm:$0xff] }
 0xa3a   :  { %v2573_v55 = vsub.f32 1.0, %v2572_v41 }
 0xa3b   :  { %v2600_v38 = vsub.f32 1.0, %v2599_v47 }
 0xa3c   :  { %v2574_v5 = vmul.f32 %v4167_v31, %v2573_v55  ;;  %v4007_v55 = vld [vmem:[%s6120_s5 + $0x1] ss:$0 sm:$0xff] }
 0xa3d   :  { %v2601_v59 = vmul.f32 %v4169_v26, %v2600_v38 }
 0xa3e   :  { %v2575_v35 = vadd.f32 %v4167_v31, %v2574_v5 }
 0xa3f   :  { %v2602_v27 = vadd.f32 %v4169_v26, %v2601_v59 }
 0xa40   :  { %v2579_v15 = vsel %vm2578_vm14, %v4167_v31, %v2575_v35 }
 0xa41   :  { %v2584_v21 = vsel %vm2581_vm15, %v2583_v49, %v2579_v15  ;;  %v5731_v1 = vsel %vm2603_vm1, %v4169_v26, %v2602_v27 }
 0xa42   :  { %v2589_v22 = vmul.f32 %v2584_v21, %v2509_v6 }
 0xa44   :  { %2596 = vadd.xlane.f32.xlu2 %v2589_v22 }
 0xa88   :  { %v2591_v18 = vpop.xlane.xlu2 %2590 }
 0xa89   :  { %v2605_v51 = vmul.f32 %v5731_v1, %v2591_v18 }
 0xa8b   :  { %v5735_v43 = vsub.f32 %v5715_v60, %v2605_v51 }
 0xa8d   :  { %v2613_v54 = vmul.f32 %v5735_v43, %v5735_v43 }
 0xa8f   :  { %2617 = vadd.xlane.f32.xlu1 %v2613_v54 }
 0xa9a   :  { %v2595_v53 = vpop.xlane.xlu0 %2594 }
 0xa9b   :  { %v2607_v48 = vmul.f32 %v5731_v1, %v2595_v53 }
 0xa9d   :  { %v5740_v9 = vsub.f32 %v2588_v2, %v2607_v48 }
 0xa9f   :  { %v2615_v50 = vmul.f32 %v5740_v9, %v5740_v9 }
 0xaa1   :  { %2621 = vadd.xlane.f32.xlu2 %v2615_v50 }
 0xaa2   :  { %v2593_v10 = vpop.xlane.xlu1 %2592 }
 0xaa3   :  { %v2606_v39 = vmul.f32 %v5731_v1, %v2593_v10 }
 0xaa5   :  { %v2610_v17 = vsub.f32 %v2587_v42, %v2606_v39 }
 0xaa7   :  { %v2614_v14 = vmul.f32 %v2610_v17, %v2610_v17 }
 0xaa9   :  { %2619 = vadd.xlane.f32.xlu0 %v2614_v14 }
 0xab7   :  { %v2597_v60 = vpop.xlane.xlu2 %2596 }
 0xab8   :  { %v2608_v28 = vmul.f32 %v5731_v1, %v2597_v60  ;;  %v4008_v60 = vld [vmem:[#allocation10 + $0x8] ss:$0 sm:$0xff] }
 0xaba   :  { %v5746_v20 = vsub.f32 %v2589_v22, %v2608_v28 }
 0xabc   :  { %v2616_v29 = vmul.f32 %v5746_v20, %v5746_v20 }
 0xabe   :  { %2623 = vadd.xlane.f32.xlu1 %v2616_v29 }
 0xb02   :  { %v2618_v40 = vpop.xlane.xlu1 %2617 }
 0xb03   :  { %v2625_v30 = vmul.f32 %v2618_v40, %v5731_v1 }
 0xb05   :  { %v2629_v25 = vmax.f32 %v2625_v30, 1e-06 }
 0xb07   :  { %4170 = vrsqrt.f32 %v2629_v25  ;;  %vm2639_vm3 = vweird.f32 %v2629_v25 }
 0xb0d   :  { %v4171_v4 = vpop.eup %4170 }
 0xb0e   :  { %v2634_v46 = vmul.f32 %v4171_v4, %v2629_v25  ;;  %vm2640_vm2 = vweird.f32 %v4171_v4 }
 0xb0f   :  { %vm2641_vm4 = vmor %vm2639_vm3, %vm2640_vm2 }
 0xb10   :  { %v2635_v32 = vmul.f32 %v4171_v4, %v2634_v46 }
 0xb12   :  { %v2636_v11 = vmul.f32 0.5, %v2635_v32 }
 0xb14   :  { %v2622_v2 = vpop.xlane.xlu2 %2621  ;;  %v2637_v6 = vsub.f32 1.5, %v2636_v11 }
 0xb15   :  { %v2627_v56 = vmul.f32 %v2622_v2, %v5731_v1 }
 0xb16   :  { %v2638_v24 = vmul.f32 %v4171_v4, %v2637_v6 }
 0xb17   :  { %v2631_v8 = vmax.f32 %v2627_v56, 1e-06 }
 0xb18   :  { %v2642_v42 = vsel %vm2641_vm4, %v4171_v4, %v2638_v24 }
 0xb19   :  { %v2673_v41 = vmul.f32 %v2642_v42, %v5735_v43  ;;  %vm2659_vm9 = vweird.f32 %v2631_v8 }
 0xb1b   :  { %v2679_v15 = vmul.f32 %v4007_v55, %v2673_v41 }
 0xb1c   :  { %v2620_v34 = vpop.xlane.xlu0 %2619 }
 0xb1d   :  { %v2626_v63 = vmul.f32 %v2620_v34, %v5731_v1 }
 0xb1f   :  { %v2630_v58 = vmax.f32 %v2626_v63, 1e-06 }
 0xb21   :  { %4172 = vrsqrt.f32 %v2630_v58  ;;  %vm2649_vm6 = vweird.f32 %v2630_v58 }
 0xb22   :  { %4174 = vrsqrt.f32 %v2631_v8 }
 0xb27   :  { %v4173_v36 = vpop.eup %4172 }
 0xb28   :  { %v2644_v57 = vmul.f32 %v4173_v36, %v2630_v58  ;;  %vm2650_vm5 = vweird.f32 %v4173_v36  ;;  %v4175_v33 = vpop.eup %4174  ;;  %v6169_v58 = vld [vmem:[#allocation21_spill] sm:$0xff] }
 0xb29   :  { %vm2651_vm7 = vmor %vm2649_vm6, %vm2650_vm5  ;;  %v2654_v5 = vmul.f32 %v4175_v33, %v2631_v8  ;;  %vm2660_vm8 = vweird.f32 %v4175_v33 }
 0xb2a   :  { %v2645_v23 = vmul.f32 %v4173_v36, %v2644_v57  ;;  %vm2661_vm10 = vmor %vm2659_vm9, %vm2660_vm8 }
 0xb2b   :  { %v2655_v22 = vmul.f32 %v4175_v33, %v2654_v5 }
 0xb2c   :  { %v2646_v7 = vmul.f32 0.5, %v2645_v23 }
 0xb2d   :  { %v2656_v47 = vmul.f32 0.5, %v2655_v22 }
 0xb2e   :  { %v2647_v37 = vsub.f32 1.5, %v2646_v7 }
 0xb2f   :  { %v2657_v38 = vsub.f32 1.5, %v2656_v47 }
 0xb30   :  { %v2648_v31 = vmul.f32 %v4173_v36, %v2647_v37 }
 0xb31   :  { %v2624_v35 = vpop.xlane.xlu1 %2623  ;;  %v2658_v18 = vmul.f32 %v4175_v33, %v2657_v38 }
 0xb32   :  { %v2652_v16 = vsel %vm2651_vm7, %v4173_v36, %v2648_v31  ;;  %v2628_v49 = vmul.f32 %v2624_v35, %v5731_v1 }
 0xb33   :  { %v2674_v12 = vmul.f32 %v2652_v16, %v2610_v17  ;;  %v2662_v1 = vsel %vm2661_vm10, %v4175_v33, %v2658_v18  ;;  %v3958_v18 = vld [vmem:[%s6129_s14 + $0x24] sm:$0xf] }
 0xb34   :  { %v2632_v19 = vmax.f32 %v2628_v49, 1e-06  ;;  %v2675_v48 = vmul.f32 %v2662_v1, %v5740_v9  ;;  %v6166_v9 = vld [vmem:[#allocation23_spill] sm:$0xff]  ;;  %v3808_v49 = vld [vmem:[%s6129_s14 + $0x30] sm:$0xf] }
 0xb35   :  { %v2680_v21 = vmul.f32 %v4007_v55, %v2674_v12 }
 0xb36   :  { %4176 = vrsqrt.f32 %v2632_v19  ;;  %vm2669_vm12 = vweird.f32 %v2632_v19  ;;  %v2681_v39 = vmul.f32 %v4007_v55, %v2675_v48  ;;  %v3957_v48 = vld [vmem:[%s6129_s14 + $0x14] sm:$0xf0] }
 0xb37   :  { %v2683_v26 = vpack.c.bf16 %v2680_v21, %v2679_v15  ;;  %v3961_v15 = vld [vmem:[%s6129_s14 + $0x34] sm:$0xf0]  ;;  %v3960_v21 = vld [vmem:[%s6129_s14 + $0x34] sm:$0xf] }
 0xb38   :  { %v3809_v22 = vor.u32 %v3961_v15, %v3808_v49 }
 0xb39   :  { %2759 = vmatmul.bf16.vlgmr.msra.gmra.mxu3 %v2683_v26 }
 0xb3a   :  { %2942 = vmatpush.bf16.msrb.mxu0 %v3809_v22 }
 0xb3c   :  { %v4177_v59 = vpop.eup %4176 }
 0xb3d   :  { %v2664_v27 = vmul.f32 %v4177_v59, %v2632_v19  ;;  %vm2670_vm11 = vweird.f32 %v4177_v59  ;;  %v3810_v19 = vld [vmem:[%s6129_s14 + $0x38] sm:$0xf0] }
 0xb3e   :  { %vm2671_vm13 = vmor %vm2669_vm12, %vm2670_vm11  ;;  %v3813_v26 = vor.u32 %v3960_v21, %v3810_v19 }
 0xb3f   :  { %v2665_v51 = vmul.f32 %v4177_v59, %v2664_v27  ;;  %v3959_v27 = vld [vmem:[%s6129_s14 + $0x24] sm:$0xf0] }
 0xb40   :  { %2961 = vmatpush.bf16.msra.mxu1 %v3813_v26 }
 0xb41   :  { %v2666_v43 = vmul.f32 0.5, %v2665_v51 }
 0xb43   :  { %v2667_v54 = vsub.f32 1.5, %v2666_v43  ;;  %v3802_v43 = vld [vmem:[%s6129_s14 + $0x28] sm:$0xf0] }
 0xb44   :  { %v3805_v1 = vor.u32 %v3958_v18, %v3802_v43 }
 0xb45   :  { %v2668_v53 = vmul.f32 %v4177_v59, %v2667_v54 }
 0xb46   :  { %2962 = vmatpush.bf16.msra.mxu1 %v3805_v1 }
 0xb47   :  { %v2672_v50 = vsel %vm2671_vm13, %v4177_v59, %v2668_v53  ;;  %v3800_v59 = vld [vmem:[%s6129_s14 + $0x20] sm:$0xf]  ;;  %v3792_v53 = vld [vmem:[%s6129_s14 + $0x10] sm:$0xf] }
 0xb48   :  { %v2676_v10 = vmul.f32 %v2672_v50, %v5746_v20  ;;  %v3801_v51 = vor.u32 %v3959_v27, %v3800_v59  ;;  %v3956_v50 = vld [vmem:[%s6129_s14 + $0x14] sm:$0xf] }
 0xb4a   :  { %v2682_v17 = vmul.f32 %v4007_v55, %v2676_v10  ;;  %2943 = vmatpush.bf16.msrb.mxu0 %v3801_v51  ;;  %v3793_v10 = vor.u32 %v3957_v48, %v3792_v53 }
 0xb4c   :  { %v2684_v14 = vpack.c.bf16 %v2682_v17, %v2681_v39  ;;  %v3794_v39 = vld [vmem:[%s6129_s14 + $0x18] sm:$0xf0] }
 0xb4d   :  { %v3797_v17 = vor.u32 %v3956_v50, %v3794_v39 }
 0xb4e   :  { %2764 = vmatmul.bf16.gmra.mxu3 %v2684_v14  ;;  %2944 = vmatpush.bf16.msrb.mxu0 %v3793_v10 }
 0xb4f   :  { %2963 = vmatpush.bf16.msra.mxu1 %v3797_v17 }
 0xbbc   :  { %v2760_v28 = vpop.f32.mrf.mxu3 }
 0xbbd   :  { %v2761_v29 = vadd.f32 %v4008_v60, %v2760_v28  ;;  %v3784_v28 = vld [vmem:[%s6129_s14] sm:$0xf] }
 0xbbf   :  { %v5785_v3 = vadd.f32 %v2761_v29, %v6165_v45  ;;  %v3955_v29 = vld [vmem:[%s6129_s14 + $0x4] sm:$0xf0]  ;;  %v3954_v45 = vld [vmem:[%s6129_s14 + $0x4] sm:$0xf] }
 0xbc1   :  { %v2779_v40 = vsel %vm157_vm0, %v5785_v3, 0.0 }
 0xbc2   :  { %2780 = vadd.xlane.f32.xlu0 %v2779_v40  ;;  %v3785_v40 = vor.u32 %v3955_v29, %v3784_v28  ;;  %v3969_v28 = vld [vmem:[%s6130_s15 + $0x38] sm:$0xff]  ;;  %v3968_v29 = vld [vmem:[%s6130_s15 + $0x30] sm:$0xff] }
 0xbc3   :  { %3269 = vmatpush.bf16.msrb.mxu2 %v3969_v28 }
 0xbc4   :  { %v2762_v61 = vpop.f32.mrf.mxu3  ;;  %2945 = vmatpush.bf16.msrb.mxu0 %v3785_v40 }
 0xbc5   :  { %v2763_v30 = vadd.f32 %v4008_v60, %v2762_v61  ;;  %v3786_v61 = vld [vmem:[%s6129_s14 + $0x8] sm:$0xf0] }
 0xbc7   :  { %v5790_v62 = vadd.f32 %v2763_v30, %v6166_v9  ;;  %3270 = vmatpush.bf16.msrb.mxu2 %v3968_v29 }
 0xbc9   :  { %v2782_v20 = vsel %vm157_vm0, %v5790_v62, 0.0 }
 0xbca   :  { %2783 = vadd.xlane.f32.xlu2 %v2782_v20  ;;  %v3789_v20 = vor.u32 %v3954_v45, %v3786_v61  ;;  %v3976_v45 = vld [vmem:[%s6130_s15 + $0x70] sm:$0xff] }
 0xbcc   :  { %2964 = vmatpush.bf16.msra.mxu1 %v3789_v20 }
 0xbd1   :  { %v2765_v25 = vpop.f32.mrf.mxu3 }
 0xbd2   :  { %v2766_v44 = vadd.f32 %v4008_v60, %v2765_v25 }
 0xbd4   :  { %v5795_v4 = vadd.f32 %v2766_v44, %v6167_v13 }
 0xbd6   :  { %v2785_v0 = vsel %vm157_vm0, %v5795_v4, 0.0 }
 0xbd7   :  { %2786 = vadd.xlane.f32.xlu1 %v2785_v0 }
 0xbd9   :  { %v2767_v46 = vpop.f32.mrf.mxu3 }
 0xbda   :  { %v2768_v34 = vadd.f32 %v4008_v60, %v2767_v46 }
 0xbdc   :  { %v5800_v63 = vadd.f32 %v2768_v34, %v6168_v52 }
 0xbde   :  { %v2788_v32 = vsel %vm157_vm0, %v5800_v63, 0.0 }
 0xbdf   :  { %2789 = vadd.xlane.f32.xlu0 %v2788_v32 }
 0xc35   :  { %v2781_v2 = vpop.xlane.xlu0 %2780 }
 0xc36   :  { %v2791_v56 = vmul.f32 %v2781_v2, %v6169_v58 }
 0xc38   :  { %v5806_v11 = vsub.f32 %v5785_v3, %v2791_v56 }
 0xc3a   :  { %v2799_v8 = vmul.f32 %v5806_v11, %v5806_v11 }
 0xc3c   :  { %v2803_v6 = vsel %vm157_vm0, %v2799_v8, 0.0 }
 0xc3d   :  { %v2784_v36 = vpop.xlane.xlu2 %2783  ;;  %2804 = vadd.xlane.f32.xlu2 %v2803_v6 }
 0xc3e   :  { %v2792_v57 = vmul.f32 %v2784_v36, %v6169_v58 }
 0xc40   :  { %v5813_v24 = vsub.f32 %v5790_v62, %v2792_v57  ;;  %v4009_v57 = vld [vmem:[#allocation10 + $0x9] ss:$0 sm:$0xff] }
 0xc42   :  { %v2800_v23 = vmul.f32 %v5813_v24, %v5813_v24 }
 0xc44   :  { %v2806_v7 = vsel %vm157_vm0, %v2800_v23, 0.0 }
 0xc45   :  { %2807 = vadd.xlane.f32.xlu1 %v2806_v7 }
 0xc4a   :  { %v2787_v42 = vpop.xlane.xlu1 %2786 }
 0xc4b   :  { %v2793_v37 = vmul.f32 %v2787_v42, %v6169_v58 }
 0xc4d   :  { %v5820_v33 = vsub.f32 %v5795_v4, %v2793_v37 }
 0xc4f   :  { %v2801_v31 = vmul.f32 %v5820_v33, %v5820_v33 }
 0xc51   :  { %v2809_v41 = vsel %vm157_vm0, %v2801_v31, 0.0  ;;  %v4010_v31 = vld [vmem:[#allocation10 + $0xa] ss:$0 sm:$0xff] }
 0xc52   :  { %v2790_v55 = vpop.xlane.xlu0 %2789  ;;  %2810 = vadd.xlane.f32.xlu0 %v2809_v41 }
 0xc53   :  { %v2794_v16 = vmul.f32 %v2790_v55, %v6169_v58 }
 0xc55   :  { %v5827_v5 = vsub.f32 %v5800_v63, %v2794_v16 }
 0xc57   :  { %v2802_v12 = vmul.f32 %v5827_v5, %v5827_v5 }
 0xc59   :  { %v2812_v35 = vsel %vm157_vm0, %v2802_v12, 0.0 }
 0xc5a   :  { %2813 = vadd.xlane.f32.xlu2 %v2812_v35 }
 0xcb0   :  { %v2805_v47 = vpop.xlane.xlu2 %2804 }
 0xcb1   :  { %v2815_v38 = vmul.f32 %v2805_v47, %v6169_v58 }
 0xcb3   :  { %v2819_v54 = vadd.f32 1e-05, %v2815_v38 }
 0xcb5   :  { %4178 = vrsqrt.f32 %v2819_v54  ;;  %vm2829_vm15 = vweird.f32 %v2819_v54 }
 0xcb8   :  { %v2808_v14 = vpop.xlane.xlu1 %2807 }
 0xcb9   :  { %v2816_v60 = vmul.f32 %v2808_v14, %v6169_v58 }
 0xcbb   :  { %v4179_v30 = vpop.eup %4178  ;;  %v2820_v9 = vadd.f32 1e-05, %v2816_v60 }
 0xcbc   :  { %v2824_v25 = vmul.f32 %v4179_v30, %v2819_v54  ;;  %vm2830_vm14 = vweird.f32 %v4179_v30 }
 0xcbd   :  { %4180 = vrsqrt.f32 %v2820_v9  ;;  %vm2831_vm1 = vmor %vm2829_vm15, %vm2830_vm14  ;;  %vm2839_vm3 = vweird.f32 %v2820_v9 }
 0xcbe   :  { %v2825_v44 = vmul.f32 %v4179_v30, %v2824_v25 }
 0xcc0   :  { %v2826_v13 = vmul.f32 0.5, %v2825_v44 }
 0xcc2   :  { %v2827_v0 = vsub.f32 1.5, %v2826_v13 }
 0xcc3   :  { %v4181_v46 = vpop.eup %4180 }
 0xcc4   :  { %v2828_v34 = vmul.f32 %v4179_v30, %v2827_v0  ;;  %v2834_v52 = vmul.f32 %v4181_v46, %v2820_v9  ;;  %vm2840_vm2 = vweird.f32 %v4181_v46  ;;  %v3975_v9 = vld [vmem:[%s6130_s15 + $0x68] sm:$0xff] }
 0xcc5   :  { %v2811_v8 = vpop.xlane.xlu0 %2810  ;;  %vm2841_vm4 = vmor %vm2839_vm3, %vm2840_vm2 }
 0xcc6   :  { %v2835_v32 = vmul.f32 %v4181_v46, %v2834_v52  ;;  %v2832_v2 = vsel %vm2831_vm1, %v4179_v30, %v2828_v34  ;;  %v2817_v6 = vmul.f32 %v2811_v8, %v6169_v58  ;;  %v3967_v30 = vld [vmem:[%s6130_s15 + $0x28] sm:$0xff]  ;;  %v3966_v34 = vld [vmem:[%s6130_s15 + $0x20] sm:$0xff] }
 0xcc7   :  { %v2863_v23 = vmul.f32 %v2832_v2, %v5806_v11  ;;  %3271 = vmatpush.bf16.msrb.mxu2 %v3967_v30  ;;  %v3974_v52 = vld [vmem:[%s6130_s15 + $0x60] sm:$0xff]  ;;  %v3973_v2 = vld [vmem:[%s6130_s15 + $0x58] sm:$0xff] }
 0xcc8   :  { %v2836_v56 = vmul.f32 0.5, %v2835_v32  ;;  %v2821_v7 = vadd.f32 1e-05, %v2817_v6  ;;  %v3965_v32 = vld [vmem:[%s6130_s15 + $0x18] sm:$0xff] }
 0xcc9   :  { %v2868_v41 = vmul.f32 %v4009_v57, %v2863_v23 }
 0xcca   :  { %v2837_v36 = vsub.f32 1.5, %v2836_v56  ;;  %4182 = vrsqrt.f32 %v2821_v7  ;;  %vm2849_vm6 = vweird.f32 %v2821_v7 }
 0xccb   :  { %v2873_v15 = vadd.f32 %v4010_v31, %v2868_v41  ;;  %3272 = vmatpush.bf16.msrb.mxu2 %v3966_v34 }
 0xccc   :  { %v2838_v42 = vmul.f32 %v4181_v46, %v2837_v36 }
 0xccd   :  { %v2814_v16 = vpop.xlane.xlu2 %2813 }
 0xcce   :  { %v2842_v37 = vsel %vm2841_vm4, %v4181_v46, %v2838_v42  ;;  %v2818_v35 = vmul.f32 %v2814_v16, %v6169_v58  ;;  %v3972_v42 = vld [vmem:[%s6130_s15 + $0x50] sm:$0xff]  ;;  %v3963_v16 = vld [vmem:[%s6130_s15 + $0x8] sm:$0xff] }
 0xccf   :  { %v2864_v55 = vmul.f32 %v2842_v37, %v5813_v24  ;;  %3273 = vmatpush.bf16.msrb.mxu2 %v3965_v32 }
 0xcd0   :  { %v4183_v49 = vpop.eup %4182  ;;  %v2822_v22 = vadd.f32 1e-05, %v2818_v35 }
 0xcd1   :  { %v2869_v12 = vmul.f32 %v4009_v57, %v2864_v55  ;;  %v2844_v19 = vmul.f32 %v4183_v49, %v2821_v7  ;;  %vm2850_vm5 = vweird.f32 %v4183_v49  ;;  %v3964_v7 = vld [vmem:[%s6130_s15 + $0x10] sm:$0xff] }
 0xcd2   :  { %4184 = vrsqrt.f32 %v2822_v22  ;;  %vm2851_vm7 = vmor %vm2849_vm6, %vm2850_vm5  ;;  %vm2859_vm9 = vweird.f32 %v2822_v22 }
 0xcd3   :  { %v2874_v21 = vadd.f32 %v4010_v31, %v2869_v12  ;;  %v2845_v26 = vmul.f32 %v4183_v49, %v2844_v19  ;;  %3274 = vmatpush.bf16.msrb.mxu2 %v3964_v7  ;;  %v3971_v12 = vld [vmem:[%s6130_s15 + $0x48] sm:$0xff] }
 0xcd5   :  { %v2877_v11 = vpack.c.bf16 %v2874_v21, %v2873_v15  ;;  %v2846_v47 = vmul.f32 0.5, %v2845_v26  ;;  %v3970_v15 = vld [vmem:[%s6130_s15 + $0x40] sm:$0xff] }
 0xcd7   :  { %3814 = vmatmul.msk.bf16.vlgmr.msrb.gmra.mxu0 %vm157_vm0, %v2877_v11  ;;  %3816 = vmatmul.msk.bf16.vlgmr.msra.gmra.mxu1 %vm157_vm0, %v2877_v11  ;;  %v2847_v38 = vsub.f32 1.5, %v2846_v47 }
 0xcd8   :  { %v4185_v59 = vpop.eup %4184  ;;  %3275 = vmatpush.bf16.msrb.mxu2 %v3963_v16 }
 0xcd9   :  { %v2848_v24 = vmul.f32 %v4183_v49, %v2847_v38  ;;  %v2854_v27 = vmul.f32 %v4185_v59, %v2822_v22  ;;  %vm2860_vm8 = vweird.f32 %v4185_v59 }
 0xcda   :  { %vm2861_vm10 = vmor %vm2859_vm9, %vm2860_vm8 }
 0xcdb   :  { %v2855_v18 = vmul.f32 %v4185_v59, %v2854_v27  ;;  %v2852_v51 = vsel %vm2851_vm7, %v4183_v49, %v2848_v24  ;;  %v3962_v49 = vld [vmem:[%s6130_s15] sm:$0xff] }
 0xcdc   :  { %v2865_v1 = vmul.f32 %v2852_v51, %v5820_v33  ;;  %v3977_v33 = vld [vmem:[%s6130_s15 + $0x78] sm:$0xff]  ;;  %3276 = vmatpush.bf16.msrb.mxu2 %v3962_v49  ;;  %s4423_s15 = smov [#allocation15]  }
 0xcdd   :  { %v2856_v43 = vmul.f32 0.5, %v2855_v18  ;;  %3288 = vmatpush.bf16.msrb.mxu3 %v3977_v33  ;;  %s3423_s19 = sshll.u32 %s4423_s15, 4  ;;  %s3424_s19 = int_to_ptr.vmem [resolvable:$true] %s3423_s19 }
 0xcde   :  { %v2870_v10 = vmul.f32 %v4009_v57, %v2865_v1 }
 0xcdf   :  { %v2857_v54 = vsub.f32 1.5, %v2856_v43 }
 0xce0   :  { %v2875_v17 = vadd.f32 %v4010_v31, %v2870_v10 }
 0xce1   :  { %v2858_v53 = vmul.f32 %v4185_v59, %v2857_v54  ;;  %3289 = vmatpush.bf16.msrb.mxu3 %v3976_v45 }
 0xce3   :  { %v2862_v48 = vsel %vm2861_vm10, %v4185_v59, %v2858_v53 }
 0xce4   :  { %v2866_v50 = vmul.f32 %v2862_v48, %v5827_v5  ;;  %v3781_v5 = vld [vmem:[%s6119_s4 + $0x1] ss:$2 sm:$0x3] }
 0xce5   :  { %v5907_v40 = vperm.slane %v3781_v5, 0  ;;  %v5909_v61 = vperm.slane %v3781_v5, 1  ;;  %3290 = vmatpush.bf16.msrb.mxu3 %v3975_v9 }
 0xce6   :  { %v2871_v39 = vmul.f32 %v4009_v57, %v2866_v50 }
 0xce8   :  { %v2876_v14 = vadd.f32 %v4010_v31, %v2871_v39 }
 0xce9   :  { %3291 = vmatpush.bf16.msrb.mxu3 %v3974_v52 }
 0xcea   :  { %v2878_v60 = vpack.c.bf16 %v2876_v14, %v2875_v17 }
 0xcec   :  { %3815 = vmatmul.msk.bf16.gmra.mxu0 %vm157_vm0, %v2878_v60  ;;  %3817 = vmatmul.msk.bf16.gmra.mxu1 %vm157_vm0, %v2878_v60 }
 0xced   :  { %3292 = vmatpush.bf16.msrb.mxu3 %v3973_v2 }
 0xcf1   :  { %3293 = vmatpush.bf16.msrb.mxu3 %v3972_v42 }
 0xcf5   :  { %3294 = vmatpush.bf16.msrb.mxu3 %v3971_v12 }
 0xcf9   :  { %3295 = vmatpush.bf16.msrb.mxu3 %v3970_v15 }
 0xd54   :  { %v2947_v20 = vpop.f32.mrf.mxu0  ;;  %v2966_v25 = vpop.f32.mrf.mxu1 }
 0xd55   :  { %v5918_v44 = vadd.f32 %v2947_v20, %v5907_v40  ;;  %v5921_v13 = vadd.f32 %v2966_v25, %v5909_v61 }
 0xd57   :  { %v3818_v0 = vmul.f32 -1.442695, %v5918_v44  ;;  %v3819_v46 = vmul.f32 -1.442695, %v5921_v13 }
 0xd59   :  { %4186 = vpow2.f32 %v3818_v0 }
 0xd5a   :  { %4188 = vpow2.f32 %v3819_v46 }
 0xd5c   :  { %v2949_v56 = vpop.f32.mrf.mxu0  ;;  %v2968_v8 = vpop.f32.mrf.mxu1 }
 0xd5d   :  { %v5938_v6 = vadd.f32 %v2949_v56, %v5907_v40  ;;  %v5941_v36 = vadd.f32 %v2968_v8, %v5909_v61 }
 0xd5f   :  { %v4187_v57 = vpop.eup %4186  ;;  %v3820_v23 = vmul.f32 -1.442695, %v5938_v6  ;;  %v3821_v41 = vmul.f32 -1.442695, %v5941_v36 }
 0xd60   :  { %v4189_v37 = vpop.eup %4188  ;;  %v3000_v31 = vadd.f32 1.0, %v4187_v57 }
 0xd61   :  { %v5951_v55 = vadd.f32 1.0, %v4189_v37  ;;  %4190 = vpow2.f32 %v3820_v23 }
 0xd62   :  { %4192 = vrcp.f32 %v3000_v31  ;;  %v3017_v43 = vand.u32 2147483647, %v3000_v31  ;;  %v3019_v54 = vand.u32 2147483648, %v3000_v31  ;;  %vm3013_vm11 = vweird.f32 %v3000_v31 }
 0xd63   :  { %4194 = vrcp.f32 %v5951_v55  ;;  %v3032_v1 = vand.u32 2147483647, %v5951_v55  ;;  %v3034_v53 = vand.u32 2147483648, %v5951_v55  ;;  %vm3028_vm13 = vweird.f32 %v5951_v55 }
 0xd64   :  { %4196 = vpow2.f32 %v3821_v41  ;;  %vm5992_vm14 = vcmp.eq.f32.partialorder %v3017_v43, 8.507059e+37  ;;  %v3020_v60 = vor.u32 1.1754944e-38, %v3019_v54 }
 0xd65   :  { %vm5998_vm15 = vcmp.eq.f32.partialorder %v3032_v1, 8.507059e+37  ;;  %v3035_v29 = vor.u32 1.1754944e-38, %v3034_v53 }
 0xd67   :  { %v4191_v35 = vpop.eup %4190 }
 0xd68   :  { %v5966_v21 = vpop.eup %4192  ;;  %v5968_v22 = vadd.f32 1.0, %v4191_v35 }
 0xd69   :  { %v5970_v19 = vpop.eup %4194  ;;  %v3009_v11 = vmul.f32 %v5966_v21, %v3000_v31  ;;  %v2952_v27 = vpop.f32.mrf.mxu0  ;;  %vm3014_vm12 = vweird.f32 %v5966_v21 }
 0xd6a   :  { %v4197_v26 = vpop.eup %4196  ;;  %v3024_v47 = vmul.f32 %v5970_v19, %v5951_v55  ;;  %4198 = vrcp.f32 %v5968_v22  ;;  %v2971_v18 = vpop.f32.mrf.mxu1  ;;  %v5983_v48 = vadd.f32 %v2952_v27, %v5907_v40  ;;  %v3047_v45 = vand.u32 2147483647, %v5968_v22  ;;  %vm6006_vm1 = vmor %vm3013_vm11, %vm3014_vm12 }
 0xd6b   :  { %v3010_v38 = vsub.f32 1.0, %v3009_v11  ;;  %v5976_v59 = vadd.f32 1.0, %v4197_v26  ;;  %v5986_v50 = vadd.f32 %v2971_v18, %v5909_v61  ;;  %v3049_v30 = vand.u32 2147483648, %v5968_v22 }
 0xd6c   :  { %v3025_v24 = vsub.f32 1.0, %v3024_v47  ;;  %v3822_v33 = vmul.f32 -1.442695, %v5983_v48  ;;  %vm3029_vm2 = vweird.f32 %v5970_v19  ;;  %vm3043_vm4 = vweird.f32 %v5968_v22 }
 0xd6d   :  { %v3011_v51 = vmul.f32 %v5966_v21, %v3010_v38  ;;  %4200 = vrcp.f32 %v5976_v59  ;;  %v3823_v9 = vmul.f32 -1.442695, %v5986_v50  ;;  %v3064_v46 = vand.u32 2147483648, %v5976_v59  ;;  %vm6032_vm6 = vmor %vm3028_vm13, %vm3029_vm2 }
 0xd6e   :  { %v3026_v17 = vmul.f32 %v5970_v19, %v3025_v24  ;;  %4202 = vpow2.f32 %v3822_v33  ;;  %vm6024_vm5 = vcmp.eq.f32.partialorder %v3047_v45, 8.507059e+37  ;;  %v3050_v42 = vor.u32 1.1754944e-38, %v3049_v30 }
 0xd6f   :  { %v3012_v39 = vadd.f32 %v5966_v21, %v3011_v51  ;;  %4204 = vpow2.f32 %v3823_v9  ;;  %vm3058_vm9 = vweird.f32 %v5976_v59 }
 0xd70   :  { %v4199_v10 = vpop.eup %4198  ;;  %v3027_v52 = vadd.f32 %v5970_v19, %v3026_v17 }
 0xd71   :  { %v3039_v28 = vmul.f32 %v4199_v10, %v5968_v22  ;;  %v3016_v34 = vsel %vm6006_vm1, %v5966_v21, %v3012_v39  ;;  %v2954_v2 = vpop.f32.mrf.mxu0  ;;  %vm3044_vm3 = vweird.f32 %v4199_v10  ;;  %v3065_v21 = vor.u32 1.1754944e-38, %v3064_v46 }
 0xd72   :  { %v2973_v56 = vpop.f32.mrf.mxu1  ;;  %v6018_v57 = vadd.f32 %v2954_v2, %v5907_v40  ;;  %v3021_v12 = vsel %vm5992_vm14, %v3020_v60, %v3016_v34  ;;  %v3031_v35 = vsel %vm6032_vm6, %v5970_v19, %v3027_v52  ;;  %vm3045_vm7 = vmor %vm3043_vm4, %vm3044_vm3 }
 0xd73   :  { %v4201_v20 = vpop.eup %4200  ;;  %v3040_v0 = vsub.f32 1.0, %v3039_v28  ;;  %v6021_v23 = vadd.f32 %v2973_v56, %v5909_v61  ;;  %v3062_v61 = vand.u32 2147483647, %v5976_v59  ;;  %v3128_v38 = vmul.f32 %v3021_v12, %v5918_v44 }
 0xd74   :  { %v3054_v32 = vmul.f32 %v4201_v20, %v5976_v59  ;;  %v3824_v41 = vmul.f32 -1.442695, %v6018_v57  ;;  %vm3059_vm8 = vweird.f32 %v4201_v20  ;;  %v4203_v49 = vpop.eup %4202  ;;  %v3036_v19 = vsel %vm5998_vm15, %v3035_v29, %v3031_v35 }
 0xd75   :  { %v3041_v8 = vmul.f32 %v4199_v10, %v3040_v0  ;;  %v3825_v16 = vmul.f32 -1.442695, %v6021_v23  ;;  %v4205_v22 = vpop.eup %4204  ;;  %v3004_v47 = vadd.f32 1.0, %v4203_v49  ;;  %vm3060_vm10 = vmor %vm3058_vm9, %vm3059_vm8  ;;  %vm3063_vm11 = vcmp.eq.f32.partialorder %v3062_v61, 8.507059e+37 }
 0xd76   :  { %v3055_v37 = vsub.f32 1.0, %v3054_v32  ;;  %4206 = vpow2.f32 %v3824_v41  ;;  %v3005_v27 = vadd.f32 1.0, %v4205_v22  ;;  %v3129_v43 = vmul.f32 %v3036_v19, %v5921_v13 }
 0xd77   :  { %v3042_v40 = vadd.f32 %v4199_v10, %v3041_v8  ;;  %4208 = vpow2.f32 %v3825_v16  ;;  %v3077_v33 = vand.u32 2147483647, %v3004_v47  ;;  %v3079_v45 = vand.u32 2147483648, %v3004_v47 }
 0xd78   :  { %v3056_v55 = vmul.f32 %v4201_v20, %v3055_v37  ;;  %4210 = vrcp.f32 %v3004_v47  ;;  %vm3073_vm12 = vweird.f32 %v3004_v47  ;;  %vm3088_vm1 = vweird.f32 %v3005_v27 }
 0xd79   :  { %v3046_v15 = vsel %vm3045_vm7, %v4199_v10, %v3042_v40  ;;  %4212 = vrcp.f32 %v3005_v27  ;;  %vm6053_vm14 = vcmp.eq.f32.partialorder %v3077_v33, 8.507059e+37  ;;  %v3092_v34 = vand.u32 2147483647, %v3005_v27 }
 0xd7a   :  { %v3051_v11 = vsel %vm6024_vm5, %v3050_v42, %v3046_v15  ;;  %v3057_v26 = vadd.f32 %v4201_v20, %v3056_v55  ;;  %v3094_v52 = vand.u32 2147483648, %v3005_v27  ;;  %v3080_v56 = vor.u32 1.1754944e-38, %v3079_v45 }
 0xd7b   :  { %v3130_v24 = vmul.f32 %v3051_v11, %v5938_v6  ;;  %vm3093_vm6 = vcmp.eq.f32.partialorder %v3092_v34, 8.507059e+37 }
 0xd7c   :  { %v3061_v18 = vsel %vm3060_vm10, %v4201_v20, %v3057_v26  ;;  %v4207_v1 = vpop.eup %4206  ;;  %v3095_v35 = vor.u32 1.1754944e-38, %v3094_v52 }
 0xd7d   :  { %v3136_v59 = vpack.c.bf16 %v3130_v24, %v3128_v38  ;;  %v3066_v51 = vsel %vm3063_vm11, %v3065_v21, %v3061_v18  ;;  %v4209_v44 = vpop.eup %4208  ;;  %v3006_v10 = vadd.f32 1.0, %v4207_v1 }
 0xd7e   :  { %v3131_v54 = vmul.f32 %v3066_v51, %v5941_v36  ;;  %v3007_v39 = vadd.f32 1.0, %v4209_v44  ;;  %v4211_v17 = vpop.eup %4210 }
 0xd7f   :  { %3277 = vmatmul.bf16.vlgmr.msrb.gmra.mxu2 %v3136_v59  ;;  %4214 = vrcp.f32 %v3006_v10  ;;  %v4213_v6 = vpop.eup %4212  ;;  %v3069_v14 = vmul.f32 %v4211_v17, %v3004_v47  ;;  %vm3074_vm13 = vweird.f32 %v4211_v17  ;;  %v3107_v8 = vand.u32 2147483647, %v3006_v10 }
 0xd80   :  { %v3137_v53 = vpack.c.bf16 %v3131_v54, %v3129_v43  ;;  %4216 = vrcp.f32 %v3007_v39  ;;  %v3084_v60 = vmul.f32 %v4213_v6, %v3005_v27  ;;  %vm3089_vm15 = vweird.f32 %v4213_v6  ;;  %vm6057_vm2 = vmor %vm3073_vm12, %vm3074_vm13  ;;  %v4011_v54 = vld [vmem:[#allocation10 + $0xb] ss:$0 sm:$0xff] }
 0xd81   :  { %v3070_v28 = vsub.f32 1.0, %v3069_v14  ;;  %v3109_v7 = vand.u32 2147483648, %v3006_v10  ;;  %vm6063_vm3 = vmor %vm3088_vm1, %vm3089_vm15  ;;  %v3124_v61 = vand.u32 2147483648, %v3007_v39  ;;  %v3122_v12 = vand.u32 2147483647, %v3007_v39 }
 0xd82   :  { %3296 = vmatmul.bf16.vlgmr.msrb.gmra.mxu3 %v3137_v53  ;;  %v3085_v5 = vsub.f32 1.0, %v3084_v60  ;;  %vm3103_vm7 = vweird.f32 %v3006_v10  ;;  %vm3118_vm9 = vweird.f32 %v3007_v39  ;;  %vm3108_vm10 = vcmp.eq.f32.partialorder %v3107_v8, 8.507059e+37 }
 0xd83   :  { %v3071_v29 = vmul.f32 %v4211_v17, %v3070_v28  ;;  %v3110_v15 = vor.u32 1.1754944e-38, %v3109_v7  ;;  %v3125_v26 = vor.u32 1.1754944e-38, %v3124_v61  ;;  %vm3123_vm12 = vcmp.eq.f32.partialorder %v3122_v12, 8.507059e+37 }
 0xd84   :  { %v3086_v36 = vmul.f32 %v4213_v6, %v3085_v5 }
 0xd85   :  { %v4215_v13 = vpop.eup %4214  ;;  %v3072_v9 = vadd.f32 %v4211_v17, %v3071_v29 }
 0xd86   :  { %v4217_v30 = vpop.eup %4216  ;;  %v3099_v20 = vmul.f32 %v4215_v13, %v3006_v10  ;;  %v3087_v0 = vadd.f32 %v4213_v6, %v3086_v36  ;;  %vm3104_vm4 = vweird.f32 %v4215_v13 }
 0xd87   :  { %v3114_v46 = vmul.f32 %v4217_v30, %v3007_v39  ;;  %v3076_v37 = vsel %vm6057_vm2, %v4211_v17, %v3072_v9  ;;  %vm3119_vm5 = vweird.f32 %v4217_v30  ;;  %vm3105_vm8 = vmor %vm3103_vm7, %vm3104_vm4 }
 0xd88   :  { %v3100_v32 = vsub.f32 1.0, %v3099_v20  ;;  %v3091_v41 = vsel %vm6063_vm3, %v4213_v6, %v3087_v0  ;;  %v3081_v49 = vsel %vm6053_vm14, %v3080_v56, %v3076_v37  ;;  %vm3120_vm11 = vmor %vm3118_vm9, %vm3119_vm5 }
 0xd89   :  { %v3115_v42 = vsub.f32 1.0, %v3114_v46  ;;  %v3096_v22 = vsel %vm3093_vm6, %v3095_v35, %v3091_v41  ;;  %v3132_v19 = vmul.f32 %v3081_v49, %v5983_v48 }
 0xd8a   :  { %v3101_v40 = vmul.f32 %v4215_v13, %v3100_v32  ;;  %v3133_v18 = vmul.f32 %v3096_v22, %v5986_v50 }
 0xd8b   :  { %v3116_v16 = vmul.f32 %v4217_v30, %v3115_v42 }
 0xd8c   :  { %v3102_v55 = vadd.f32 %v4215_v13, %v3101_v40 }
 0xd8d   :  { %v3117_v21 = vadd.f32 %v4217_v30, %v3116_v16 }
 0xd8e   :  { %v3106_v11 = vsel %vm3105_vm8, %v4215_v13, %v3102_v55 }
 0xd8f   :  { %v3111_v47 = vsel %vm3108_vm10, %v3110_v15, %v3106_v11  ;;  %v3121_v38 = vsel %vm3120_vm11, %v4217_v30, %v3117_v21 }
 0xd90   :  { %v3134_v24 = vmul.f32 %v3111_v47, %v6018_v57  ;;  %v3126_v27 = vsel %vm3123_vm12, %v3125_v26, %v3121_v38 }
 0xd91   :  { %v3135_v59 = vmul.f32 %v3126_v27, %v6021_v23 }
 0xd92   :  { %v3138_v51 = vpack.c.bf16 %v3134_v24, %v3132_v19 }
 0xd93   :  { %v3139_v43 = vpack.c.bf16 %v3135_v59, %v3133_v18 }
 0xd94   :  { %3282 = vmatmul.bf16.gmra.mxu2 %v3138_v51 }
 0xd95   :  { %3301 = vmatmul.bf16.gmra.mxu3 %v3139_v43 }
 0xe02   :  { %v3278_v1 = vpop.f32.mrf.mxu2 }
 0xe03   :  { %v3279_v44 = vadd.f32 %v4011_v54, %v3278_v1 }
 0xe05   :  { %v3297_v53 = vpop.f32.mrf.mxu3 }
 0xe06   :  { %v3298_v10 = vadd.f32 %v3297_v53, %v3279_v44  ;;  %v4013_v53 = vld [vmem:[#allocation10 + $0xd] ss:$0 sm:$0xff] }
 0xe08   :  { %v3307_v39 = vmul.f32 0.5, %v3298_v10 }
 0xe0a   :  { %v3280_v17 = vpop.f32.mrf.mxu2  ;;  %v3311_v48 = vadd.f32 %v3307_v39, %v5785_v3 }
 0xe0b   :  { %v3281_v6 = vadd.f32 %v4011_v54, %v3280_v17 }
 0xe0c   :  { %v3317_v57 = vsel %vm157_vm0, %v3311_v48, 0.0 }
 0xe0d   :  { %v3299_v14 = vpop.f32.mrf.mxu3  ;;  %3318 = vadd.xlane.f32.xlu1 %v3317_v57 }
 0xe0e   :  { %v3300_v50 = vadd.f32 %v3299_v14, %v3281_v6 }
 0xe10   :  { %v3308_v23 = vmul.f32 0.5, %v3300_v50 }
 0xe12   :  { %v3312_v60 = vadd.f32 %v3308_v23, %v5790_v62 }
 0xe14   :  { %v3320_v28 = vsel %vm157_vm0, %v3312_v60, 0.0 }
 0xe15   :  { %3321 = vadd.xlane.f32.xlu0 %v3320_v28 }
 0xe17   :  { %v3283_v33 = vpop.f32.mrf.mxu2 }
 0xe18   :  { %v3284_v5 = vadd.f32 %v4011_v54, %v3283_v33  ;;  %v3302_v29 = vpop.f32.mrf.mxu3 }
 0xe1a   :  { %v3303_v13 = vadd.f32 %v3302_v29, %v3284_v5 }
 0xe1c   :  { %v3309_v45 = vmul.f32 0.5, %v3303_v13 }
 0xe1e   :  { %v3313_v36 = vadd.f32 %v3309_v45, %v5795_v4 }
 0xe1f   :  { %v3285_v3 = vpop.f32.mrf.mxu2 }
 0xe20   :  { %v3286_v30 = vadd.f32 %v4011_v54, %v3285_v3  ;;  %v3323_v9 = vsel %vm157_vm0, %v3313_v36, 0.0  ;;  %v3304_v20 = vpop.f32.mrf.mxu3  ;;  %v4012_v54 = vld [vmem:[#allocation10 + $0xc] ss:$0 sm:$0xff] }
 0xe21   :  { %3324 = vadd.xlane.f32.xlu2 %v3323_v9 }
 0xe22   :  { %v3305_v25 = vadd.f32 %v3304_v20, %v3286_v30 }
 0xe24   :  { %v3310_v0 = vmul.f32 0.5, %v3305_v25 }
 0xe26   :  { %v3314_v62 = vadd.f32 %v3310_v0, %v5800_v63 }
 0xe28   :  { %v3326_v46 = vsel %vm157_vm0, %v3314_v62, 0.0 }
 0xe29   :  { %3327 = vadd.xlane.f32.xlu1 %v3326_v46 }
 0xe80   :  { %v3319_v34 = vpop.xlane.xlu1 %3318 }
 0xe81   :  { %v3329_v52 = vmul.f32 %v3319_v34, %v6169_v58 }
 0xe83   :  { %v3333_v32 = vsub.f32 %v3311_v48, %v3329_v52 }
 0xe85   :  { %v3337_v2 = vmul.f32 %v3333_v32, %v3333_v32 }
 0xe87   :  { %v3341_v4 = vsel %vm157_vm0, %v3337_v2, 0.0 }
 0xe88   :  { %v3322_v56 = vpop.xlane.xlu0 %3321  ;;  %3342 = vadd.xlane.f32.xlu0 %v3341_v4 }
 0xe89   :  { %v3330_v8 = vmul.f32 %v3322_v56, %v6169_v58 }
 0xe8b   :  { %v3334_v7 = vsub.f32 %v3312_v60, %v3330_v8 }
 0xe8d   :  { %v3338_v42 = vmul.f32 %v3334_v7, %v3334_v7 }
 0xe8f   :  { %v3344_v37 = vsel %vm157_vm0, %v3338_v42, 0.0 }
 0xe90   :  { %3345 = vadd.xlane.f32.xlu2 %v3344_v37 }
 0xe94   :  { %v3325_v63 = vpop.xlane.xlu2 %3324 }
 0xe95   :  { %v3331_v31 = vmul.f32 %v3325_v63, %v6169_v58 }
 0xe97   :  { %v6088_v40 = vsub.f32 %v3313_v36, %v3331_v31 }
 0xe99   :  { %v3339_v61 = vmul.f32 %v6088_v40, %v6088_v40 }
 0xe9b   :  { %v3347_v41 = vsel %vm157_vm0, %v3339_v61, 0.0 }
 0xe9c   :  { %3348 = vadd.xlane.f32.xlu1 %v3347_v41  ;;  %v3328_v16 = vpop.xlane.xlu1 %3327 }
 0xe9d   :  { %v3332_v12 = vmul.f32 %v3328_v16, %v6169_v58 }
 0xe9f   :  { %v6094_v35 = vsub.f32 %v3314_v62, %v3332_v12 }
 0xea1   :  { %v3340_v55 = vmul.f32 %v6094_v35, %v6094_v35 }
 0xea3   :  { %v3350_v49 = vsel %vm157_vm0, %v3340_v55, 0.0 }
 0xea4   :  { %3351 = vadd.xlane.f32.xlu0 %v3350_v49 }
 0xefb   :  { %v3343_v15 = vpop.xlane.xlu0 %3342 }
 0xefc   :  { %v3353_v21 = vmul.f32 %v3343_v15, %v6169_v58 }
 0xefe   :  { %v3357_v22 = vadd.f32 1e-05, %v3353_v21 }
 0xf00   :  { %4218 = vrsqrt.f32 %v3357_v22  ;;  %vm3367_vm14 = vweird.f32 %v3357_v22 }
 0xf03   :  { %v3346_v11 = vpop.xlane.xlu2 %3345 }
 0xf04   :  { %v3354_v26 = vmul.f32 %v3346_v11, %v6169_v58 }
 0xf06   :  { %v4219_v47 = vpop.eup %4218  ;;  %v3358_v38 = vadd.f32 1e-05, %v3354_v26 }
 0xf07   :  { %v3362_v19 = vmul.f32 %v4219_v47, %v3357_v22  ;;  %vm3368_vm13 = vweird.f32 %v4219_v47 }
 0xf08   :  { %4220 = vrsqrt.f32 %v3358_v38  ;;  %vm3369_vm15 = vmor %vm3367_vm14, %vm3368_vm13  ;;  %vm3377_vm2 = vweird.f32 %v3358_v38 }
 0xf09   :  { %v3363_v24 = vmul.f32 %v4219_v47, %v3362_v19 }
 0xf0b   :  { %v3364_v27 = vmul.f32 0.5, %v3363_v24 }
 0xf0d   :  { %v3365_v18 = vsub.f32 1.5, %v3364_v27 }
 0xf0e   :  { %v4221_v59 = vpop.eup %4220 }
 0xf0f   :  { %v3366_v51 = vmul.f32 %v4219_v47, %v3365_v18  ;;  %v3372_v43 = vmul.f32 %v4221_v59, %v3358_v38  ;;  %v3349_v39 = vpop.xlane.xlu1 %3348  ;;  %vm3378_vm1 = vweird.f32 %v4221_v59 }
 0xf10   :  { %v3355_v48 = vmul.f32 %v3349_v39, %v6169_v58  ;;  %vm3379_vm3 = vmor %vm3377_vm2, %vm3378_vm1 }
 0xf11   :  { %v3370_v1 = vsel %vm3369_vm15, %v4219_v47, %v3366_v51  ;;  %v3373_v44 = vmul.f32 %v4221_v59, %v3372_v43 }
 0xf12   :  { %v3401_v10 = vmul.f32 %v3370_v1, %v3333_v32  ;;  %v3359_v14 = vadd.f32 1e-05, %v3355_v48 }
 0xf13   :  { %v3374_v17 = vmul.f32 0.5, %v3373_v44 }
 0xf14   :  { %v3406_v6 = vmul.f32 %v4012_v54, %v3401_v10  ;;  %4222 = vrsqrt.f32 %v3359_v14  ;;  %vm3387_vm5 = vweird.f32 %v3359_v14 }
 0xf15   :  { %v3375_v57 = vsub.f32 1.5, %v3374_v17 }
 0xf16   :  { %v3411_v50 = vadd.f32 %v4013_v53, %v3406_v6 }
 0xf17   :  { %v3376_v23 = vmul.f32 %v4221_v59, %v3375_v57  ;;  %v3352_v33 = vpop.xlane.xlu0 %3351 }
 0xf18   :  { %3415 = vst.msk [vmem:[#allocation15] sm:$0xff] %vm157_vm0, %v3411_v50  ;;  %v3356_v5 = vmul.f32 %v3352_v33, %v6169_v58 }
 0xf19   :  { %v3380_v60 = vsel %vm3379_vm3, %v4221_v59, %v3376_v23 }
 0xf1a   :  { %v3402_v28 = vmul.f32 %v3380_v60, %v3334_v7  ;;  %v4223_v13 = vpop.eup %4222  ;;  %v3360_v45 = vadd.f32 1e-05, %v3356_v5 }
 0xf1b   :  { %v3382_v3 = vmul.f32 %v4223_v13, %v3359_v14  ;;  %vm3388_vm4 = vweird.f32 %v4223_v13 }
 0xf1c   :  { %v3407_v29 = vmul.f32 %v4012_v54, %v3402_v28  ;;  %4224 = vrsqrt.f32 %v3360_v45  ;;  %vm3389_vm6 = vmor %vm3387_vm5, %vm3388_vm4  ;;  %vm3397_vm8 = vweird.f32 %v3360_v45 }
 0xf1d   :  { %v3383_v30 = vmul.f32 %v4223_v13, %v3382_v3 }
 0xf1e   :  { %v3412_v36 = vadd.f32 %v4013_v53, %v3407_v29 }
 0xf1f   :  { %v3384_v9 = vmul.f32 0.5, %v3383_v30 }
 0xf20   :  { %3416 = vst.msk [vmem:[#allocation15 + $0x8] sm:$0xff] %vm157_vm0, %v3412_v36 }
 0xf21   :  { %v3385_v20 = vsub.f32 1.5, %v3384_v9 }
 0xf22   :  { %v4225_v25 = vpop.eup %4224 }
 0xf23   :  { %v3386_v0 = vmul.f32 %v4223_v13, %v3385_v20  ;;  %v3392_v62 = vmul.f32 %v4225_v25, %v3360_v45  ;;  %vm3398_vm7 = vweird.f32 %v4225_v25 }
 0xf24   :  { %vm3399_vm9 = vmor %vm3397_vm8, %vm3398_vm7 }
 0xf25   :  { %v3390_v46 = vsel %vm3389_vm6, %v4223_v13, %v3386_v0  ;;  %v3393_v34 = vmul.f32 %v4225_v25, %v3392_v62 }
 0xf26   :  { %v3403_v58 = vmul.f32 %v3390_v46, %v6088_v40 }
 0xf27   :  { %v3394_v52 = vmul.f32 0.5, %v3393_v34 }
 0xf28   :  { %v3408_v32 = vmul.f32 %v4012_v54, %v3403_v58 }
 0xf29   :  { %v3395_v2 = vsub.f32 1.5, %v3394_v52 }
 0xf2a   :  { %v3413_v4 = vadd.f32 %v4013_v53, %v3408_v32 }
 0xf2b   :  { %v3396_v56 = vmul.f32 %v4225_v25, %v3395_v2 }
 0xf2c   :  { %3417 = vst.msk [vmem:[#allocation15 + $0x10] sm:$0xff] %vm157_vm0, %v3413_v4 }
 0xf2d   :  { %v3400_v8 = vsel %vm3399_vm9, %v4225_v25, %v3396_v56 }
 0xf2e   :  { %v3404_v7 = vmul.f32 %v3400_v8, %v6094_v35 }
 0xf30   :  { %v3409_v42 = vmul.f32 %v4012_v54, %v3404_v7 }
 0xf32   :  { %v3414_v37 = vadd.f32 %v4013_v53, %v3409_v42 }
 0xf34   :  { %3418 = vst.msk [vmem:[#allocation15 + $0x18] sm:$0xff] %vm157_vm0, %v3414_v37 }
 0xf35   :  { %3431 = dma.vmem_to_hbm [thread:$0]  %s3424_s19, 512, %s3426_s20, [#allocation6], %s4405_s29, %s4405_s29, %s4406_s30  }
 0xf36   :  { %4402 = dma.done.wait [#allocation6], 512  }
 0xf37   :  { %4403 = vsyncadd [#allocation6], 4294966784 }
 0xf38   :  { %3436 = vsyncpa [#allocation5], 1 }
 0xf39   :  { %3437 = vsyncpa [#allocation8], 1 }
 0xf3a   :  { %3438 = vsyncpa [#allocation11], 1 }
 0xf3b   :  { %3439 = vsyncpa [#allocation14], 1 }
 0xf3c   :  { %3440 = vsyncpa [#allocation6], 1 }

</bundles_post_ra>
